<compile_context>
chip_gen: v7x
topology: tpu7x:2x2x1
jax: 0.10.0
libtpu: 0.0.40
codegen_flags: <defaults>
</compile_context>

<pallas_src>
import jax
import jax.numpy as jnp
from jax import lax
from jax.experimental import pallas as pl
from jax.experimental.pallas import tpu as pltpu


def _round_up(x, m):
    return ((x + m - 1) // m) * m


# ----------------------- conv 3x3 (valid) + bias + ReLU ---------------------- #

def _conv3x3_kernel(x_ref, w_ref, b_ref, o_ref):
    """Direct 3x3 valid conv, NHWC, one image per grid step.

    x_ref: (1, Hi, Wi, Cin)   f32 activations
    w_ref: (9, Cin, Cout)     tap-major weights (f32 if Cin==1 else bf16)
    b_ref: (1, Cout)          f32 bias
    o_ref: (1, Ho, Wo, Cout)  f32 output, bias + ReLU fused
    """
    ho = o_ref.shape[1]
    wo = o_ref.shape[2]
    cin = x_ref.shape[3]
    cout = o_ref.shape[3]
    bias = b_ref[...]                                       # (1, Cout)

    def row(h, carry):
        acc = jnp.zeros((wo, cout), jnp.float32)
        for i in range(3):
            for j in range(3):
                patch = x_ref[0, h + i, pl.ds(j, wo), :]    # (Wo, Cin)
                wk = w_ref[3 * i + j]                       # (Cin, Cout)
                if cin == 1:
                    # K==1 rank-1 update: keep it on the VPU (broadcast MAC).
                    acc = acc + patch * wk.astype(jnp.float32)
                else:
                    acc = acc + jnp.dot(patch.astype(wk.dtype), wk,
                                        preferred_element_type=jnp.float32)
        o_ref[0, h] = jnp.maximum(acc + bias, 0.0)
        return carry

    lax.fori_loop(0, ho, row, 0)


def conv3x3_bias_relu(x, w, b):
    """x: (B, Hi, Wi, Cin) NHWC f32; w: (9, Cin, Cout); b: (1, Cout)."""
    B, Hi, Wi, Cin = x.shape
    Cout = w.shape[2]
    Ho, Wo = Hi - 2, Wi - 2
    flops = 2 * B * Ho * Wo * 9 * Cin * Cout
    nbytes = int(x.size * x.dtype.itemsize + w.size * w.dtype.itemsize
                 + b.size * b.dtype.itemsize + B * Ho * Wo * Cout * 4)
    return pl.pallas_call(
        _conv3x3_kernel,
        out_shape=jax.ShapeDtypeStruct((B, Ho, Wo, Cout), jnp.float32),
        grid_spec=pltpu.PrefetchScalarGridSpec(
            num_scalar_prefetch=0,
            grid=(B,),
            in_specs=[
                pl.BlockSpec((1, Hi, Wi, Cin), lambda bb: (bb, 0, 0, 0)),
                pl.BlockSpec((9, Cin, Cout), lambda bb: (0, 0, 0)),
                pl.BlockSpec((1, Cout), lambda bb: (0, 0)),
            ],
            out_specs=pl.BlockSpec((1, Ho, Wo, Cout), lambda bb: (bb, 0, 0, 0)),
        ),
        compiler_params=pltpu.CompilerParams(dimension_semantics=("parallel",)),
        cost_estimate=pl.CostEstimate(flops=flops, transcendentals=0,
                                      bytes_accessed=nbytes),
    )(x, w, b)


# ------------------------------ 2x2 max pool -------------------------------- #

def _maxpool2x2_kernel(x_ref, o_ref, rows_ref):
    """2x2 / stride-2 max pool, NHWC; one output row (all batches) per step.

    x_ref:    (B, 2, W, C)   the two input rows feeding this output row
    o_ref:    (B, 1, W//2, C)
    rows_ref: (B, W, C)      VMEM scratch holding the vertical pair-max
    """
    wo = o_ref.shape[2]
    rows_ref[...] = jnp.maximum(x_ref[:, 0], x_ref[:, 1])
    even = rows_ref[:, pl.ds(0, wo, 2), :]      # columns 0, 2, 4, ...
    odd = rows_ref[:, pl.ds(1, wo, 2), :]       # columns 1, 3, 5, ...
    o_ref[:, 0] = jnp.maximum(even, odd)


def maxpool2x2(x):
    """x: (B, H, W, C) NHWC, H and W even -> (B, H//2, W//2, C)."""
    B, H, W, C = x.shape
    Ho, Wo = H // 2, W // 2
    return pl.pallas_call(
        _maxpool2x2_kernel,
        out_shape=jax.ShapeDtypeStruct((B, Ho, Wo, C), x.dtype),
        grid_spec=pltpu.PrefetchScalarGridSpec(
            num_scalar_prefetch=0,
            grid=(Ho,),
            in_specs=[pl.BlockSpec((B, 2, W, C), lambda h: (0, h, 0, 0))],
            out_specs=pl.BlockSpec((B, 1, Wo, C), lambda h: (0, h, 0, 0)),
            scratch_shapes=[pltpu.VMEM((B, W, C), x.dtype)],
        ),
        compiler_params=pltpu.CompilerParams(dimension_semantics=("parallel",)),
    )(x)


# ------------------------- fused fc1 + ReLU + fc2 ---------------------------- #

def _fc_fused_kernel(x_ref, w1_ref, b1_ref, w2_ref, b2_ref, o_ref):
    """(tm,K)@(K,128)+b1 -> ReLU -> @(128,128)+b2, bf16 MXU / f32 accumulate."""
    h = jnp.dot(x_ref[...].astype(jnp.bfloat16), w1_ref[...],
                preferred_element_type=jnp.float32)
    h = jnp.maximum(h + b1_ref[...], 0.0)
    out = jnp.dot(h.astype(jnp.bfloat16), w2_ref[...],
                  preferred_element_type=jnp.float32)
    o_ref[...] = (out + b2_ref[...]).astype(o_ref.dtype)


def fc_fused(x, w1, b1, w2, b2):
    """x: (M, K) f32; w1: (K, N1) bf16; w2: (N1, N2) bf16 (N2 lane-padded)."""
    M, K = x.shape
    N1 = w1.shape[1]
    N2 = w2.shape[1]
    tm = min(_round_up(M, 8), 128)   # (8,128)-aligned M tile; <=128 fits v5e VMEM
    grid_m = pl.cdiv(M, tm)
    flops = 2 * M * K * N1 + 2 * M * N1 * N2
    nbytes = int(M * K * 4 + K * N1 * 2 + N1 * N2 * 2 + M * N2 * 4)
    return pl.pallas_call(
        _fc_fused_kernel,
        out_shape=jax.ShapeDtypeStruct((M, N2), jnp.float32),
        grid_spec=pltpu.PrefetchScalarGridSpec(
            num_scalar_prefetch=0,
            grid=(grid_m,),
            in_specs=[
                pl.BlockSpec((tm, K), lambda i: (i, 0)),
                pl.BlockSpec((K, N1), lambda i: (0, 0)),
                pl.BlockSpec((1, N1), lambda i: (0, 0)),
                pl.BlockSpec((N1, N2), lambda i: (0, 0)),
                pl.BlockSpec((1, N2), lambda i: (0, 0)),
            ],
            out_specs=pl.BlockSpec((tm, N2), lambda i: (i, 0)),
        ),
        compiler_params=pltpu.CompilerParams(
            dimension_semantics=("parallel",),
            vmem_limit_bytes=32 * 1024 * 1024),
        cost_estimate=pl.CostEstimate(flops=flops, transcendentals=0,
                                      bytes_accessed=nbytes),
    )(x, w1, b1, w2, b2)


# ------------------------------ params & forward ----------------------------- #

def convert_torch_params(tp):
    """One-time (outside jit) conversion from PyTorch layouts to kernel layouts."""
    p = {}
    # Conv weights (O, Cin, 3, 3) -> (9, Cin, O), tap-major (k = 3*i + j).
    p["conv1_w"] = jnp.transpose(tp["conv1_w"], (2, 3, 1, 0)).reshape(9, 1, 32)
    p["conv2_w"] = (jnp.transpose(tp["conv2_w"], (2, 3, 1, 0))
                    .reshape(9, 32, 64).astype(jnp.bfloat16))
    p["conv1_b"] = tp["conv1_b"].reshape(1, 32)
    p["conv2_b"] = tp["conv2_b"].reshape(1, 64)
    # fc1: torch (128, C*H*W) NCHW-flatten -> NHWC-flatten order, (9216, 128) bf16.
    f1 = (tp["fc1_w"].reshape(128, 64, 12, 12)
          .transpose(0, 2, 3, 1).reshape(128, 12 * 12 * 64))
    p["fc1_w"] = f1.T.astype(jnp.bfloat16)
    p["fc1_b"] = tp["fc1_b"].reshape(1, 128)
    # fc2: torch (10, 128) -> (128, 10), zero-padded to lane-dense (128, 128).
    p["fc2_w"] = (jnp.zeros((128, 128), jnp.float32)
                  .at[:, :10].set(tp["fc2_w"].T).astype(jnp.bfloat16))
    p["fc2_b"] = jnp.zeros((1, 128), jnp.float32).at[:, :10].set(tp["fc2_b"])
    return p


def init_params(key):
    """Random params in the PyTorch layouts, converted once to kernel layouts."""
    ks = jax.random.split(key, 8)

    def u(k, shape, fan_in):
        bound = 1.0 / (fan_in ** 0.5)
        return jax.random.uniform(k, shape, jnp.float32, -bound, bound)

    torch_params = {
        "conv1_w": u(ks[0], (32, 1, 3, 3), 1 * 9),
        "conv1_b": u(ks[1], (32,), 1 * 9),
        "conv2_w": u(ks[2], (64, 32, 3, 3), 32 * 9),
        "conv2_b": u(ks[3], (64,), 32 * 9),
        "fc1_w": u(ks[4], (128, 64 * 12 * 12), 64 * 12 * 12),
        "fc1_b": u(ks[5], (128,), 64 * 12 * 12),
        "fc2_w": u(ks[6], (10, 128), 128),
        "fc2_b": u(ks[7], (10,), 128),
    }
    return convert_torch_params(torch_params)


@jax.jit
def convnet_forward(params, x):
    """x: (B, 1, 28, 28) NCHW f32 (PyTorch convention) -> (B, 10) logits."""
    B = x.shape[0]
    x = x.reshape(B, 28, 28, 1)                 # NCHW -> NHWC is free when C == 1
    x = conv3x3_bias_relu(x, params["conv1_w"], params["conv1_b"])   # (B, 26, 26, 32)
    x = conv3x3_bias_relu(x, params["conv2_w"], params["conv2_b"])   # (B, 24, 24, 64)
    x = maxpool2x2(x)                                                # (B, 12, 12, 64)
    # Dropout2d(p=0.25) / Dropout(p=0.5) are identity at inference time.
    x = x.reshape(B, 12 * 12 * 64)              # NHWC flatten; fc1_w pre-permuted to match
    x = fc_fused(x, params["fc1_w"], params["fc1_b"],
                 params["fc2_w"], params["fc2_b"])                   # (B, 128) lane-padded
    return x[:, :10]


if __name__ == "__main__":
    key = jax.random.PRNGKey(0)
    pkey, xkey = jax.random.split(key)
    params = init_params(pkey)
    # fc1 expects 64*12*12 features, pinning the input to 28x28 (MNIST-like).
    x = jax.random.normal(xkey, (2, 1, 28, 28), dtype=jnp.float32)
    out = convnet_forward(params, x)
    jax.block_until_ready(out)
    assert out.shape == (2, 10) and out.dtype == jnp.float32
    print("KERNEL_OK")
</pallas_src>

<mosaic_0001>
module attributes {stable_mosaic.version = 11 : i64} {
  func.func @_conv3x3_kernel(%arg0: i32, %arg1: memref<1x28x28x1xf32, #tpu.memory_space<vmem>>, %arg2: memref<9x1x32xf32, #tpu.memory_space<vmem>>, %arg3: memref<1x32xf32, #tpu.memory_space<vmem>>, %arg4: memref<1x26x26x32xf32, #tpu.memory_space<vmem>>) attributes {dimension_semantics = [#tpu.dimension_semantics<parallel>], iteration_bounds = array<i64: 2>, scalar_prefetch = 0 : i64, scratch_operands = 0 : i64, tpu.core_type = #tpu.core_type<tc>, window_params = [{transform_indices = @transform_0, window_bounds = array<i64: 1, 28, 28, 1>}, {pipeline_mode = #tpu.pipeline_mode<synchronous>, transform_indices = @transform_1, window_bounds = array<i64: 9, 1, 32>}, {pipeline_mode = #tpu.pipeline_mode<synchronous>, transform_indices = @transform_2, window_bounds = array<i64: 1, 32>}, {transform_indices = @transform_3, window_bounds = array<i64: 1, 26, 26, 32>}]} {
    %c0 = arith.constant 0 : index
    %c0_0 = arith.constant 0 : index
    %0 = vector.load %arg3[%c0, %c0_0] : memref<1x32xf32, #tpu.memory_space<vmem>>, vector<1x32xf32>
    %c0_i32 = arith.constant 0 : i32
    %c26_i32 = arith.constant 26 : i32
    %1 = arith.addi %c0_i32, %c26_i32 : i32
    %c1_i32 = arith.constant 1 : i32
    scf.for %arg5 = %c0_i32 to %1 step %c1_i32  : i32 {
      %cst = arith.constant 0.000000e+00 : f32
      %2 = vector.broadcast %cst : f32 to vector<26x32xf32>
      %c0_i32_2 = arith.constant 0 : i32
      %3 = arith.addi %arg5, %c0_i32_2 : i32
      %c0_3 = arith.constant 0 : index
      %4 = arith.index_cast %3 : i32 to index
      %c0_4 = arith.constant 0 : index
      %c0_5 = arith.constant 0 : index
      %5 = vector.load %arg1[%c0_3, %4, %c0_4, %c0_5] : memref<1x28x28x1xf32, #tpu.memory_space<vmem>>, vector<1x1x26x1xf32>
      %6 = vector.shape_cast %5 : vector<1x1x26x1xf32> to vector<26x1xf32>
      %c0_6 = arith.constant 0 : index
      %c0_7 = arith.constant 0 : index
      %c0_8 = arith.constant 0 : index
      %7 = vector.load %arg2[%c0_6, %c0_7, %c0_8] : memref<9x1x32xf32, #tpu.memory_space<vmem>>, vector<1x1x32xf32>
      %8 = vector.shape_cast %7 : vector<1x1x32xf32> to vector<1x32xf32>
      %9 = vector.broadcast %6 : vector<26x1xf32> to vector<26x32xf32>
      %10 = vector.broadcast %8 : vector<1x32xf32> to vector<26x32xf32>
      %11 = arith.mulf %9, %10 : vector<26x32xf32>
      %12 = arith.addf %2, %11 : vector<26x32xf32>
      %c0_i32_9 = arith.constant 0 : i32
      %13 = arith.addi %arg5, %c0_i32_9 : i32
      %c0_10 = arith.constant 0 : index
      %14 = arith.index_cast %13 : i32 to index
      %c1 = arith.constant 1 : index
      %c0_11 = arith.constant 0 : index
      %15 = vector.load %arg1[%c0_10, %14, %c1, %c0_11] : memref<1x28x28x1xf32, #tpu.memory_space<vmem>>, vector<1x1x26x1xf32>
      %16 = vector.shape_cast %15 : vector<1x1x26x1xf32> to vector<26x1xf32>
      %c1_12 = arith.constant 1 : index
      %c0_13 = arith.constant 0 : index
      %c0_14 = arith.constant 0 : index
      %17 = vector.load %arg2[%c1_12, %c0_13, %c0_14] : memref<9x1x32xf32, #tpu.memory_space<vmem>>, vector<1x1x32xf32>
      %18 = vector.shape_cast %17 : vector<1x1x32xf32> to vector<1x32xf32>
      %19 = vector.broadcast %16 : vector<26x1xf32> to vector<26x32xf32>
      %20 = vector.broadcast %18 : vector<1x32xf32> to vector<26x32xf32>
      %21 = arith.mulf %19, %20 : vector<26x32xf32>
      %22 = arith.addf %12, %21 : vector<26x32xf32>
      %c0_i32_15 = arith.constant 0 : i32
      %23 = arith.addi %arg5, %c0_i32_15 : i32
      %c0_16 = arith.constant 0 : index
      %24 = arith.index_cast %23 : i32 to index
      %c2 = arith.constant 2 : index
      %c0_17 = arith.constant 0 : index
      %25 = vector.load %arg1[%c0_16, %24, %c2, %c0_17] : memref<1x28x28x1xf32, #tpu.memory_space<vmem>>, vector<1x1x26x1xf32>
      %26 = vector.shape_cast %25 : vector<1x1x26x1xf32> to vector<26x1xf32>
      %c2_18 = arith.constant 2 : index
      %c0_19 = arith.constant 0 : index
      %c0_20 = arith.constant 0 : index
      %27 = vector.load %arg2[%c2_18, %c0_19, %c0_20] : memref<9x1x32xf32, #tpu.memory_space<vmem>>, vector<1x1x32xf32>
      %28 = vector.shape_cast %27 : vector<1x1x32xf32> to vector<1x32xf32>
      %29 = vector.broadcast %26 : vector<26x1xf32> to vector<26x32xf32>
      %30 = vector.broadcast %28 : vector<1x32xf32> to vector<26x32xf32>
      %31 = arith.mulf %29, %30 : vector<26x32xf32>
      %32 = arith.addf %22, %31 : vector<26x32xf32>
      %c1_i32_21 = arith.constant 1 : i32
      %33 = arith.addi %arg5, %c1_i32_21 : i32
      %c0_22 = arith.constant 0 : index
      %34 = arith.index_cast %33 : i32 to index
      %c0_23 = arith.constant 0 : index
      %c0_24 = arith.constant 0 : index
      %35 = vector.load %arg1[%c0_22, %34, %c0_23, %c0_24] : memref<1x28x28x1xf32, #tpu.memory_space<vmem>>, vector<1x1x26x1xf32>
      %36 = vector.shape_cast %35 : vector<1x1x26x1xf32> to vector<26x1xf32>
      %c3 = arith.constant 3 : index
      %c0_25 = arith.constant 0 : index
      %c0_26 = arith.constant 0 : index
      %37 = vector.load %arg2[%c3, %c0_25, %c0_26] : memref<9x1x32xf32, #tpu.memory_space<vmem>>, vector<1x1x32xf32>
      %38 = vector.shape_cast %37 : vector<1x1x32xf32> to vector<1x32xf32>
      %39 = vector.broadcast %36 : vector<26x1xf32> to vector<26x32xf32>
      %40 = vector.broadcast %38 : vector<1x32xf32> to vector<26x32xf32>
      %41 = arith.mulf %39, %40 : vector<26x32xf32>
      %42 = arith.addf %32, %41 : vector<26x32xf32>
      %c1_i32_27 = arith.constant 1 : i32
      %43 = arith.addi %arg5, %c1_i32_27 : i32
      %c0_28 = arith.constant 0 : index
      %44 = arith.index_cast %43 : i32 to index
      %c1_29 = arith.constant 1 : index
      %c0_30 = arith.constant 0 : index
      %45 = vector.load %arg1[%c0_28, %44, %c1_29, %c0_30] : memref<1x28x28x1xf32, #tpu.memory_space<vmem>>, vector<1x1x26x1xf32>
      %46 = vector.shape_cast %45 : vector<1x1x26x1xf32> to vector<26x1xf32>
      %c4 = arith.constant 4 : index
      %c0_31 = arith.constant 0 : index
      %c0_32 = arith.constant 0 : index
      %47 = vector.load %arg2[%c4, %c0_31, %c0_32] : memref<9x1x32xf32, #tpu.memory_space<vmem>>, vector<1x1x32xf32>
      %48 = vector.shape_cast %47 : vector<1x1x32xf32> to vector<1x32xf32>
      %49 = vector.broadcast %46 : vector<26x1xf32> to vector<26x32xf32>
      %50 = vector.broadcast %48 : vector<1x32xf32> to vector<26x32xf32>
      %51 = arith.mulf %49, %50 : vector<26x32xf32>
      %52 = arith.addf %42, %51 : vector<26x32xf32>
      %c1_i32_33 = arith.constant 1 : i32
      %53 = arith.addi %arg5, %c1_i32_33 : i32
      %c0_34 = arith.constant 0 : index
      %54 = arith.index_cast %53 : i32 to index
      %c2_35 = arith.constant 2 : index
      %c0_36 = arith.constant 0 : index
      %55 = vector.load %arg1[%c0_34, %54, %c2_35, %c0_36] : memref<1x28x28x1xf32, #tpu.memory_space<vmem>>, vector<1x1x26x1xf32>
      %56 = vector.shape_cast %55 : vector<1x1x26x1xf32> to vector<26x1xf32>
      %c5 = arith.constant 5 : index
      %c0_37 = arith.constant 0 : index
      %c0_38 = arith.constant 0 : index
      %57 = vector.load %arg2[%c5, %c0_37, %c0_38] : memref<9x1x32xf32, #tpu.memory_space<vmem>>, vector<1x1x32xf32>
      %58 = vector.shape_cast %57 : vector<1x1x32xf32> to vector<1x32xf32>
      %59 = vector.broadcast %56 : vector<26x1xf32> to vector<26x32xf32>
      %60 = vector.broadcast %58 : vector<1x32xf32> to vector<26x32xf32>
      %61 = arith.mulf %59, %60 : vector<26x32xf32>
      %62 = arith.addf %52, %61 : vector<26x32xf32>
      %c2_i32 = arith.constant 2 : i32
      %63 = arith.addi %arg5, %c2_i32 : i32
      %c0_39 = arith.constant 0 : index
      %64 = arith.index_cast %63 : i32 to index
      %c0_40 = arith.constant 0 : index
      %c0_41 = arith.constant 0 : index
      %65 = vector.load %arg1[%c0_39, %64, %c0_40, %c0_41] : memref<1x28x28x1xf32, #tpu.memory_space<vmem>>, vector<1x1x26x1xf32>
      %66 = vector.shape_cast %65 : vector<1x1x26x1xf32> to vector<26x1xf32>
      %c6 = arith.constant 6 : index
      %c0_42 = arith.constant 0 : index
      %c0_43 = arith.constant 0 : index
      %67 = vector.load %arg2[%c6, %c0_42, %c0_43] : memref<9x1x32xf32, #tpu.memory_space<vmem>>, vector<1x1x32xf32>
      %68 = vector.shape_cast %67 : vector<1x1x32xf32> to vector<1x32xf32>
      %69 = vector.broadcast %66 : vector<26x1xf32> to vector<26x32xf32>
      %70 = vector.broadcast %68 : vector<1x32xf32> to vector<26x32xf32>
      %71 = arith.mulf %69, %70 : vector<26x32xf32>
      %72 = arith.addf %62, %71 : vector<26x32xf32>
      %c2_i32_44 = arith.constant 2 : i32
      %73 = arith.addi %arg5, %c2_i32_44 : i32
      %c0_45 = arith.constant 0 : index
      %74 = arith.index_cast %73 : i32 to index
      %c1_46 = arith.constant 1 : index
      %c0_47 = arith.constant 0 : index
      %75 = vector.load %arg1[%c0_45, %74, %c1_46, %c0_47] : memref<1x28x28x1xf32, #tpu.memory_space<vmem>>, vector<1x1x26x1xf32>
      %76 = vector.shape_cast %75 : vector<1x1x26x1xf32> to vector<26x1xf32>
      %c7 = arith.constant 7 : index
      %c0_48 = arith.constant 0 : index
      %c0_49 = arith.constant 0 : index
      %77 = vector.load %arg2[%c7, %c0_48, %c0_49] : memref<9x1x32xf32, #tpu.memory_space<vmem>>, vector<1x1x32xf32>
      %78 = vector.shape_cast %77 : vector<1x1x32xf32> to vector<1x32xf32>
      %79 = vector.broadcast %76 : vector<26x1xf32> to vector<26x32xf32>
      %80 = vector.broadcast %78 : vector<1x32xf32> to vector<26x32xf32>
      %81 = arith.mulf %79, %80 : vector<26x32xf32>
      %82 = arith.addf %72, %81 : vector<26x32xf32>
      %c2_i32_50 = arith.constant 2 : i32
      %83 = arith.addi %arg5, %c2_i32_50 : i32
      %c0_51 = arith.constant 0 : index
      %84 = arith.index_cast %83 : i32 to index
      %c2_52 = arith.constant 2 : index
      %c0_53 = arith.constant 0 : index
      %85 = vector.load %arg1[%c0_51, %84, %c2_52, %c0_53] : memref<1x28x28x1xf32, #tpu.memory_space<vmem>>, vector<1x1x26x1xf32>
      %86 = vector.shape_cast %85 : vector<1x1x26x1xf32> to vector<26x1xf32>
      %c8 = arith.constant 8 : index
      %c0_54 = arith.constant 0 : index
      %c0_55 = arith.constant 0 : index
      %87 = vector.load %arg2[%c8, %c0_54, %c0_55] : memref<9x1x32xf32, #tpu.memory_space<vmem>>, vector<1x1x32xf32>
      %88 = vector.shape_cast %87 : vector<1x1x32xf32> to vector<1x32xf32>
      %89 = vector.broadcast %86 : vector<26x1xf32> to vector<26x32xf32>
      %90 = vector.broadcast %88 : vector<1x32xf32> to vector<26x32xf32>
      %91 = arith.mulf %89, %90 : vector<26x32xf32>
      %92 = arith.addf %82, %91 : vector<26x32xf32>
      %93 = vector.broadcast %0 : vector<1x32xf32> to vector<26x32xf32>
      %94 = arith.addf %92, %93 : vector<26x32xf32>
      %cst_56 = arith.constant 0.000000e+00 : f32
      %95 = vector.broadcast %cst_56 : f32 to vector<26x32xf32>
      %96 = arith.maximumf %94, %95 : vector<26x32xf32>
      %c0_57 = arith.constant 0 : index
      %97 = arith.index_cast %arg5 : i32 to index
      %c0_58 = arith.constant 0 : index
      %c0_59 = arith.constant 0 : index
      %98 = vector.load %arg4[%c0_57, %97, %c0_58, %c0_59] : memref<1x26x26x32xf32, #tpu.memory_space<vmem>>, vector<1x1x26x32xf32>
      %99 = vector.shape_cast %98 : vector<1x1x26x32xf32> to vector<26x32xf32>
      %100 = vector.shape_cast %96 : vector<26x32xf32> to vector<1x1x26x32xf32>
      tpu.vector_store %arg4[%c0_57, %97, %c0_58, %c0_59], %100 {strides = array<i32>} : memref<1x26x26x32xf32, #tpu.memory_space<vmem>>, vector<1x1x26x32xf32>,
    }
    %c26_i32_1 = arith.constant 26 : i32
    return
  }
  func.func @transform_0(%arg0: i32) -> (i32, i32, i32, i32) {
    %c0_i32 = arith.constant 0 : i32
    %c0_i32_0 = arith.constant 0 : i32
    %c0_i32_1 = arith.constant 0 : i32
    %c0_i32_2 = arith.constant 0 : i32
    return %arg0, %c0_i32, %c0_i32_0, %c0_i32_1 : i32, i32, i32, i32
  }
  func.func @transform_1(%arg0: i32) -> (i32, i32, i32) {
    %c0_i32 = arith.constant 0 : i32
    %c0_i32_0 = arith.constant 0 : i32
    %c0_i32_1 = arith.constant 0 : i32
    %c0_i32_2 = arith.constant 0 : i32
    return %c0_i32, %c0_i32_0, %c0_i32_1 : i32, i32, i32
  }
  func.func @transform_2(%arg0: i32) -> (i32, i32) {
    %c0_i32 = arith.constant 0 : i32
    %c0_i32_0 = arith.constant 0 : i32
    %c0_i32_1 = arith.constant 0 : i32
    return %c0_i32, %c0_i32_0 : i32, i32
  }
  func.func @transform_3(%arg0: i32) -> (i32, i32, i32, i32) {
    %c0_i32 = arith.constant 0 : i32
    %c0_i32_0 = arith.constant 0 : i32
    %c0_i32_1 = arith.constant 0 : i32
    %c0_i32_2 = arith.constant 0 : i32
    return %arg0, %c0_i32, %c0_i32_0, %c0_i32_1 : i32, i32, i32, i32
  }
}

module attributes {stable_mosaic.version = 11 : i64} {
  func.func @_conv3x3_kernel(%arg0: i32, %arg1: memref<1x26x26x32xf32, #tpu.memory_space<vmem>>, %arg2: memref<9x32x64xbf16, #tpu.memory_space<vmem>>, %arg3: memref<1x64xf32, #tpu.memory_space<vmem>>, %arg4: memref<1x24x24x64xf32, #tpu.memory_space<vmem>>) attributes {dimension_semantics = [#tpu.dimension_semantics<parallel>], iteration_bounds = array<i64: 2>, scalar_prefetch = 0 : i64, scratch_operands = 0 : i64, tpu.core_type = #tpu.core_type<tc>, window_params = [{transform_indices = @transform_0, window_bounds = array<i64: 1, 26, 26, 32>}, {pipeline_mode = #tpu.pipeline_mode<synchronous>, transform_indices = @transform_1, window_bounds = array<i64: 9, 32, 64>}, {pipeline_mode = #tpu.pipeline_mode<synchronous>, transform_indices = @transform_2, window_bounds = array<i64: 1, 64>}, {transform_indices = @transform_3, window_bounds = array<i64: 1, 24, 24, 64>}]} {
    %c0 = arith.constant 0 : index
    %c0_0 = arith.constant 0 : index
    %0 = vector.load %arg3[%c0, %c0_0] : memref<1x64xf32, #tpu.memory_space<vmem>>, vector<1x64xf32>
    %c0_i32 = arith.constant 0 : i32
    %c24_i32 = arith.constant 24 : i32
    %1 = arith.addi %c0_i32, %c24_i32 : i32
    %c1_i32 = arith.constant 1 : i32
    scf.for %arg5 = %c0_i32 to %1 step %c1_i32  : i32 {
      %cst = arith.constant 0.000000e+00 : f32
      %2 = vector.broadcast %cst : f32 to vector<24x64xf32>
      %c0_i32_2 = arith.constant 0 : i32
      %3 = arith.addi %arg5, %c0_i32_2 : i32
      %c0_3 = arith.constant 0 : index
      %4 = arith.index_cast %3 : i32 to index
      %c0_4 = arith.constant 0 : index
      %c0_5 = arith.constant 0 : index
      %5 = vector.load %arg1[%c0_3, %4, %c0_4, %c0_5] : memref<1x26x26x32xf32, #tpu.memory_space<vmem>>, vector<1x1x24x32xf32>
      %6 = vector.shape_cast %5 : vector<1x1x24x32xf32> to vector<24x32xf32>
      %c0_6 = arith.constant 0 : index
      %c0_7 = arith.constant 0 : index
      %c0_8 = arith.constant 0 : index
      %7 = vector.load %arg2[%c0_6, %c0_7, %c0_8] : memref<9x32x64xbf16, #tpu.memory_space<vmem>>, vector<1x32x64xbf16>
      %8 = vector.shape_cast %7 : vector<1x32x64xbf16> to vector<32x64xbf16>
      %9 = arith.truncf %6 : vector<24x32xf32> to vector<24x32xbf16>
      %cst_9 = arith.constant dense<0.000000e+00> : vector<24x64xf32>
      %10 = tpu.matmul %9, %8, %cst_9 {dimension_numbers = #tpu.dot_dimension_numbers<[1], [0], [0], [1], [0, 0, 1, 1], [], []>} : vector<24x32xbf16>, vector<32x64xbf16>, vector<24x64xf32> -> vector<24x64xf32>
      %11 = arith.addf %2, %10 : vector<24x64xf32>
      %c0_i32_10 = arith.constant 0 : i32
      %12 = arith.addi %arg5, %c0_i32_10 : i32
      %c0_11 = arith.constant 0 : index
      %13 = arith.index_cast %12 : i32 to index
      %c1 = arith.constant 1 : index
      %c0_12 = arith.constant 0 : index
      %14 = vector.load %arg1[%c0_11, %13, %c1, %c0_12] : memref<1x26x26x32xf32, #tpu.memory_space<vmem>>, vector<1x1x24x32xf32>
      %15 = vector.shape_cast %14 : vector<1x1x24x32xf32> to vector<24x32xf32>
      %c1_13 = arith.constant 1 : index
      %c0_14 = arith.constant 0 : index
      %c0_15 = arith.constant 0 : index
      %16 = vector.load %arg2[%c1_13, %c0_14, %c0_15] : memref<9x32x64xbf16, #tpu.memory_space<vmem>>, vector<1x32x64xbf16>
      %17 = vector.shape_cast %16 : vector<1x32x64xbf16> to vector<32x64xbf16>
      %18 = arith.truncf %15 : vector<24x32xf32> to vector<24x32xbf16>
      %cst_16 = arith.constant dense<0.000000e+00> : vector<24x64xf32>
      %19 = tpu.matmul %18, %17, %cst_16 {dimension_numbers = #tpu.dot_dimension_numbers<[1], [0], [0], [1], [0, 0, 1, 1], [], []>} : vector<24x32xbf16>, vector<32x64xbf16>, vector<24x64xf32> -> vector<24x64xf32>
      %20 = arith.addf %11, %19 : vector<24x64xf32>
      %c0_i32_17 = arith.constant 0 : i32
      %21 = arith.addi %arg5, %c0_i32_17 : i32
      %c0_18 = arith.constant 0 : index
      %22 = arith.index_cast %21 : i32 to index
      %c2 = arith.constant 2 : index
      %c0_19 = arith.constant 0 : index
      %23 = vector.load %arg1[%c0_18, %22, %c2, %c0_19] : memref<1x26x26x32xf32, #tpu.memory_space<vmem>>, vector<1x1x24x32xf32>
      %24 = vector.shape_cast %23 : vector<1x1x24x32xf32> to vector<24x32xf32>
      %c2_20 = arith.constant 2 : index
      %c0_21 = arith.constant 0 : index
      %c0_22 = arith.constant 0 : index
      %25 = vector.load %arg2[%c2_20, %c0_21, %c0_22] : memref<9x32x64xbf16, #tpu.memory_space<vmem>>, vector<1x32x64xbf16>
      %26 = vector.shape_cast %25 : vector<1x32x64xbf16> to vector<32x64xbf16>
      %27 = arith.truncf %24 : vector<24x32xf32> to vector<24x32xbf16>
      %cst_23 = arith.constant dense<0.000000e+00> : vector<24x64xf32>
      %28 = tpu.matmul %27, %26, %cst_23 {dimension_numbers = #tpu.dot_dimension_numbers<[1], [0], [0], [1], [0, 0, 1, 1], [], []>} : vector<24x32xbf16>, vector<32x64xbf16>, vector<24x64xf32> -> vector<24x64xf32>
      %29 = arith.addf %20, %28 : vector<24x64xf32>
      %c1_i32_24 = arith.constant 1 : i32
      %30 = arith.addi %arg5, %c1_i32_24 : i32
      %c0_25 = arith.constant 0 : index
      %31 = arith.index_cast %30 : i32 to index
      %c0_26 = arith.constant 0 : index
      %c0_27 = arith.constant 0 : index
      %32 = vector.load %arg1[%c0_25, %31, %c0_26, %c0_27] : memref<1x26x26x32xf32, #tpu.memory_space<vmem>>, vector<1x1x24x32xf32>
      %33 = vector.shape_cast %32 : vector<1x1x24x32xf32> to vector<24x32xf32>
      %c3 = arith.constant 3 : index
      %c0_28 = arith.constant 0 : index
      %c0_29 = arith.constant 0 : index
      %34 = vector.load %arg2[%c3, %c0_28, %c0_29] : memref<9x32x64xbf16, #tpu.memory_space<vmem>>, vector<1x32x64xbf16>
      %35 = vector.shape_cast %34 : vector<1x32x64xbf16> to vector<32x64xbf16>
      %36 = arith.truncf %33 : vector<24x32xf32> to vector<24x32xbf16>
      %cst_30 = arith.constant dense<0.000000e+00> : vector<24x64xf32>
      %37 = tpu.matmul %36, %35, %cst_30 {dimension_numbers = #tpu.dot_dimension_numbers<[1], [0], [0], [1], [0, 0, 1, 1], [], []>} : vector<24x32xbf16>, vector<32x64xbf16>, vector<24x64xf32> -> vector<24x64xf32>
      %38 = arith.addf %29, %37 : vector<24x64xf32>
      %c1_i32_31 = arith.constant 1 : i32
      %39 = arith.addi %arg5, %c1_i32_31 : i32
      %c0_32 = arith.constant 0 : index
      %40 = arith.index_cast %39 : i32 to index
      %c1_33 = arith.constant 1 : index
      %c0_34 = arith.constant 0 : index
      %41 = vector.load %arg1[%c0_32, %40, %c1_33, %c0_34] : memref<1x26x26x32xf32, #tpu.memory_space<vmem>>, vector<1x1x24x32xf32>
      %42 = vector.shape_cast %41 : vector<1x1x24x32xf32> to vector<24x32xf32>
      %c4 = arith.constant 4 : index
      %c0_35 = arith.constant 0 : index
      %c0_36 = arith.constant 0 : index
      %43 = vector.load %arg2[%c4, %c0_35, %c0_36] : memref<9x32x64xbf16, #tpu.memory_space<vmem>>, vector<1x32x64xbf16>
      %44 = vector.shape_cast %43 : vector<1x32x64xbf16> to vector<32x64xbf16>
      %45 = arith.truncf %42 : vector<24x32xf32> to vector<24x32xbf16>
      %cst_37 = arith.constant dense<0.000000e+00> : vector<24x64xf32>
      %46 = tpu.matmul %45, %44, %cst_37 {dimension_numbers = #tpu.dot_dimension_numbers<[1], [0], [0], [1], [0, 0, 1, 1], [], []>} : vector<24x32xbf16>, vector<32x64xbf16>, vector<24x64xf32> -> vector<24x64xf32>
      %47 = arith.addf %38, %46 : vector<24x64xf32>
      %c1_i32_38 = arith.constant 1 : i32
      %48 = arith.addi %arg5, %c1_i32_38 : i32
      %c0_39 = arith.constant 0 : index
      %49 = arith.index_cast %48 : i32 to index
      %c2_40 = arith.constant 2 : index
      %c0_41 = arith.constant 0 : index
      %50 = vector.load %arg1[%c0_39, %49, %c2_40, %c0_41] : memref<1x26x26x32xf32, #tpu.memory_space<vmem>>, vector<1x1x24x32xf32>
      %51 = vector.shape_cast %50 : vector<1x1x24x32xf32> to vector<24x32xf32>
      %c5 = arith.constant 5 : index
      %c0_42 = arith.constant 0 : index
      %c0_43 = arith.constant 0 : index
      %52 = vector.load %arg2[%c5, %c0_42, %c0_43] : memref<9x32x64xbf16, #tpu.memory_space<vmem>>, vector<1x32x64xbf16>
      %53 = vector.shape_cast %52 : vector<1x32x64xbf16> to vector<32x64xbf16>
      %54 = arith.truncf %51 : vector<24x32xf32> to vector<24x32xbf16>
      %cst_44 = arith.constant dense<0.000000e+00> : vector<24x64xf32>
      %55 = tpu.matmul %54, %53, %cst_44 {dimension_numbers = #tpu.dot_dimension_numbers<[1], [0], [0], [1], [0, 0, 1, 1], [], []>} : vector<24x32xbf16>, vector<32x64xbf16>, vector<24x64xf32> -> vector<24x64xf32>
      %56 = arith.addf %47, %55 : vector<24x64xf32>
      %c2_i32 = arith.constant 2 : i32
      %57 = arith.addi %arg5, %c2_i32 : i32
      %c0_45 = arith.constant 0 : index
      %58 = arith.index_cast %57 : i32 to index
      %c0_46 = arith.constant 0 : index
      %c0_47 = arith.constant 0 : index
      %59 = vector.load %arg1[%c0_45, %58, %c0_46, %c0_47] : memref<1x26x26x32xf32, #tpu.memory_space<vmem>>, vector<1x1x24x32xf32>
      %60 = vector.shape_cast %59 : vector<1x1x24x32xf32> to vector<24x32xf32>
      %c6 = arith.constant 6 : index
      %c0_48 = arith.constant 0 : index
      %c0_49 = arith.constant 0 : index
      %61 = vector.load %arg2[%c6, %c0_48, %c0_49] : memref<9x32x64xbf16, #tpu.memory_space<vmem>>, vector<1x32x64xbf16>
      %62 = vector.shape_cast %61 : vector<1x32x64xbf16> to vector<32x64xbf16>
      %63 = arith.truncf %60 : vector<24x32xf32> to vector<24x32xbf16>
      %cst_50 = arith.constant dense<0.000000e+00> : vector<24x64xf32>
      %64 = tpu.matmul %63, %62, %cst_50 {dimension_numbers = #tpu.dot_dimension_numbers<[1], [0], [0], [1], [0, 0, 1, 1], [], []>} : vector<24x32xbf16>, vector<32x64xbf16>, vector<24x64xf32> -> vector<24x64xf32>
      %65 = arith.addf %56, %64 : vector<24x64xf32>
      %c2_i32_51 = arith.constant 2 : i32
      %66 = arith.addi %arg5, %c2_i32_51 : i32
      %c0_52 = arith.constant 0 : index
      %67 = arith.index_cast %66 : i32 to index
      %c1_53 = arith.constant 1 : index
      %c0_54 = arith.constant 0 : index
      %68 = vector.load %arg1[%c0_52, %67, %c1_53, %c0_54] : memref<1x26x26x32xf32, #tpu.memory_space<vmem>>, vector<1x1x24x32xf32>
      %69 = vector.shape_cast %68 : vector<1x1x24x32xf32> to vector<24x32xf32>
      %c7 = arith.constant 7 : index
      %c0_55 = arith.constant 0 : index
      %c0_56 = arith.constant 0 : index
      %70 = vector.load %arg2[%c7, %c0_55, %c0_56] : memref<9x32x64xbf16, #tpu.memory_space<vmem>>, vector<1x32x64xbf16>
      %71 = vector.shape_cast %70 : vector<1x32x64xbf16> to vector<32x64xbf16>
      %72 = arith.truncf %69 : vector<24x32xf32> to vector<24x32xbf16>
      %cst_57 = arith.constant dense<0.000000e+00> : vector<24x64xf32>
      %73 = tpu.matmul %72, %71, %cst_57 {dimension_numbers = #tpu.dot_dimension_numbers<[1], [0], [0], [1], [0, 0, 1, 1], [], []>} : vector<24x32xbf16>, vector<32x64xbf16>, vector<24x64xf32> -> vector<24x64xf32>
      %74 = arith.addf %65, %73 : vector<24x64xf32>
      %c2_i32_58 = arith.constant 2 : i32
      %75 = arith.addi %arg5, %c2_i32_58 : i32
      %c0_59 = arith.constant 0 : index
      %76 = arith.index_cast %75 : i32 to index
      %c2_60 = arith.constant 2 : index
      %c0_61 = arith.constant 0 : index
      %77 = vector.load %arg1[%c0_59, %76, %c2_60, %c0_61] : memref<1x26x26x32xf32, #tpu.memory_space<vmem>>, vector<1x1x24x32xf32>
      %78 = vector.shape_cast %77 : vector<1x1x24x32xf32> to vector<24x32xf32>
      %c8 = arith.constant 8 : index
      %c0_62 = arith.constant 0 : index
      %c0_63 = arith.constant 0 : index
      %79 = vector.load %arg2[%c8, %c0_62, %c0_63] : memref<9x32x64xbf16, #tpu.memory_space<vmem>>, vector<1x32x64xbf16>
      %80 = vector.shape_cast %79 : vector<1x32x64xbf16> to vector<32x64xbf16>
      %81 = arith.truncf %78 : vector<24x32xf32> to vector<24x32xbf16>
      %cst_64 = arith.constant dense<0.000000e+00> : vector<24x64xf32>
      %82 = tpu.matmul %81, %80, %cst_64 {dimension_numbers = #tpu.dot_dimension_numbers<[1], [0], [0], [1], [0, 0, 1, 1], [], []>} : vector<24x32xbf16>, vector<32x64xbf16>, vector<24x64xf32> -> vector<24x64xf32>
      %83 = arith.addf %74, %82 : vector<24x64xf32>
      %84 = vector.broadcast %0 : vector<1x64xf32> to vector<24x64xf32>
      %85 = arith.addf %83, %84 : vector<24x64xf32>
      %cst_65 = arith.constant 0.000000e+00 : f32
      %86 = vector.broadcast %cst_65 : f32 to vector<24x64xf32>
      %87 = arith.maximumf %85, %86 : vector<24x64xf32>
      %c0_66 = arith.constant 0 : index
      %88 = arith.index_cast %arg5 : i32 to index
      %c0_67 = arith.constant 0 : index
      %c0_68 = arith.constant 0 : index
      %89 = vector.load %arg4[%c0_66, %88, %c0_67, %c0_68] : memref<1x24x24x64xf32, #tpu.memory_space<vmem>>, vector<1x1x24x64xf32>
      %90 = vector.shape_cast %89 : vector<1x1x24x64xf32> to vector<24x64xf32>
      %91 = vector.shape_cast %87 : vector<24x64xf32> to vector<1x1x24x64xf32>
      tpu.vector_store %arg4[%c0_66, %88, %c0_67, %c0_68], %91 {strides = array<i32>} : memref<1x24x24x64xf32, #tpu.memory_space<vmem>>, vector<1x1x24x64xf32>,
    }
    %c24_i32_1 = arith.constant 24 : i32
    return
  }
  func.func @transform_0(%arg0: i32) -> (i32, i32, i32, i32) {
    %c0_i32 = arith.constant 0 : i32
    %c0_i32_0 = arith.constant 0 : i32
    %c0_i32_1 = arith.constant 0 : i32
    %c0_i32_2 = arith.constant 0 : i32
    return %arg0, %c0_i32, %c0_i32_0, %c0_i32_1 : i32, i32, i32, i32
  }
  func.func @transform_1(%arg0: i32) -> (i32, i32, i32) {
    %c0_i32 = arith.constant 0 : i32
    %c0_i32_0 = arith.constant 0 : i32
    %c0_i32_1 = arith.constant 0 : i32
    %c0_i32_2 = arith.constant 0 : i32
    return %c0_i32, %c0_i32_0, %c0_i32_1 : i32, i32, i32
  }
  func.func @transform_2(%arg0: i32) -> (i32, i32) {
    %c0_i32 = arith.constant 0 : i32
    %c0_i32_0 = arith.constant 0 : i32
    %c0_i32_1 = arith.constant 0 : i32
    return %c0_i32, %c0_i32_0 : i32, i32
  }
  func.func @transform_3(%arg0: i32) -> (i32, i32, i32, i32) {
    %c0_i32 = arith.constant 0 : i32
    %c0_i32_0 = arith.constant 0 : i32
    %c0_i32_1 = arith.constant 0 : i32
    %c0_i32_2 = arith.constant 0 : i32
    return %arg0, %c0_i32, %c0_i32_0, %c0_i32_1 : i32, i32, i32, i32
  }
}

module attributes {stable_mosaic.version = 11 : i64} {
  func.func @_maxpool2x2_kernel(%arg0: i32, %arg1: memref<2x2x24x64xf32, #tpu.memory_space<vmem>>, %arg2: memref<2x1x12x64xf32, #tpu.memory_space<vmem>>, %arg3: memref<2x24x64xf32, #tpu.memory_space<vmem>>) attributes {dimension_semantics = [#tpu.dimension_semantics<parallel>], iteration_bounds = array<i64: 12>, scalar_prefetch = 0 : i64, scratch_operands = 1 : i64, tpu.core_type = #tpu.core_type<tc>, window_params = [{transform_indices = @transform_0, window_bounds = array<i64: 2, 2, 24, 64>}, {transform_indices = @transform_1, window_bounds = array<i64: 2, 1, 12, 64>}]} {
    %c0 = arith.constant 0 : index
    %c0_0 = arith.constant 0 : index
    %c0_1 = arith.constant 0 : index
    %c0_2 = arith.constant 0 : index
    %0 = vector.load %arg1[%c0, %c0_0, %c0_1, %c0_2] : memref<2x2x24x64xf32, #tpu.memory_space<vmem>>, vector<2x1x24x64xf32>
    %1 = vector.shape_cast %0 : vector<2x1x24x64xf32> to vector<2x24x64xf32>
    %c0_3 = arith.constant 0 : index
    %c1 = arith.constant 1 : index
    %c0_4 = arith.constant 0 : index
    %c0_5 = arith.constant 0 : index
    %2 = vector.load %arg1[%c0_3, %c1, %c0_4, %c0_5] : memref<2x2x24x64xf32, #tpu.memory_space<vmem>>, vector<2x1x24x64xf32>
    %3 = vector.shape_cast %2 : vector<2x1x24x64xf32> to vector<2x24x64xf32>
    %4 = arith.maximumf %1, %3 : vector<2x24x64xf32>
    %c0_6 = arith.constant 0 : index
    %c0_7 = arith.constant 0 : index
    %c0_8 = arith.constant 0 : index
    %5 = vector.load %arg3[%c0_6, %c0_7, %c0_8] : memref<2x24x64xf32, #tpu.memory_space<vmem>>, vector<2x24x64xf32>
    tpu.vector_store %arg3[%c0_6, %c0_7, %c0_8], %4 {strides = array<i32>} : memref<2x24x64xf32, #tpu.memory_space<vmem>>, vector<2x24x64xf32>,
    %c0_9 = arith.constant 0 : index
    %c0_10 = arith.constant 0 : index
    %c0_11 = arith.constant 0 : index
    %6 = tpu.strided_load %arg3[%c0_9, %c0_10, %c0_11] {strides = array<i32: 1, 2, 1>} : memref<2x24x64xf32, #tpu.memory_space<vmem>>, vector<2x12x64xf32>
    %c0_12 = arith.constant 0 : index
    %c1_13 = arith.constant 1 : index
    %c0_14 = arith.constant 0 : index
    %7 = tpu.strided_load %arg3[%c0_12, %c1_13, %c0_14] {strides = array<i32: 1, 2, 1>} : memref<2x24x64xf32, #tpu.memory_space<vmem>>, vector<2x12x64xf32>
    %8 = arith.maximumf %6, %7 : vector<2x12x64xf32>
    %c0_15 = arith.constant 0 : index
    %c0_16 = arith.constant 0 : index
    %c0_17 = arith.constant 0 : index
    %c0_18 = arith.constant 0 : index
    %9 = vector.load %arg2[%c0_15, %c0_16, %c0_17, %c0_18] : memref<2x1x12x64xf32, #tpu.memory_space<vmem>>, vector<2x1x12x64xf32>
    %10 = vector.shape_cast %9 : vector<2x1x12x64xf32> to vector<2x12x64xf32>
    %11 = vector.shape_cast %8 : vector<2x12x64xf32> to vector<2x1x12x64xf32>
    tpu.vector_store %arg2[%c0_15, %c0_16, %c0_17, %c0_18], %11 {strides = array<i32>} : memref<2x1x12x64xf32, #tpu.memory_space<vmem>>, vector<2x1x12x64xf32>,
    return
  }
  func.func @transform_0(%arg0: i32) -> (i32, i32, i32, i32) {
    %c0_i32 = arith.constant 0 : i32
    %c0_i32_0 = arith.constant 0 : i32
    %c0_i32_1 = arith.constant 0 : i32
    %c0_i32_2 = arith.constant 0 : i32
    return %c0_i32, %arg0, %c0_i32_0, %c0_i32_1 : i32, i32, i32, i32
  }
  func.func @transform_1(%arg0: i32) -> (i32, i32, i32, i32) {
    %c0_i32 = arith.constant 0 : i32
    %c0_i32_0 = arith.constant 0 : i32
    %c0_i32_1 = arith.constant 0 : i32
    %c0_i32_2 = arith.constant 0 : i32
    return %c0_i32, %arg0, %c0_i32_0, %c0_i32_1 : i32, i32, i32, i32
  }
}

module attributes {stable_mosaic.version = 11 : i64} {
  func.func @_fc_fused_kernel(%arg0: i32, %arg1: memref<8x9216xf32, #tpu.memory_space<vmem>>, %arg2: memref<9216x128xbf16, #tpu.memory_space<vmem>>, %arg3: memref<1x128xf32, #tpu.memory_space<vmem>>, %arg4: memref<128x128xbf16, #tpu.memory_space<vmem>>, %arg5: memref<1x128xf32, #tpu.memory_space<vmem>>, %arg6: memref<8x128xf32, #tpu.memory_space<vmem>>) attributes {dimension_semantics = [#tpu.dimension_semantics<parallel>], iteration_bounds = array<i64: 1>, scalar_prefetch = 0 : i64, scratch_operands = 0 : i64, tpu.core_type = #tpu.core_type<tc>, window_params = [{transform_indices = @transform_0, window_bounds = array<i64: 8, 9216>}, {pipeline_mode = #tpu.pipeline_mode<synchronous>, transform_indices = @transform_1, window_bounds = array<i64: 9216, 128>}, {pipeline_mode = #tpu.pipeline_mode<synchronous>, transform_indices = @transform_2, window_bounds = array<i64: 1, 128>}, {pipeline_mode = #tpu.pipeline_mode<synchronous>, transform_indices = @transform_3, window_bounds = array<i64: 128, 128>}, {pipeline_mode = #tpu.pipeline_mode<synchronous>, transform_indices = @transform_4, window_bounds = array<i64: 1, 128>}, {transform_indices = @transform_5, window_bounds = array<i64: 8, 128>}]} {
    %c0 = arith.constant 0 : index
    %c0_0 = arith.constant 0 : index
    %0 = vector.load %arg1[%c0, %c0_0] : memref<8x9216xf32, #tpu.memory_space<vmem>>, vector<8x9216xf32>
    %1 = arith.truncf %0 : vector<8x9216xf32> to vector<8x9216xbf16>
    %c0_1 = arith.constant 0 : index
    %c0_2 = arith.constant 0 : index
    %2 = vector.load %arg2[%c0_1, %c0_2] : memref<9216x128xbf16, #tpu.memory_space<vmem>>, vector<9216x128xbf16>
    %cst = arith.constant dense<0.000000e+00> : vector<8x128xf32>
    %3 = tpu.matmul %1, %2, %cst {dimension_numbers = #tpu.dot_dimension_numbers<[1], [0], [0], [1], [0, 0, 1, 1], [], []>} : vector<8x9216xbf16>, vector<9216x128xbf16>, vector<8x128xf32> -> vector<8x128xf32>
    %c0_3 = arith.constant 0 : index
    %c0_4 = arith.constant 0 : index
    %4 = vector.load %arg3[%c0_3, %c0_4] : memref<1x128xf32, #tpu.memory_space<vmem>>, vector<1x128xf32>
    %5 = vector.broadcast %4 : vector<1x128xf32> to vector<8x128xf32>
    %6 = arith.addf %3, %5 : vector<8x128xf32>
    %cst_5 = arith.constant 0.000000e+00 : f32
    %7 = vector.broadcast %cst_5 : f32 to vector<8x128xf32>
    %8 = arith.maximumf %6, %7 : vector<8x128xf32>
    %9 = arith.truncf %8 : vector<8x128xf32> to vector<8x128xbf16>
    %c0_6 = arith.constant 0 : index
    %c0_7 = arith.constant 0 : index
    %10 = vector.load %arg4[%c0_6, %c0_7] : memref<128x128xbf16, #tpu.memory_space<vmem>>, vector<128x128xbf16>
    %cst_8 = arith.constant dense<0.000000e+00> : vector<8x128xf32>
    %11 = tpu.matmul %9, %10, %cst_8 {dimension_numbers = #tpu.dot_dimension_numbers<[1], [0], [0], [1], [0, 0, 1, 1], [], []>} : vector<8x128xbf16>, vector<128x128xbf16>, vector<8x128xf32> -> vector<8x128xf32>
    %c0_9 = arith.constant 0 : index
    %c0_10 = arith.constant 0 : index
    %12 = vector.load %arg5[%c0_9, %c0_10] : memref<1x128xf32, #tpu.memory_space<vmem>>, vector<1x128xf32>
    %13 = vector.broadcast %12 : vector<1x128xf32> to vector<8x128xf32>
    %14 = arith.addf %11, %13 : vector<8x128xf32>
    %c0_11 = arith.constant 0 : index
    %c0_12 = arith.constant 0 : index
    %15 = vector.load %arg6[%c0_11, %c0_12] : memref<8x128xf32, #tpu.memory_space<vmem>>, vector<8x128xf32>
    tpu.vector_store %arg6[%c0_11, %c0_12], %14 {strides = array<i32>} : memref<8x128xf32, #tpu.memory_space<vmem>>, vector<8x128xf32>,
    return
  }
  func.func @transform_0(%arg0: i32) -> (i32, i32) {
    %c0_i32 = arith.constant 0 : i32
    %c0_i32_0 = arith.constant 0 : i32
    return %arg0, %c0_i32 : i32, i32
  }
  func.func @transform_1(%arg0: i32) -> (i32, i32) {
    %c0_i32 = arith.constant 0 : i32
    %c0_i32_0 = arith.constant 0 : i32
    %c0_i32_1 = arith.constant 0 : i32
    return %c0_i32, %c0_i32_0 : i32, i32
  }
  func.func @transform_2(%arg0: i32) -> (i32, i32) {
    %c0_i32 = arith.constant 0 : i32
    %c0_i32_0 = arith.constant 0 : i32
    %c0_i32_1 = arith.constant 0 : i32
    return %c0_i32, %c0_i32_0 : i32, i32
  }
  func.func @transform_3(%arg0: i32) -> (i32, i32) {
    %c0_i32 = arith.constant 0 : i32
    %c0_i32_0 = arith.constant 0 : i32
    %c0_i32_1 = arith.constant 0 : i32
    return %c0_i32, %c0_i32_0 : i32, i32
  }
  func.func @transform_4(%arg0: i32) -> (i32, i32) {
    %c0_i32 = arith.constant 0 : i32
    %c0_i32_0 = arith.constant 0 : i32
    %c0_i32_1 = arith.constant 0 : i32
    return %c0_i32, %c0_i32_0 : i32, i32
  }
  func.func @transform_5(%arg0: i32) -> (i32, i32) {
    %c0_i32 = arith.constant 0 : i32
    %c0_i32_0 = arith.constant 0 : i32
    return %arg0, %c0_i32 : i32, i32
  }
}

</mosaic_0001>

<bundles_post_ra>
// kernel: convnet_forward.4
= control target key start
LH: loop header
LB: loop body
LE: loop exit
PB: predicated region body
PF: predicated region fallthrough
CT: control target
= control target key end

     0   :  { %8 = vsyncpa [#allocation3], 0  ;;  %s1042_s0 = inlined_call_operand.vmem [shape: f32[2,28,28,1], index: 0, kind: input, shape index: {}]   ;;  %s1043_s1 = inlined_call_operand.hbm [shape: f32[9,1,32], index: 1, kind: input, shape index: {}]   ;;  %s1044_s2 = inlined_call_operand.hbm [shape: f32[1,32], index: 2, kind: input, shape index: {}]   ;;  %s1045_s3 = inlined_call_operand.vmem [shape: f32[2,26,26,32], index: 3, kind: output, shape index: {}]  }
   0x1   :  { %9 = vsyncpa [#allocation5], 0  ;;  %s885_s12 = smov 0  }
   0x2 LB: > { %s891_s13 = sadd.s32 4294967295, %s854_s12   ;;  %p688_p0 = scmp.ge.s32.totalorder %s854_s12, 1  ;;  %s854_s12 = sphi %s885_s12, %s15_s12  }
   0x3   : > { %p114_p1 = scmp.lt.s32.totalorder %s854_s12, 3  ;;  %s860_s14 = smov [#allocation2]  }
   0x4   : > { %s126_s15 = sshll.u32 %s860_s14, 4  ;;  %p1046_p3 = scmp.eq.s32.totalorder %s891_s13, 0  ;;  %s127_s15 = int_to_ptr.vmem [resolvable:$true] %s126_s15 }
   0x5   : > { %p895_p2 = pnand %p688_p0, %p114_p1  ;;  %s861_s17 = smov [#allocation4]  }
   0x6   : > { %s140_s18 = sshll.u32 %s861_s17, 4  ;;  %s780_s22 = scalar_lea.hbm %s1043_s1, 144  ;;  %s908_s18 = int_to_ptr.vmem [resolvable:$true] %s140_s18 }
   0x7   : > { %s1048_s16 = scalar_select %p895_p2, 1, 0 }
   0x8   : > { %p746_p4 = pneg %p895_p2  ;;  %p781_p6 = scmp.ne.s32.totalorder %s1043_s1, %s780_s22 }
   0x9   : > { %p787_p10 = scmp.lt.u32.totalorder %s780_s22, %s1043_s1 }
   0xa   : > { %p904_p5 = pnand %p1046_p3, %p746_p4 }
   0xc   : > { %p782_p7 = pneg %p904_p5 }
   0xe   : > { %p783_p8 = pnand %p782_p7, %p781_p6 }
  0x10   : > { %p784_p9 = pneg %p783_p8 }
  0x12   : > { %p789_p11 = pnand %p787_p10, %p784_p9 }
  0x14   : > { %792 = shalt.err (!%p789_p11)
}
  0x15   : > { %s793_s27 = scalar_lea.vmem %s127_s15, 144  ;;  %s800_s28 = scalar_lea.vmem %s127_s15, 160 }
  0x16   : > { %p794_p12 = scmp.ne.s32.totalorder %s127_s15, %s793_s27  ;;  %p801_p1 = scmp.lt.s32.totalorder %s127_s15, %s127_s15 }
  0x17   : > { %p802_p4 = scmp.lt.s32.totalorder %s800_s28, %s793_s27 }
  0x18   : > { %p796_p13 = pnand %p794_p12, %p782_p7 }
  0x19   : > { %p803_p3 = por %p802_p4, %p801_p1 }
  0x1a   : > { %p797_p0 = pneg %p796_p13 }
  0x1c   : > { %p804_p2 = pnand %p803_p3, %p797_p0 }
  0x1e   : > { %807 = shalt.err (!%p804_p2)
}
  0x1f   : > { %s862_s29 = smov 16   ;;  %s863_s30 = smov 1  }
  0x20   : > { %749 = dma.hbm_to_vmem [thread:$0]  (!%p904_p5), %s1043_s1, 144, %s127_s15, [#allocation3], %s862_s29, %s862_s29, %s863_s30  }
  0x21   : > { %s808_s8 = scalar_lea.hbm %s1044_s2, 16 }
  0x22   : > { %p809_p6 = scmp.ne.s32.totalorder %s1044_s2, %s808_s8  ;;  %p815_p8 = scmp.lt.u32.totalorder %s808_s8, %s1044_s2 }
  0x24   : > { %p811_p2 = pnand %p809_p6, %p782_p7 }
  0x26   : > { %p812_p3 = pneg %p811_p2 }
  0x28   : > { %p817_p9 = pnand %p815_p8, %p812_p3 }
  0x2a   : > { %820 = shalt.err (!%p817_p9)
}
  0x2b   : > { %s821_s15 = scalar_lea.vmem %s908_s18, 16  ;;  %s828_s17 = scalar_lea.vmem %s908_s18, 32 }
  0x2c   : > { %p822_p10 = scmp.ne.s32.totalorder %s908_s18, %s821_s15  ;;  %p829_p13 = scmp.lt.s32.totalorder %s908_s18, %s908_s18 }
  0x2d   : > { %p830_p0 = scmp.lt.s32.totalorder %s828_s17, %s821_s15 }
  0x2e   : > { %p824_p11 = pnand %p822_p10, %p782_p7 }
  0x2f   : > { %p831_p1 = por %p830_p0, %p829_p13 }
  0x30   : > { %p825_p12 = pneg %p824_p11 }
  0x32   : > { %p832_p4 = pnand %p831_p1, %p825_p12 }
  0x34   : > { %835 = shalt.err (!%p832_p4)
}
  0x35   : > { %752 = dma.hbm_to_vmem [thread:$0]  (!%p904_p5), %s1044_s2, 16, %s908_s18, [#allocation5]  }
  0x36   : > { %p1050_p6 = scmp.ne.s32.totalorder %s1048_s16, 0 }
  0x37   : > { %p1051_p7 = scmp.eq.s32.totalorder (!%p1050_p6), %s891_s13, 0 }
  0x38   : > { %161 = sbr.rel (%p1050_p6) target bundleno = 284 (0x11c), region = 32 }
  0x3f   : > { %845 = dma.done.wait (%p1051_p7), [#allocation3], 144   ;;  %p1052_p2 = pmov %p1051_p7 }
  0x41   : > { %847 = vsyncadd (%p1052_p2), [#allocation3], 4294967152  ;;  %p1053_p3 = pmov %p1052_p2 }
  0x42   : > { %p1054_p8 = pmov %p1052_p2 }
  0x43   : > { %849 = dma.done.wait (%p1053_p3), [#allocation5], 16  }
  0x44   : > { %851 = vsyncadd (%p1054_p8), [#allocation5], 4294967280  ;;  %p189_p9 = scmp.lt.s32.totalorder %s891_s13, 1  ;;  %v975_v0 = vld [vmem:[#allocation4] ss:$0 sm:$0xff]  ;;  %s982_s27 = smov 0  }
  0x46   : > { %s1056_s13 = smov (!%p189_p9, %s891_s13), 1 }
  0x47   : > { %s736_s18 = smul.u32 896, %s1056_s13 }
  0x48   : > { %s737_s19 = smul.u32 832, %s1056_s13 }
  0x49   : > { %s973_s23 = scalar_lea.vmem %s1042_s0, %s736_s18 }
  0x4a   : > { %s980_s26 = scalar_lea.vmem %s1045_s3, %s737_s19 }
  0x4b LB: >> { %v864_v1 = vmov 0   ;;  %s697_s13 = sshll.u32 %s858_s27, 5  ;;  %v699_v62 = vld [vmem:[#allocation2 + $0x1] ss:$0 sm:$0xff]  ;;  %v698_v63 = vld [vmem:[#allocation2] ss:$0 sm:$0xff]  ;;  %s858_s27 = sphi %s982_s27, %s205_s27  }
  0x4c   : >> { %779 = vset.pattern.permute.xlu1 %v864_v1  ;;  %778 = vset.pattern.permute.xlu0 %v864_v1  ;;  %s991_s28 = scalar_lea.vmem %s973_s23, %s697_s13  ;;  %v700_v1 = vld [vmem:[#allocation2 + $0x2] ss:$0 sm:$0xff]  ;;  %s587_s29 = scalar_lea.vmem %s980_s26, %s697_s13  ;;  %vm588_vm0 = vcmask 261120   ;;  %vm592_vm1 = vcmask 254976  }
  0x4d   : >> { %v210_v2 = vld [vmem:[%s991_s28 + $0x10] sm:$0xff]  ;;  %v208_v3 = vld [vmem:[%s991_s28] sm:$0xff]  ;;  %v211_v4 = vld [vmem:[%s991_s28 + $0x18] sm:$0x3]  ;;  %s205_s27 = sadd.s32 1, %s858_s27  }
  0x4e   : >> { %225 = vperm.xlu1 %779, %v210_v2   ;;  %215 = vperm.xlu0 %778, %v208_v3   ;;  %v209_v5 = vld [vmem:[%s991_s28 + $0x8] sm:$0xff]  ;;  %v250_v8 = vld [vmem:[%s991_s28 + $0x19] sm:$0x3]  ;;  %v249_v9 = vld [vmem:[%s991_s28 + $0x11] sm:$0xff]  ;;  %p202_p5 = scmp.ge.s32.totalorder %s205_s27, 26  }
  0x4f   : >> { %v248_v6 = vld [vmem:[%s991_s28 + $0x9] sm:$0xff]  ;;  %v247_v7 = vld [vmem:[%s991_s28 + $0x1] sm:$0xff]  ;;  %v290_v12 = vld [vmem:[%s991_s28 + $0x1a] sm:$0x3] }
  0x50   : >> { %v288_v10 = vld [vmem:[%s991_s28 + $0xa] sm:$0xff]  ;;  %v287_v11 = vld [vmem:[%s991_s28 + $0x2] sm:$0xff]  ;;  %v289_v13 = vld [vmem:[%s991_s28 + $0x12] sm:$0xff] }
  0x51   : >> { %v703_v14 = vld [vmem:[%s991_s28 + $0x28] sm:$0xff]  ;;  %v702_v15 = vld [vmem:[%s991_s28 + $0x20] sm:$0xff]  ;;  %v705_v16 = vld [vmem:[%s991_s28 + $0x38] sm:$0x3] }
  0x52   : >> { %230 = vperm.xlu1 %779, %v211_v4   ;;  %220 = vperm.xlu0 %778, %v209_v5   ;;  %v704_v17 = vld [vmem:[%s991_s28 + $0x30] sm:$0xff]  ;;  %v707_v19 = vld [vmem:[%s991_s28 + $0x21] sm:$0xff]  ;;  %v710_v20 = vld [vmem:[%s991_s28 + $0x39] sm:$0x3] }
  0x53   : >> { %v708_v18 = vld [vmem:[%s991_s28 + $0x29] sm:$0xff]  ;;  %v709_v21 = vld [vmem:[%s991_s28 + $0x31] sm:$0xff]  ;;  %v715_v24 = vld [vmem:[%s991_s28 + $0x3a] sm:$0x3] }
  0x54   : >> { %v713_v22 = vld [vmem:[%s991_s28 + $0x2a] sm:$0xff]  ;;  %v712_v23 = vld [vmem:[%s991_s28 + $0x22] sm:$0xff]  ;;  %v714_v25 = vld [vmem:[%s991_s28 + $0x32] sm:$0xff] }
  0x55   : >> { %v719_v26 = vld [vmem:[%s991_s28 + $0x48] sm:$0xff]  ;;  %v718_v27 = vld [vmem:[%s991_s28 + $0x40] sm:$0xff]  ;;  %v721_v28 = vld [vmem:[%s991_s28 + $0x58] sm:$0x3] }
  0x56   : >> { %260 = vperm.xlu1 %779, %v248_v6   ;;  %255 = vperm.xlu0 %778, %v247_v7   ;;  %v720_v29 = vld [vmem:[%s991_s28 + $0x50] sm:$0xff]  ;;  %v723_v31 = vld [vmem:[%s991_s28 + $0x41] sm:$0xff]  ;;  %v726_v32 = vld [vmem:[%s991_s28 + $0x59] sm:$0x3] }
  0x57   : >> { %v724_v30 = vld [vmem:[%s991_s28 + $0x49] sm:$0xff]  ;;  %v725_v33 = vld [vmem:[%s991_s28 + $0x51] sm:$0xff]  ;;  %v731_v36 = vld [vmem:[%s991_s28 + $0x5a] sm:$0x3] }
  0x58   : >> { %v729_v34 = vld [vmem:[%s991_s28 + $0x4a] sm:$0xff]  ;;  %v728_v35 = vld [vmem:[%s991_s28 + $0x42] sm:$0xff]  ;;  %v730_v37 = vld [vmem:[%s991_s28 + $0x52] sm:$0xff] }
  0x59   : >> { %v706_v6 = vld [vmem:[#allocation2 + $0x3] ss:$0 sm:$0xff] }
  0x5a   : >> { %270 = vperm.xlu1 %779, %v250_v8   ;;  %265 = vperm.xlu0 %778, %v249_v9  }
  0x5e   : >> { %300 = vperm.xlu1 %779, %v288_v10   ;;  %295 = vperm.xlu0 %778, %v287_v11  }
  0x62   : >> { %310 = vperm.xlu1 %779, %v290_v12   ;;  %305 = vperm.xlu0 %778, %v289_v13   ;;  %v711_v13 = vld [vmem:[#allocation2 + $0x4] ss:$0 sm:$0xff] }
  0x66   : >> { %343 = vperm.xlu1 %779, %v703_v14   ;;  %338 = vperm.xlu0 %778, %v702_v15  }
  0x6a   : >> { %353 = vperm.xlu1 %779, %v705_v16   ;;  %348 = vperm.xlu0 %778, %v704_v17  }
  0x6e   : >> { %383 = vperm.xlu1 %779, %v708_v18   ;;  %378 = vperm.xlu0 %778, %v707_v19  }
  0x72   : >> { %393 = vperm.xlu1 %779, %v710_v20   ;;  %388 = vperm.xlu0 %778, %v709_v21  }
  0x76   : >> { %423 = vperm.xlu1 %779, %v713_v22   ;;  %418 = vperm.xlu0 %778, %v712_v23  }
  0x7a   : >> { %433 = vperm.xlu1 %779, %v715_v24   ;;  %428 = vperm.xlu0 %778, %v714_v25   ;;  %v716_v24 = vld [vmem:[#allocation2 + $0x5] ss:$0 sm:$0xff] }
  0x7e   : >> { %466 = vperm.xlu1 %779, %v719_v26   ;;  %461 = vperm.xlu0 %778, %v718_v27  }
  0x82   : >> { %476 = vperm.xlu1 %779, %v721_v28   ;;  %471 = vperm.xlu0 %778, %v720_v29  }
  0x86   : >> { %506 = vperm.xlu1 %779, %v724_v30   ;;  %501 = vperm.xlu0 %778, %v723_v31  }
  0x8a   : >> { %516 = vperm.xlu1 %779, %v726_v32   ;;  %511 = vperm.xlu0 %778, %v725_v33   ;;  %v722_v33 = vld [vmem:[#allocation2 + $0x6] ss:$0 sm:$0xff] }
  0x8e   : >> { %546 = vperm.xlu1 %779, %v729_v34   ;;  %541 = vperm.xlu0 %778, %v728_v35  }
  0x92   : >> { %556 = vperm.xlu1 %779, %v731_v36   ;;  %551 = vperm.xlu0 %778, %v730_v37  }
  0xcd   : >> { %v226_v38 = vpop.permute.xlu1 %225  ;;  %v216_v39 = vpop.permute.xlu0 %215 }
  0xce   : >> { %v239_v7 = vmul.f32 %v698_v63, %v216_v39  ;;  %v241_v20 = vmul.f32 %v698_v63, %v226_v38 }
  0xd1   : >> { %v231_v40 = vpop.permute.xlu1 %230  ;;  %v221_v41 = vpop.permute.xlu0 %220 }
  0xd2   : >> { %v240_v8 = vmul.f32 %v698_v63, %v221_v41  ;;  %v242_v21 = vmul.f32 %v698_v63, %v231_v40 }
  0xd5   : >> { %v261_v42 = vpop.permute.xlu1 %260  ;;  %v256_v43 = vpop.permute.xlu0 %255 }
  0xd6   : >> { %v280_v4 = vmul.f32 %v699_v62, %v261_v42  ;;  %v279_v5 = vmul.f32 %v699_v62, %v256_v43 }
  0xd8   : >> { %v284_v16 = vadd.f32 %v280_v4, %v240_v8  ;;  %v283_v17 = vadd.f32 %v279_v5, %v239_v7 }
  0xd9   : >> { %v271_v44 = vpop.permute.xlu1 %270  ;;  %v266_v45 = vpop.permute.xlu0 %265 }
  0xda   : >> { %v282_v11 = vmul.f32 %v699_v62, %v271_v44  ;;  %v281_v12 = vmul.f32 %v699_v62, %v266_v45  ;;  %v727_v44 = vld [vmem:[#allocation2 + $0x7] ss:$0 sm:$0xff] }
  0xdc   : >> { %v286_v29 = vadd.f32 %v282_v11, %v242_v21  ;;  %v285_v30 = vadd.f32 %v281_v12, %v241_v20 }
  0xdd   : >> { %v301_v46 = vpop.permute.xlu1 %300  ;;  %v296_v47 = vpop.permute.xlu0 %295 }
  0xde   : >> { %v320_v9 = vmul.f32 %v700_v1, %v301_v46  ;;  %v319_v10 = vmul.f32 %v700_v1, %v296_v47 }
  0xe0   : >> { %v324_v25 = vadd.f32 %v320_v9, %v284_v16  ;;  %v323_v26 = vadd.f32 %v319_v10, %v283_v17 }
  0xe1   : >> { %v311_v48 = vpop.permute.xlu1 %310  ;;  %v306_v49 = vpop.permute.xlu0 %305 }
  0xe2   : >> { %v322_v22 = vmul.f32 %v700_v1, %v311_v48  ;;  %v321_v23 = vmul.f32 %v700_v1, %v306_v49 }
  0xe4   : >> { %v326_v38 = vadd.f32 %v322_v22, %v286_v29  ;;  %v325_v40 = vadd.f32 %v321_v23, %v285_v30 }
  0xe5   : >> { %v344_v50 = vpop.permute.xlu1 %343  ;;  %v339_v51 = vpop.permute.xlu0 %338 }
  0xe6   : >> { %v363_v18 = vmul.f32 %v706_v6, %v344_v50  ;;  %v362_v19 = vmul.f32 %v706_v6, %v339_v51 }
  0xe8   : >> { %v367_v36 = vadd.f32 %v363_v18, %v324_v25  ;;  %v366_v37 = vadd.f32 %v362_v19, %v323_v26 }
  0xe9   : >> { %v354_v52 = vpop.permute.xlu1 %353  ;;  %v349_v53 = vpop.permute.xlu0 %348 }
  0xea   : >> { %v365_v31 = vmul.f32 %v706_v6, %v354_v52  ;;  %v364_v32 = vmul.f32 %v706_v6, %v349_v53 }
  0xec   : >> { %v369_v49 = vadd.f32 %v365_v31, %v326_v38  ;;  %v368_v50 = vadd.f32 %v364_v32, %v325_v40 }
  0xed   : >> { %v384_v54 = vpop.permute.xlu1 %383  ;;  %v379_v55 = vpop.permute.xlu0 %378 }
  0xee   : >> { %v403_v27 = vmul.f32 %v711_v13, %v384_v54  ;;  %v402_v28 = vmul.f32 %v711_v13, %v379_v55 }
  0xf0   : >> { %v407_v45 = vadd.f32 %v403_v27, %v367_v36  ;;  %v406_v46 = vadd.f32 %v402_v28, %v366_v37 }
  0xf1   : >> { %v394_v56 = vpop.permute.xlu1 %393  ;;  %v389_v57 = vpop.permute.xlu0 %388 }
  0xf2   : >> { %v405_v42 = vmul.f32 %v711_v13, %v394_v56  ;;  %v404_v43 = vmul.f32 %v711_v13, %v389_v57  ;;  %v732_v57 = vld [vmem:[#allocation2 + $0x8] ss:$0 sm:$0xff] }
  0xf4   : >> { %v408_v1 = vadd.f32 %v404_v43, %v368_v50 }
  0xf5   : >> { %v424_v58 = vpop.permute.xlu1 %423  ;;  %v419_v59 = vpop.permute.xlu0 %418 }
  0xf6   : >> { %v443_v39 = vmul.f32 %v716_v24, %v424_v58  ;;  %v442_v41 = vmul.f32 %v716_v24, %v419_v59  ;;  %v409_v59 = vadd.f32 %v405_v42, %v369_v49 }
  0xf8   : >> { %v447_v55 = vadd.f32 %v443_v39, %v407_v45  ;;  %v446_v62 = vadd.f32 %v442_v41, %v406_v46 }
  0xf9   : >> { %v434_v60 = vpop.permute.xlu1 %433  ;;  %v429_v61 = vpop.permute.xlu0 %428 }
  0xfa   : >> { %v445_v51 = vmul.f32 %v716_v24, %v434_v60  ;;  %v444_v52 = vmul.f32 %v716_v24, %v429_v61 }
  0xfc   : >> { %v449_v7 = vadd.f32 %v445_v51, %v409_v59 }
  0xfd   : >> { %v467_v2 = vpop.permute.xlu1 %466  ;;  %v462_v3 = vpop.permute.xlu0 %461 }
  0xfe   : >> { %v486_v47 = vmul.f32 %v722_v33, %v467_v2  ;;  %v485_v48 = vmul.f32 %v722_v33, %v462_v3  ;;  %v448_v2 = vadd.f32 %v444_v52, %v408_v1 }
 0x100   : >> { %v490_v5 = vadd.f32 %v486_v47, %v447_v55  ;;  %v489_v6 = vadd.f32 %v485_v48, %v446_v62 }
 0x101   : >> { %v477_v14 = vpop.permute.xlu1 %476  ;;  %v472_v15 = vpop.permute.xlu0 %471 }
 0x102   : >> { %v488_v4 = vmul.f32 %v722_v33, %v477_v14  ;;  %v487_v56 = vmul.f32 %v722_v33, %v472_v15 }
 0x104   : >> { %v492_v13 = vadd.f32 %v488_v4, %v449_v7  ;;  %v491_v16 = vadd.f32 %v487_v56, %v448_v2 }
 0x105   : >> { %v507_v34 = vpop.permute.xlu1 %506  ;;  %v502_v35 = vpop.permute.xlu0 %501 }
 0x106   : >> { %v526_v63 = vmul.f32 %v727_v44, %v507_v34  ;;  %v525_v58 = vmul.f32 %v727_v44, %v502_v35 }
 0x108   : >> { %v530_v61 = vadd.f32 %v526_v63, %v490_v5  ;;  %v529_v10 = vadd.f32 %v525_v58, %v489_v6 }
 0x109   : >> { %v517_v53 = vpop.permute.xlu1 %516  ;;  %v512_v54 = vpop.permute.xlu0 %511 }
 0x10a   : >> { %v528_v3 = vmul.f32 %v727_v44, %v517_v53  ;;  %v527_v8 = vmul.f32 %v727_v44, %v512_v54 }
 0x10c   : >> { %v532_v15 = vadd.f32 %v528_v3, %v492_v13  ;;  %v531_v18 = vadd.f32 %v527_v8, %v491_v16 }
 0x10d   : >> { %v547_v9 = vpop.permute.xlu1 %546  ;;  %v542_v60 = vpop.permute.xlu0 %541 }
 0x10e   : >> { %v566_v11 = vmul.f32 %v732_v57, %v547_v9  ;;  %v565_v12 = vmul.f32 %v732_v57, %v542_v60 }
 0x110   : >> { %v570_v17 = vadd.f32 %v566_v11, %v530_v61  ;;  %v569_v14 = vadd.f32 %v565_v12, %v529_v10 }
 0x111   : >> { %v557_v19 = vpop.permute.xlu1 %556  ;;  %v552_v20 = vpop.permute.xlu0 %551 }
 0x112   : >> { %v580_v21 = vadd.f32 %v975_v0, %v570_v17  ;;  %v579_v22 = vadd.f32 %v975_v0, %v569_v14  ;;  %v568_v23 = vmul.f32 %v732_v57, %v557_v19  ;;  %v567_v24 = vmul.f32 %v732_v57, %v552_v20 }
 0x114   : >> { %v584_v25 = vmax.f32 %v580_v21, 0.0  ;;  %v583_v26 = vmax.f32 %v579_v22, 0.0  ;;  %v572_v27 = vadd.f32 %v568_v23, %v532_v15  ;;  %v571_v28 = vadd.f32 %v567_v24, %v531_v18 }
 0x115   : > { %204 = sbr.rel (!%p202_p5) target bundleno = 75 (0x4b), region = 90 }
 0x116   : >> { %590 = vst.msk [vmem:[%s587_s29 + $0x8] sm:$0xff] %vm588_vm0, %v584_v25  ;;  %589 = vst.msk [vmem:[%s587_s29] sm:$0xff] %vm588_vm0, %v583_v26  ;;  %v582_v29 = vadd.f32 %v975_v0, %v572_v27  ;;  %v581_v30 = vadd.f32 %v975_v0, %v571_v28 }
 0x118   : >> { %v586_v31 = vmax.f32 %v582_v29, 0.0  ;;  %v585_v32 = vmax.f32 %v581_v30, 0.0 }
 0x11a   : >> { %593 = vst.msk [vmem:[%s587_s29 + $0x18] sm:$0x3] %vm592_vm1, %v586_v31 }
 0x11b   : >> { %591 = vst.msk [vmem:[%s587_s29 + $0x10] sm:$0xff] %vm588_vm0, %v585_v32 }
 0x11c PF: > { %s15_s12 = sadd.s32 1, %s854_s12  }
 0x11d   : > { %p12_p10 = scmp.ge.s32.totalorder %s15_s12, 4  }
 0x11f   :  { %14 = sbr.rel (!%p12_p10) target bundleno = 2 (0x2), region = 101 }
 0x126   :  { %615 = vsyncpa [#allocation3], 1 }
 0x127   :  { %617 = vsyncpa [#allocation3 + $0x1], 1 }
 0x128   :  { %618 = vsyncpa [#allocation5], 1 }

// kernel: convnet_forward.5
= control target key start
LH: loop header
LB: loop body
LE: loop exit
PB: predicated region body
PF: predicated region fallthrough
CT: control target
= control target key end

     0   :  { %s1259_s12 = smov 0   ;;  %s1401_s0 = inlined_call_operand.vmem [shape: f32[2,26,26,32], index: 0, kind: input, shape index: {}]   ;;  %s1402_s1 = inlined_call_operand.vmem [shape: bf16[9,32,64], index: 1, kind: input, shape index: {}]   ;;  %s1403_s2 = inlined_call_operand.vmem [shape: f32[1,64], index: 2, kind: input, shape index: {}]   ;;  %s1404_s3 = inlined_call_operand.vmem [shape: f32[2,24,24,64], index: 3, kind: output, shape index: {}]  }
   0x1 LB: > { %s980_s13 = sadd.s32 4294967295, %s1233_s12   ;;  %p984_p0 = scmp.ge.s32.totalorder %s1233_s12, 1  ;;  %s1233_s12 = sphi %s1259_s12, %s13_s12  }
   0x2   : > { %p137_p1 = scmp.lt.s32.totalorder %s1233_s12, 3 }
   0x4   : > { %p138_p2 = pnand %p984_p0, %p137_p1 }
   0x5   : > { %p161_p3 = scmp.lt.s32.totalorder (!%p138_p2), %s980_s13, 1  ;;  %v1270_v0 = vld [vmem:[%s1403_s2] ss:$0 sm:$0xff] (!%p138_p2)  ;;  %s1282_s24 = smov (!%p138_p2), 0  }
   0x6   : > { %141 = sbr.rel (%p138_p2) target bundleno = 281 (0x119), region = 32 }
   0xd   : > { %s1406_s13 = smov (!%p161_p3, %s980_s13), 1 }
   0xe   : > { %s1187_s16 = smul.u32 832, %s1406_s13 }
   0xf   : > { %s1188_s17 = smul.u32 576, %s1406_s13 }
  0x10   : > { %s1275_s20 = scalar_lea.vmem %s1401_s0, %s1187_s16 }
  0x11   : > { %s1280_s23 = scalar_lea.vmem %s1404_s3, %s1188_s17 }
  0x12 LB: >> { %v1205_v1 = vld [vmem:[%s1402_s1 + $0x10] sm:$0xff]   ;;  %v1206_v2 = vld [vmem:[%s1402_s1] sm:$0xff]   ;;  %v1207_v3 = vld [vmem:[%s1402_s1 + $0x18] sm:$0xff]   ;;  %s987_s4 = sshll.u32 %s1237_s24, 5  ;;  %vm212_vm0 = vcmask 261120   ;;  %vm906_vm1 = vcmask 523264   ;;  %s1237_s24 = sphi %s1282_s24, %s178_s24  }
  0x13   : >> { %1115 = vmatprep.subr.bf16.mxu0 %v1205_v1  ;;  %1123 = vmatprep.subr.bf16.mxu1 %v1206_v2  ;;  %v1208_v4 = vld [vmem:[%s1402_s1 + $0x8] sm:$0xff]   ;;  %s1301_s7 = scalar_lea.vmem %s1275_s20, %s987_s4  ;;  %v1209_v14 = vld [vmem:[%s1402_s1 + $0x20] sm:$0xff]   ;;  %v1210_v16 = vld [vmem:[%s1402_s1 + $0x30] sm:$0xff]  }
  0x14   : >> { %1116 = vmatpush3.bf16.msra.mxu0 %v1205_v1  ;;  %1124 = vmatpush3.bf16.msra.mxu1 %v1206_v2  ;;  %v190_v5 = vld [vmem:[%s1301_s7 + $0x1] sm:$0xff]  ;;  %v191_v6 = vld [vmem:[%s1301_s7 + $0x9] sm:$0xff]  ;;  %v192_v10 = vld [vmem:[%s1301_s7 + $0x11] sm:$0xff] }
  0x15   : >> { %1117 = vmatprep.subr.bf16.mxu0 %v1207_v3  ;;  %v181_v7 = vld [vmem:[%s1301_s7] sm:$0xff]  ;;  %1125 = vmatprep.subr.bf16.mxu1 %v1208_v4  ;;  %v198_v8 = vpack.c.bf16 %v191_v6, %v190_v5  ;;  %v182_v9 = vld [vmem:[%s1301_s7 + $0x8] sm:$0xff]  ;;  %v183_v11 = vld [vmem:[%s1301_s7 + $0x10] sm:$0xff]  ;;  %v199_v13 = vpack.c.bf16 %v192_v10, %v192_v10 }
  0x16   : >> { %v188_v12 = vpack.c.bf16 %v182_v9, %v181_v7  ;;  %v189_v15 = vpack.c.bf16 %v183_v11, %v183_v11  ;;  %v1211_v17 = vld [vmem:[%s1402_s1 + $0x28] sm:$0xff]   ;;  %v1212_v18 = vld [vmem:[%s1402_s1 + $0x38] sm:$0xff]   ;;  %v1213_v23 = vld [vmem:[%s1402_s1 + $0x40] sm:$0xff]  }
  0x17   : >> { %1119 = vmatprep.mubr.msk.bf16.mxu0 %vm212_vm0, %v198_v8  ;;  %v333_v19 = vld [vmem:[%s1301_s7 + $0x2] sm:$0xff]  ;;  %v334_v20 = vld [vmem:[%s1301_s7 + $0xa] sm:$0xff]  ;;  %v335_v21 = vld [vmem:[%s1301_s7 + $0x12] sm:$0xff] }
  0x18   : >> { %1118 = vmatpush3.bf16.msra.mxu0 %v1207_v3  ;;  %1126 = vmatpush3.bf16.msra.mxu1 %v1208_v4  ;;  %v341_v22 = vpack.c.bf16 %v334_v20, %v333_v19  ;;  %v1009_v24 = vld [vmem:[%s1301_s7 + $0x20] sm:$0xff]  ;;  %v1010_v25 = vld [vmem:[%s1301_s7 + $0x28] sm:$0xff]  ;;  %v1011_v26 = vld [vmem:[%s1301_s7 + $0x30] sm:$0xff]  ;;  %v342_v29 = vpack.c.bf16 %v335_v21, %v335_v21 }
  0x19   : >> { %1127 = vmatprep.mubr.msk.bf16.mxu1 %vm212_vm0, %v188_v12  ;;  %1131 = vmatprep.subr.bf16.mxu0 %v1209_v14  ;;  %v423_v27 = vpack.c.bf16 %v1010_v25, %v1009_v24  ;;  %v1214_v28 = vld [vmem:[%s1402_s1 + $0x50] sm:$0xff]   ;;  %v424_v30 = vpack.c.bf16 %v1011_v26, %v1011_v26  ;;  %v1215_v31 = vld [vmem:[%s1402_s1 + $0x48] sm:$0xff]   ;;  %v1216_v34 = vld [vmem:[%s1402_s1 + $0x58] sm:$0xff]  }
  0x1a   : >> { %1139 = vmatprep.subr.bf16.mxu1 %v1210_v16  ;;  %v1020_v32 = vld [vmem:[%s1301_s7 + $0x21] sm:$0xff]  ;;  %v1021_v33 = vld [vmem:[%s1301_s7 + $0x29] sm:$0xff]  ;;  %v1022_v36 = vld [vmem:[%s1301_s7 + $0x31] sm:$0xff] }
  0x1b   : >> { %1120 = vmatmul.mubr.msk.bf16.vlgmr.msra.gmra.mrb[0].mxu0 %vm212_vm0, %v199_v13  ;;  %1128 = vmatmul.mubr.msk.bf16.vlgmr.msra.gmra.mrb[0].mxu1 %vm212_vm0, %v189_v15  ;;  %v502_v35 = vpack.c.bf16 %v1021_v33, %v1020_v32  ;;  %v1031_v37 = vld [vmem:[%s1301_s7 + $0x22] sm:$0xff]  ;;  %v1032_v38 = vld [vmem:[%s1301_s7 + $0x2a] sm:$0xff]  ;;  %v1033_v41 = vld [vmem:[%s1301_s7 + $0x32] sm:$0xff]  ;;  %v503_v43 = vpack.c.bf16 %v1022_v36, %v1022_v36 }
  0x1c   : >> { %1132 = vmatpush3.bf16.msra.mxu0 %v1209_v14  ;;  %1140 = vmatpush3.bf16.msra.mxu1 %v1210_v16  ;;  %v1217_v39 = vld [vmem:[%s1402_s1 + $0x60] sm:$0xff]   ;;  %v581_v40 = vpack.c.bf16 %v1032_v38, %v1031_v37  ;;  %v1218_v42 = vld [vmem:[%s1402_s1 + $0x70] sm:$0xff]   ;;  %v1044_v45 = vld [vmem:[%s1301_s7 + $0x48] sm:$0xff]  ;;  %v582_v46 = vpack.c.bf16 %v1033_v41, %v1033_v41 }
  0x1d   : >> { %1133 = vmatprep.subr.bf16.mxu0 %v1211_v17  ;;  %1141 = vmatprep.subr.bf16.mxu1 %v1212_v18  ;;  %v1043_v44 = vld [vmem:[%s1301_s7 + $0x40] sm:$0xff]  ;;  %v1219_v47 = vld [vmem:[%s1402_s1 + $0x68] sm:$0xff]   ;;  %v1220_v50 = vld [vmem:[%s1402_s1 + $0x78] sm:$0xff]  }
  0x1e   : >> { %1135 = vmatprep.mubr.msk.bf16.mxu0 %vm212_vm0, %v341_v22  ;;  %1143 = vmatprep.mubr.msk.bf16.mxu1 %vm212_vm0, %v423_v27  ;;  %v1054_v48 = vld [vmem:[%s1301_s7 + $0x41] sm:$0xff]  ;;  %v1055_v49 = vld [vmem:[%s1301_s7 + $0x49] sm:$0xff]  ;;  %v663_v51 = vpack.c.bf16 %v1044_v45, %v1043_v44  ;;  %v1056_v55 = vld [vmem:[%s1301_s7 + $0x51] sm:$0xff] }
  0x1f   : >> { %v742_v52 = vpack.c.bf16 %v1055_v49, %v1054_v48  ;;  %v1045_v53 = vld [vmem:[%s1301_s7 + $0x50] sm:$0xff]  ;;  %v1221_v54 = vld [vmem:[%s1402_s1 + $0x80] sm:$0xff]   ;;  %v743_v59 = vpack.c.bf16 %v1056_v55, %v1056_v55  ;;  %v1222_v60 = vld [vmem:[%s1402_s1 + $0x88] sm:$0xff]  }
  0x20   : >> { %1134 = vmatpush3.bf16.msra.mxu0 %v1211_v17  ;;  %1142 = vmatpush3.bf16.msra.mxu1 %v1212_v18  ;;  %v1065_v56 = vld [vmem:[%s1301_s7 + $0x42] sm:$0xff]  ;;  %v1066_v57 = vld [vmem:[%s1301_s7 + $0x4a] sm:$0xff]  ;;  %v664_v58 = vpack.c.bf16 %v1045_v53, %v1045_v53  ;;  %v1067_v62 = vld [vmem:[%s1301_s7 + $0x52] sm:$0xff]  ;;  %s904_s7 = smul.u32 24, %s1237_s24  ;;  %s178_s24 = sadd.s32 1, %s1237_s24  }
  0x21   : >> { %1147 = vmatprep.subr.bf16.mxu0 %v1213_v23  ;;  %1155 = vmatprep.subr.bf16.mxu1 %v1214_v28  ;;  %v821_v61 = vpack.c.bf16 %v1066_v57, %v1065_v56  ;;  %v822_v63 = vpack.c.bf16 %v1067_v62, %v1067_v62  ;;  %p175_p4 = scmp.ge.s32.totalorder %s178_s24, 24  }
  0x22   : >> { %s905_s15 = scalar_lea.vmem %s1280_s23, %s904_s7 }
  0x23   : >> { %1136 = vmatmul.mubr.msk.bf16.vlgmr.msra.gmra.mrb[4].mxu0 %vm212_vm0, %v342_v29  ;;  %1144 = vmatmul.mubr.msk.bf16.vlgmr.msra.gmra.mrb[4].mxu1 %vm212_vm0, %v424_v30 }
  0x24   : >> { %1148 = vmatpush3.bf16.msra.mxu0 %v1213_v23  ;;  %1156 = vmatpush3.bf16.msra.mxu1 %v1214_v28 }
  0x25   : >> { %1149 = vmatprep.subr.bf16.mxu0 %v1215_v31  ;;  %1157 = vmatprep.subr.bf16.mxu1 %v1216_v34 }
  0x26   : >> { %1151 = vmatprep.mubr.msk.bf16.mxu0 %vm212_vm0, %v502_v35  ;;  %1159 = vmatprep.mubr.msk.bf16.mxu1 %vm212_vm0, %v581_v40 }
  0x28   : >> { %1150 = vmatpush3.bf16.msra.mxu0 %v1215_v31  ;;  %1158 = vmatpush3.bf16.msra.mxu1 %v1216_v34 }
  0x29   : >> { %1163 = vmatprep.subr.bf16.mxu0 %v1217_v39  ;;  %1171 = vmatprep.subr.bf16.mxu1 %v1218_v42 }
  0x2b   : >> { %1152 = vmatmul.mubr.msk.bf16.vlgmr.msra.gmra.mrb[8].mxu0 %vm212_vm0, %v503_v43  ;;  %1160 = vmatmul.mubr.msk.bf16.vlgmr.msra.gmra.mrb[8].mxu1 %vm212_vm0, %v582_v46 }
  0x2c   : >> { %1164 = vmatpush3.bf16.msra.mxu0 %v1217_v39  ;;  %1172 = vmatpush3.bf16.msra.mxu1 %v1218_v42 }
  0x2d   : >> { %1165 = vmatprep.subr.bf16.mxu0 %v1219_v47  ;;  %1173 = vmatprep.subr.bf16.mxu1 %v1220_v50 }
  0x2e   : >> { %1167 = vmatprep.mubr.msk.bf16.mxu0 %vm212_vm0, %v663_v51  ;;  %1175 = vmatprep.mubr.msk.bf16.mxu1 %vm212_vm0, %v742_v52 }
  0x30   : >> { %1166 = vmatpush3.bf16.msra.mxu0 %v1219_v47  ;;  %1174 = vmatpush3.bf16.msra.mxu1 %v1220_v50 }
  0x31   : >> { %1179 = vmatprep.subr.bf16.mxu0 %v1221_v54 }
  0x33   : >> { %1168 = vmatmul.mubr.msk.bf16.vlgmr.msra.gmra.mrb[12].mxu0 %vm212_vm0, %v664_v58  ;;  %1176 = vmatmul.mubr.msk.bf16.vlgmr.msra.gmra.mrb[12].mxu1 %vm212_vm0, %v743_v59 }
  0x34   : >> { %1180 = vmatpush3.bf16.msra.mxu0 %v1221_v54  ;;  %1183 = vmatprep.mubr.msk.bf16.mxu0 %vm212_vm0, %v821_v61 }
  0x35   : >> { %1181 = vmatprep.subr.bf16.mxu0 %v1222_v60 }
  0x38   : >> { %1182 = vmatpush3.bf16.msra.mxu0 %v1222_v60 }
  0x3b   : >> { %1184 = vmatmul.mubr.msk.bf16.vlgmr.msra.gmra.mrb[16].mxu0 %vm212_vm0, %v822_v63 }
  0xee   : >> { %v1121_v1 = vpop.f32.mrb[0].mxu0  ;;  %v1129_v2 = vpop.f32.mrb[0].mxu1 }
  0xef   : >> { %v253_v3 = vpop.f32.mrb[1].mxu0  ;;  %v328_v4 = vadd.f32 %v1129_v2, %v1121_v1  ;;  %v319_v5 = vpop.f32.mrb[1].mxu1 }
  0xf0   : >> { %v1122_v6 = vpop.f32.mrb[2].mxu0  ;;  %v320_v7 = vadd.f32 %v319_v5, %v253_v3  ;;  %v1130_v8 = vpop.f32.mrb[2].mxu1 }
  0xf1   : >> { %v256_v9 = vpop.f32.mrb[3].mxu0  ;;  %v322_v10 = vpop.f32.mrb[3].mxu1 }
  0xf2   : >> { %v323_v11 = vadd.f32 %v322_v10, %v256_v9 }
  0xf6   : >> { %v1137_v12 = vpop.f32.mrb[4].mxu0  ;;  %v1145_v15 = vpop.f32.mrb[4].mxu1 }
  0xf7   : >> { %v411_v13 = vadd.f32 %v1137_v12, %v328_v4  ;;  %v395_v14 = vpop.f32.mrb[5].mxu0  ;;  %v477_v18 = vpop.f32.mrb[5].mxu1 }
  0xf8   : >> { %v409_v16 = vadd.f32 %v395_v14, %v320_v7  ;;  %v1138_v17 = vpop.f32.mrb[6].mxu0  ;;  %v1146_v21 = vpop.f32.mrb[6].mxu1 }
  0xf9   : >> { %v493_v19 = vadd.f32 %v1145_v15, %v411_v13  ;;  %v398_v20 = vpop.f32.mrb[7].mxu0  ;;  %v480_v24 = vpop.f32.mrb[7].mxu1 }
  0xfa   : >> { %v410_v22 = vadd.f32 %v398_v20, %v323_v11  ;;  %v491_v23 = vadd.f32 %v477_v18, %v409_v16 }
  0xfc   : >> { %v492_v25 = vadd.f32 %v480_v24, %v410_v22 }
  0xfe   : >> { %v1153_v26 = vpop.f32.mrb[8].mxu0  ;;  %v1161_v29 = vpop.f32.mrb[8].mxu1 }
  0xff   : >> { %v572_v27 = vadd.f32 %v1153_v26, %v493_v19  ;;  %v556_v28 = vpop.f32.mrb[9].mxu0  ;;  %v635_v32 = vpop.f32.mrb[9].mxu1 }
 0x100   : >> { %v570_v30 = vadd.f32 %v556_v28, %v491_v23  ;;  %v1154_v31 = vpop.f32.mrb[10].mxu0  ;;  %v1162_v35 = vpop.f32.mrb[10].mxu1 }
 0x101   : >> { %v651_v33 = vadd.f32 %v1161_v29, %v572_v27  ;;  %v559_v34 = vpop.f32.mrb[11].mxu0  ;;  %v638_v38 = vpop.f32.mrb[11].mxu1 }
 0x102   : >> { %v571_v36 = vadd.f32 %v559_v34, %v492_v25  ;;  %v649_v37 = vadd.f32 %v635_v32, %v570_v30 }
 0x104   : >> { %v650_v39 = vadd.f32 %v638_v38, %v571_v36 }
 0x106   : >> { %v1169_v40 = vpop.f32.mrb[12].mxu0  ;;  %v1177_v43 = vpop.f32.mrb[12].mxu1 }
 0x107   : >> { %v733_v41 = vadd.f32 %v1169_v40, %v651_v33  ;;  %v717_v42 = vpop.f32.mrb[13].mxu0  ;;  %v796_v46 = vpop.f32.mrb[13].mxu1 }
 0x108   : >> { %v731_v44 = vadd.f32 %v717_v42, %v649_v37  ;;  %v1170_v45 = vpop.f32.mrb[14].mxu0  ;;  %v1178_v49 = vpop.f32.mrb[14].mxu1 }
 0x109   : >> { %v812_v47 = vadd.f32 %v1177_v43, %v733_v41  ;;  %v720_v48 = vpop.f32.mrb[15].mxu0  ;;  %v799_v52 = vpop.f32.mrb[15].mxu1 }
 0x10a   : >> { %v732_v50 = vadd.f32 %v720_v48, %v650_v39  ;;  %v810_v51 = vadd.f32 %v796_v46, %v731_v44 }
 0x10c   : >> { %v811_v53 = vadd.f32 %v799_v52, %v732_v50 }
 0x10e   : >> { %v1185_v54 = vpop.f32.mrb[16].mxu0 }
 0x10f   : >> { %v891_v55 = vadd.f32 %v1185_v54, %v812_v47  ;;  %v875_v56 = vpop.f32.mrb[17].mxu0 }
 0x110   : >> { %v889_v57 = vadd.f32 %v875_v56, %v810_v51  ;;  %v1186_v58 = vpop.f32.mrb[18].mxu0 }
 0x111   : >> { %v900_v59 = vadd.f32 %v1270_v0, %v891_v55  ;;  %v878_v60 = vpop.f32.mrb[19].mxu0 }
 0x112   : >> { %v898_v61 = vadd.f32 %v1270_v0, %v889_v57  ;;  %v890_v62 = vadd.f32 %v878_v60, %v811_v53  ;;  %177 = sbr.rel (!%p175_p4) target bundleno = 18 (0x12), region = 81 }
 0x113   : >> { %v903_v63 = vmax.f32 %v900_v59, 0.0 }
 0x114   : >> { %v901_v1 = vmax.f32 %v898_v61, 0.0  ;;  %v899_v2 = vadd.f32 %v1270_v0, %v890_v62 }
 0x115   : >> { %909 = vst.msk [vmem:[%s905_s15 + $0x10] sm:$0xff] %vm906_vm1, %v903_v63 }
 0x116   : >> { %907 = vst.msk [vmem:[%s905_s15] sm:$0xff] %vm906_vm1, %v901_v1  ;;  %v902_v3 = vmax.f32 %v899_v2, 0.0 }
 0x118   : >> { %908 = vst.msk [vmem:[%s905_s15 + $0x8] sm:$0xff] %vm906_vm1, %v902_v3 }
 0x119 PF: > { %s13_s12 = sadd.s32 1, %s1233_s12  }
 0x11a   : > { %p10_p5 = scmp.ge.s32.totalorder %s13_s12, 4  }
 0x11c   :  { %12 = sbr.rel (!%p10_p5) target bundleno = 1 (0x1), region = 92 }

// kernel: convnet_forward.6
= control target key start
LH: loop header
LB: loop body
LE: loop exit
PB: predicated region body
PF: predicated region fallthrough
CT: control target
= control target key end

     0   :  { %s434_s6 = smov 0   ;;  %s436_s7 = smov 0   ;;  %s502_s0 = inlined_call_operand.vmem [shape: f32[2,24,24,64], index: 0, kind: input, shape index: {}]   ;;  %s503_s1 = inlined_call_operand.vmem [shape: f32[2,12,12,64], index: 1, kind: output, shape index: {}]  }
   0x1   :  { %s438_s8 = smov 0  }
   0x2 LB: > { %s352_s9 = sadd.s32 4294967295, %s422_s8   ;;  %s451_s10 = sadd.s32 1, %s422_s8   ;;  %s422_s8 = sphi %s438_s8, %s507_s8   ;;  %s418_s7 = sphi %s436_s7, %s506_s7   ;;  %s414_s6 = sphi %s434_s6, %s505_s6  }
   0x3   : > { %s15_s11 = ssub.s32 %s422_s8, %s451_s10  ;;  %s18_s12 = sadd.s32 1, %s418_s7 }
   0x4   : > { %p16_p0 = scmp.eq.s32.totalorder %s15_s11, 0  ;;  %p25_p1 = scmp.ne.s32.totalorder %s418_s7, %s414_s6 }
   0x5   : > { %p26_p2 = scmp.eq.s32.totalorder %s422_s8, 0  ;;  %p55_p3 = scmp.eq.s32.totalorder %s352_s9, 11 }
   0x6   : > { %s462_s13 = scalar_select %p16_p0, %s418_s7, %s18_s12  }
   0x7   : > { %p27_p4 = por %p26_p2, %p25_p1  ;;  %p464_p5 = por %p55_p3, %p25_p1 }
   0x8   : > { %p355_p6 = scmp.ge.s32.totalorder %s422_s8, 12 }
   0xa   : > { %77 = sbr.rel (%p355_p6) target bundleno = 28 (0x1c), region = 16 }
  0x11   : > { %80 = sbr.rel (!%p27_p4) target bundleno = 28 (0x1c), region = 20  ;;  %s82_s15 = sand.u32 (%p27_p4), 1, %s418_s7  }
  0x12   : > { %s374_s16 = smul.u32 (%p27_p4), 48, %s422_s8 }
  0x13   : > { %s373_s17 = smul.u32 (%p27_p4), 96, %s82_s15 }
  0x14   : > { %s88_s20 = scalar_lea.vmem (%p27_p4), %s502_s0, %s374_s16 }
  0x15   : > { %v138_v0 = vld [vmem:[%s88_s20] sm:$0xff] (%p27_p4)  ;;  %v140_v1 = vld [vmem:[%s88_s20 + $0x8] sm:$0xff] (%p27_p4)  ;;  %v142_v2 = vld [vmem:[%s88_s20 + $0x10] sm:$0xff] (%p27_p4)  ;;  %s84_s21 = scalar_lea.vmem (%p27_p4), [#allocation3], %s373_s17 }
  0x16   : > { %139 = vst [vmem:[%s84_s21] sm:$0xff] (%p27_p4), %v138_v0  ;;  %141 = vst [vmem:[%s84_s21 + $0x8] sm:$0xff] (%p27_p4), %v140_v1  ;;  %v144_v3 = vld [vmem:[%s88_s20 + $0x18] sm:$0xff] (%p27_p4)  ;;  %v146_v4 = vld [vmem:[%s88_s20 + $0x20] sm:$0xff] (%p27_p4) }
  0x17   : > { %143 = vst [vmem:[%s84_s21 + $0x10] sm:$0xff] (%p27_p4), %v142_v2  ;;  %v148_v5 = vld [vmem:[%s88_s20 + $0x28] sm:$0xff] (%p27_p4)  ;;  %145 = vst [vmem:[%s84_s21 + $0x18] sm:$0xff] (%p27_p4), %v144_v3  ;;  %v150_v6 = vld [vmem:[%s88_s20 + $0x240] sm:$0xff] (%p27_p4) }
  0x18   : > { %147 = vst [vmem:[%s84_s21 + $0x20] sm:$0xff] %v146_v4  ;;  %149 = vst [vmem:[%s84_s21 + $0x28] sm:$0xff] %v148_v5  ;;  %v152_v7 = vld [vmem:[%s88_s20 + $0x248] sm:$0xff]  ;;  %v154_v8 = vld [vmem:[%s88_s20 + $0x250] sm:$0xff] }
  0x19   : > { %151 = vst [vmem:[%s84_s21 + $0x30] sm:$0xff] %v150_v6  ;;  %153 = vst [vmem:[%s84_s21 + $0x38] sm:$0xff] %v152_v7  ;;  %v156_v9 = vld [vmem:[%s88_s20 + $0x258] sm:$0xff]  ;;  %v158_v10 = vld [vmem:[%s88_s20 + $0x260] sm:$0xff] }
  0x1a   : > { %155 = vst [vmem:[%s84_s21 + $0x40] sm:$0xff] %v154_v8  ;;  %v160_v11 = vld [vmem:[%s88_s20 + $0x268] sm:$0xff]  ;;  %157 = vst [vmem:[%s84_s21 + $0x48] sm:$0xff] %v156_v9 }
  0x1b   : > { %159 = vst [vmem:[%s84_s21 + $0x50] sm:$0xff] %v158_v10  ;;  %161 = vst [vmem:[%s84_s21 + $0x58] sm:$0xff] %v160_v11 }
  0x1c PF: > { %p359_p7 = scmp.ge.s32.totalorder %s422_s8, 1  ;;  %p166_p8 = scmp.lt.s32.totalorder %s422_s8, 13 }
  0x1e   : > { %p167_p9 = pnand %p359_p7, %p166_p8 }
  0x1f   : > { %s173_s22 = sand.u32 (!%p167_p9), 1, %s414_s6   ;;  %vm211_vm0 = vcmask (!%p167_p9), 523264   ;;  %vm238_vm1 = vcmask (!%p167_p9), 519168  }
  0x20   : > { %170 = sbr.rel (%p167_p9) target bundleno = 63 (0x3f), region = 58  ;;  %s360_s25 = sshll.u32 (!%p167_p9), %s173_s22, 5 }
  0x21   : > { %s375_s23 = smul.u32 (!%p167_p9), 96, %s173_s22  ;;  %s190_s26 = scalar_lea.vmem (!%p167_p9), [#allocation4], %s360_s25 }
  0x23   : > { %s175_s24 = scalar_lea.vmem (!%p167_p9), [#allocation3], %s375_s23 }
  0x24   : > { %v192_v12 = vld [vmem:[%s175_s24] sm:$0xff] (!%p167_p9)  ;;  %v361_v13 = vld [vmem:[%s175_s24 + $0x18] sm:$0xff] (!%p167_p9)  ;;  %v193_v14 = vld [vmem:[%s175_s24 + $0x8] sm:$0xff] (!%p167_p9) }
  0x25   : > { %v205_v15 = vmax.f32 (!%p167_p9), %v192_v12, %v361_v13  ;;  %v362_v16 = vld [vmem:[%s175_s24 + $0x20] sm:$0xff] (!%p167_p9)  ;;  %v194_v17 = vld [vmem:[%s175_s24 + $0x10] sm:$0xff] (!%p167_p9)  ;;  %v363_v18 = vld [vmem:[%s175_s24 + $0x28] sm:$0xff] (!%p167_p9) }
  0x26   : > { %v206_v19 = vmax.f32 (!%p167_p9), %v193_v14, %v362_v16  ;;  %v207_v20 = vmax.f32 (!%p167_p9), %v194_v17, %v363_v18  ;;  %v195_v21 = vld [vmem:[%s175_s24 + $0x30] sm:$0xff] (!%p167_p9)  ;;  %v364_v22 = vld [vmem:[%s175_s24 + $0x48] sm:$0xff] (!%p167_p9)  ;;  %v196_v23 = vld [vmem:[%s175_s24 + $0x38] sm:$0xff] (!%p167_p9) }
  0x27   : > { %212 = vst.msk [vmem:[#allocation2] sm:$0xff] %vm211_vm0, %v205_v15  ;;  %v208_v24 = vmax.f32 %v195_v21, %v364_v22  ;;  %v365_v25 = vld [vmem:[%s175_s24 + $0x50] sm:$0xff]  ;;  %v197_v26 = vld [vmem:[%s175_s24 + $0x40] sm:$0xff]  ;;  %v366_v27 = vld [vmem:[%s175_s24 + $0x58] sm:$0xff]  ;;  %s372_s27 = sshll.u32 (%p464_p5), %s352_s9, 4 }
  0x28   : > { %213 = vst.msk [vmem:[#allocation2 + $0x8] sm:$0xff] %vm211_vm0, %v206_v19  ;;  %214 = vst.msk [vmem:[#allocation2 + $0x10] sm:$0xff] %vm211_vm0, %v207_v20  ;;  %v209_v28 = vmax.f32 %v196_v23, %v365_v25  ;;  %v210_v29 = vmax.f32 %v197_v26, %v366_v27  ;;  %s251_s30 = scalar_lea.vmem (%p464_p5), %s503_s1, %s372_s27 }
  0x29   : > { %215 = vst.msk [vmem:[#allocation2 + $0x18] sm:$0xff] %vm211_vm0, %v208_v24 }
  0x2a   : > { %216 = vst.msk [vmem:[#allocation2 + $0x20] sm:$0xff] %vm211_vm0, %v209_v28  ;;  %217 = vst.msk [vmem:[#allocation2 + $0x28] sm:$0xff] %vm211_vm0, %v210_v29 }
  0x2f   : > { %v218_v30 = vld [vmem:[#allocation2] ss:$2 sm:$0xff]  ;;  %v226_v31 = vld [vmem:[#allocation2 + $0x1] ss:$2 sm:$0xff] }
  0x30   : > { %v233_v32 = vmax.f32 %v218_v30, %v226_v31  ;;  %v220_v33 = vld [vmem:[#allocation2 + $0x10] ss:$2 sm:$0xf]  ;;  %v228_v34 = vld [vmem:[#allocation2 + $0x11] ss:$2 sm:$0xf] }
  0x31   : > { %v234_v35 = vmax.f32 %v220_v33, %v228_v34  ;;  %v222_v36 = vld [vmem:[#allocation2 + $0x18] ss:$2 sm:$0xff]  ;;  %v230_v37 = vld [vmem:[#allocation2 + $0x19] ss:$2 sm:$0xff]  ;;  %248 = sbr.rel (!%p464_p5) target bundleno = 63 (0x3f), region = 66 }
  0x32   : > { %237 = vst.msk [vmem:[%s190_s26] sm:$0xff] %vm211_vm0, %v233_v32  ;;  %v235_v38 = vmax.f32 %v222_v36, %v230_v37  ;;  %v224_v39 = vld [vmem:[#allocation2 + $0x28] ss:$2 sm:$0xf] }
  0x33   : > { %v232_v40 = vld [vmem:[#allocation2 + $0x29] ss:$2 sm:$0xf]  ;;  %239 = vst.msk [vmem:[%s190_s26 + $0x8] sm:$0xf] %vm238_vm1, %v234_v35 }
  0x34   : > { %v236_v41 = vmax.f32 %v224_v39, %v232_v40  ;;  %240 = vst.msk [vmem:[%s190_s26 + $0x10] sm:$0xff] %vm211_vm0, %v235_v38 }
  0x36   : > { %241 = vst.msk [vmem:[%s190_s26 + $0x18] sm:$0xf] %vm238_vm1, %v236_v41 }
  0x39   : > { %v285_v42 = vld [vmem:[%s190_s26] sm:$0xff] }
  0x3a   : > { %v287_v43 = vld [vmem:[%s190_s26 + $0x8] sm:$0xff]  ;;  %286 = vst [vmem:[%s251_s30] sm:$0xff] %v285_v42 }
  0x3b   : > { %v289_v44 = vld [vmem:[%s190_s26 + $0x10] sm:$0xff]  ;;  %288 = vst [vmem:[%s251_s30 + $0x8] sm:$0xff] %v287_v43 }
  0x3c   : > { %290 = vst [vmem:[%s251_s30 + $0xc0] sm:$0xff] %v289_v44 }
  0x3d   : > { %v291_v45 = vld [vmem:[%s190_s26 + $0x18] sm:$0xff] }
  0x3e   : > { %292 = vst [vmem:[%s251_s30 + $0xc8] sm:$0xff] %v291_v45 }
  0x3f PF: > { %p8_p10 = scmp.ge.s32.totalorder %s451_s10, 14   ;;  %s505_s6 = smov %s418_s7 }
  0x40   : > { %s506_s7 = smov %s462_s13  ;;  %s507_s8 = smov %s451_s10 }
  0x41   :  { %10 = sbr.rel (!%p8_p10) target bundleno = 2 (0x2), region = 143 }

// kernel: convnet_forward.7
= control target key start
LH: loop header
LB: loop body
LE: loop exit
PB: predicated region body
PF: predicated region fallthrough
CT: control target
= control target key end

     0   :  { %10 = vsyncpa [#allocation3], 0  ;;  %v173_v29 = vlaneseq  ;;  %v9272_v34 = vmov 1983009808   ;;  %vm9274_vm0 = vmmov 0   ;;  %s11401_s0 = inlined_call_operand.vmem [shape: f32[2,9216], index: 0, kind: input, shape index: {}]   ;;  %s11402_s1 = inlined_call_operand.vmem [shape: bf16[9216,128], index: 1, kind: input, shape index: {}]   ;;  %s11403_s2 = inlined_call_operand.vmem [shape: f32[1,128], index: 2, kind: input, shape index: {}]   ;;  %s11404_s3 = inlined_call_operand.vmem [shape: bf16[128,128], index: 3, kind: input, shape index: {}]   ;;  %s11405_s4 = inlined_call_operand.vmem [shape: f32[1,128], index: 4, kind: input, shape index: {}]   ;;  %s11406_s5 = inlined_call_operand.hbm [shape: f32[2,128], index: 5, kind: output, shape index: {}]  }
   0x1   :  { %v8556_v0 = vld [vmem:[%s11402_s1 + $0x40] sm:$0xff]   ;;  %v8560_v4 = vld [vmem:[%s11402_s1 + $0x48] sm:$0xff]   ;;  %v8564_v8 = vld [vmem:[%s11402_s1 + $0x50] sm:$0xff]   ;;  %v171_v35 = vunpack.c.l.s4 %v9272_v34 }
   0x2   :  { %v8557_v1 = vld [vmem:[%s11402_s1 + $0xc0] sm:$0xff]   ;;  %7729 = vmatprep.subr.bf16.mxu0 %v8556_v0  ;;  %v8561_v5 = vld [vmem:[%s11402_s1 + $0xc8] sm:$0xff]   ;;  %v8565_v9 = vld [vmem:[%s11402_s1 + $0xd0] sm:$0xff]   ;;  %v174_v36 = vshrl.u32 %v173_v29, 7 }
   0x3   :  { %v8558_v2 = vld [vmem:[%s11402_s1] sm:$0xff]   ;;  %7751 = vmatprep.subr.bf16.mxu1 %v8557_v1  ;;  %v8562_v6 = vld [vmem:[%s11402_s1 + $0x8] sm:$0xff]   ;;  %v8566_v10 = vld [vmem:[%s11402_s1 + $0x10] sm:$0xff]   ;;  %v172_v40 = vunpack.c.0.s8 %v171_v35 }
   0x4   :  { %v8559_v3 = vld [vmem:[%s11402_s1 + $0x80] sm:$0xff]   ;;  %7730 = vmatpush3.bf16.msra.mxu0 %v8558_v2  ;;  %v8563_v7 = vld [vmem:[%s11402_s1 + $0x88] sm:$0xff]   ;;  %v8567_v11 = vld [vmem:[%s11402_s1 + $0x90] sm:$0xff]  }
   0x5   :  { %7752 = vmatpush3.bf16.msra.mxu1 %v8559_v3  ;;  %7731 = vmatprep.subr.bf16.mxu0 %v8560_v4  ;;  %v8568_v12 = vld [vmem:[%s11402_s1 + $0x58] sm:$0xff]   ;;  %v8572_v16 = vld [vmem:[%s11402_s1 + $0x60] sm:$0xff]   ;;  %v8576_v20 = vld [vmem:[%s11402_s1 + $0x68] sm:$0xff]   ;;  %v9422_v43 = vsub.s32 %v172_v40, %v174_v36 }
   0x6   :  { %7753 = vmatprep.subr.bf16.mxu1 %v8561_v5  ;;  %v8569_v13 = vld [vmem:[%s11402_s1 + $0xd8] sm:$0xff]   ;;  %v8573_v17 = vld [vmem:[%s11402_s1 + $0xe0] sm:$0xff]   ;;  %v8577_v21 = vld [vmem:[%s11402_s1 + $0xe8] sm:$0xff]  }
   0x7   :  { %v8570_v14 = vld [vmem:[%s11402_s1 + $0x18] sm:$0xff]   ;;  %v8574_v18 = vld [vmem:[%s11402_s1 + $0x20] sm:$0xff]   ;;  %v8578_v22 = vld [vmem:[%s11402_s1 + $0x28] sm:$0xff]  }
   0x8   :  { %7732 = vmatpush3.bf16.msra.mxu0 %v8562_v6  ;;  %v8571_v15 = vld [vmem:[%s11402_s1 + $0x98] sm:$0xff]   ;;  %v8575_v19 = vld [vmem:[%s11402_s1 + $0xa0] sm:$0xff]   ;;  %v8579_v23 = vld [vmem:[%s11402_s1 + $0xa8] sm:$0xff]  }
   0x9   :  { %7754 = vmatpush3.bf16.msra.mxu1 %v8563_v7  ;;  %7733 = vmatprep.subr.bf16.mxu0 %v8564_v8  ;;  %v8580_v24 = vld [vmem:[%s11402_s1 + $0x70] sm:$0xff]   ;;  %v8584_v28 = vld [vmem:[%s11402_s1 + $0x78] sm:$0xff]   ;;  %v8594_v41 = vld [vmem:[%s11402_s1 + $0x140] sm:$0xff]  }
   0xa   :  { %7755 = vmatprep.subr.bf16.mxu1 %v8565_v9  ;;  %v8581_v25 = vld [vmem:[%s11402_s1 + $0xf0] sm:$0xff]   ;;  %v8585_v30 = vld [vmem:[%s11402_s1 + $0xf8] sm:$0xff]   ;;  %v8595_v42 = vld [vmem:[%s11402_s1 + $0x1c0] sm:$0xff]  }
   0xb   :  { %v8582_v26 = vld [vmem:[%s11402_s1 + $0x30] sm:$0xff]   ;;  %v8586_v31 = vld [vmem:[%s11402_s1 + $0x38] sm:$0xff]   ;;  %v8596_v52 = vld [vmem:[%s11402_s1 + $0x100] sm:$0xff]  }
   0xc   :  { %7734 = vmatpush3.bf16.msra.mxu0 %v8566_v10  ;;  %v8583_v27 = vld [vmem:[%s11402_s1 + $0xb0] sm:$0xff]   ;;  %v8587_v32 = vld [vmem:[%s11402_s1 + $0xb8] sm:$0xff]   ;;  %v8597_v53 = vld [vmem:[%s11402_s1 + $0x180] sm:$0xff]  }
   0xd   :  { %7756 = vmatpush3.bf16.msra.mxu1 %v8567_v11  ;;  %7735 = vmatprep.subr.bf16.mxu0 %v8568_v12  ;;  %v8588_v33 = vld [vmem:[%s11401_s0] ss:$144 sps:$4 sm:$0xff]   ;;  %v8592_v38 = vld [vmem:[%s11401_s0 + $0x4] ss:$144 sps:$4 sm:$0xff]   ;;  %v8598_v58 = vld [vmem:[%s11402_s1 + $0x148] sm:$0xff]  }
   0xe   :  { %7757 = vmatprep.subr.bf16.mxu1 %v8569_v13  ;;  %v8590_v37 = vld [vmem:[%s11401_s0 + $0x120] ss:$144 sps:$4 sm:$0xff]   ;;  %v8593_v39 = vld [vmem:[%s11401_s0 + $0x124] ss:$144 sps:$4 sm:$0xff]   ;;  %v176_v44 = vrot.slane %v8588_v33, %v9422_v43  ;;  %v183_v46 = vrot.slane %v8592_v38, %v9422_v43  ;;  %v8599_v59 = vld [vmem:[%s11402_s1 + $0x1c8] sm:$0xff]  }
   0xf   :  { %v190_v45 = vrot.slane %v8590_v37, %v9422_v43  ;;  %v197_v47 = vrot.slane %v8593_v39, %v9422_v43  ;;  %v8600_v60 = vld [vmem:[%s11402_s1 + $0x108] sm:$0xff]   ;;  %v8602_v62 = vld [vmem:[%s11402_s1 + $0x150] sm:$0xff]   ;;  %v8606_v2 = vld [vmem:[%s11402_s1 + $0x158] sm:$0xff]  }
  0x10   :  { %7736 = vmatpush3.bf16.msra.mxu0 %v8570_v14  ;;  %v8601_v61 = vld [vmem:[%s11402_s1 + $0x188] sm:$0xff]   ;;  %v8603_v63 = vld [vmem:[%s11402_s1 + $0x1d0] sm:$0xff]   ;;  %v8607_v3 = vld [vmem:[%s11402_s1 + $0x1d8] sm:$0xff]  }
  0x11   :  { %7758 = vmatpush3.bf16.msra.mxu1 %v8571_v15  ;;  %7737 = vmatprep.subr.bf16.mxu0 %v8572_v16  ;;  %v199_v48 = vcombine.high %v176_v44, %v190_v45  ;;  %v201_v49 = vcombine.high %v183_v46, %v197_v47  ;;  %v198_v50 = vcombine.low %v176_v44, %v190_v45  ;;  %v8604_v0 = vld [vmem:[%s11402_s1 + $0x110] sm:$0xff]   ;;  %v8608_v4 = vld [vmem:[%s11402_s1 + $0x118] sm:$0xff]   ;;  %v8610_v6 = vld [vmem:[%s11402_s1 + $0x160] sm:$0xff]  }
  0x12   :  { %7759 = vmatprep.subr.bf16.mxu1 %v8573_v17  ;;  %v200_v51 = vcombine.low %v183_v46, %v197_v47  ;;  %v8605_v1 = vld [vmem:[%s11402_s1 + $0x190] sm:$0xff]   ;;  %v8609_v5 = vld [vmem:[%s11402_s1 + $0x198] sm:$0xff]   ;;  %v8611_v7 = vld [vmem:[%s11402_s1 + $0x1e0] sm:$0xff]  }
  0x13   :  { %v887_v54 = vpack.c.bf16 %v199_v48, %v199_v48  ;;  %v889_v55 = vpack.c.bf16 %v201_v49, %v201_v49  ;;  %v886_v56 = vpack.c.bf16 %v198_v50, %v198_v50  ;;  %v8612_v8 = vld [vmem:[%s11402_s1 + $0x120] sm:$0xff]   ;;  %v8614_v10 = vld [vmem:[%s11402_s1 + $0x168] sm:$0xff]   ;;  %v8618_v14 = vld [vmem:[%s11402_s1 + $0x170] sm:$0xff]  }
  0x14   :  { %7738 = vmatpush3.bf16.msra.mxu0 %v8574_v18  ;;  %v888_v57 = vpack.c.bf16 %v200_v51, %v200_v51  ;;  %v8613_v9 = vld [vmem:[%s11402_s1 + $0x1a0] sm:$0xff]   ;;  %v8615_v11 = vld [vmem:[%s11402_s1 + $0x1e8] sm:$0xff]   ;;  %v8619_v15 = vld [vmem:[%s11402_s1 + $0x1f0] sm:$0xff]  }
  0x15   :  { %7760 = vmatpush3.bf16.msra.mxu1 %v8575_v19  ;;  %7739 = vmatprep.subr.bf16.mxu0 %v8576_v20  ;;  %v8616_v12 = vld [vmem:[%s11402_s1 + $0x128] sm:$0xff]   ;;  %v8620_v16 = vld [vmem:[%s11402_s1 + $0x130] sm:$0xff]   ;;  %v8622_v18 = vld [vmem:[%s11402_s1 + $0x178] sm:$0xff]  }
  0x16   :  { %7761 = vmatprep.subr.bf16.mxu1 %v8577_v21  ;;  %5605 = vmatprep.mubr.bf16.mxu0 %v887_v54  ;;  %v8617_v13 = vld [vmem:[%s11402_s1 + $0x1a8] sm:$0xff]   ;;  %v8621_v17 = vld [vmem:[%s11402_s1 + $0x1b0] sm:$0xff]   ;;  %v8623_v19 = vld [vmem:[%s11402_s1 + $0x1f8] sm:$0xff]  }
  0x17   :  { %5645 = vmatprep.mubr.bf16.mxu1 %v889_v55  ;;  %v8626_v20 = vld [vmem:[%s11401_s0 + $0x8] ss:$144 sps:$4 sm:$0xff]   ;;  %v8633_v33 = vld [vmem:[%s11402_s1 + $0x2c0] sm:$0xff]   ;;  %v8640_v47 = vld [vmem:[%s11402_s1 + $0x250] sm:$0xff]  }
  0x18   :  { %7740 = vmatpush3.bf16.msra.mxu0 %v8578_v22  ;;  %v8628_v21 = vld [vmem:[%s11401_s0 + $0x128] ss:$144 sps:$4 sm:$0xff]   ;;  %v8634_v36 = vld [vmem:[%s11402_s1 + $0x200] sm:$0xff]   ;;  %v8641_v48 = vld [vmem:[%s11402_s1 + $0x2d0] sm:$0xff]  }
  0x19   :  { %7762 = vmatpush3.bf16.msra.mxu1 %v8579_v23  ;;  %7741 = vmatprep.subr.bf16.mxu0 %v8580_v24  ;;  %v8624_v22 = vld [vmem:[%s11402_s1 + $0x138] sm:$0xff]   ;;  %v8635_v39 = vld [vmem:[%s11402_s1 + $0x280] sm:$0xff]   ;;  %v8637_v44 = vld [vmem:[%s11402_s1 + $0x2c8] sm:$0xff]  }
  0x1a   :  { %7763 = vmatprep.subr.bf16.mxu1 %v8581_v25  ;;  %v8630_v23 = vld [vmem:[%s11401_s0 + $0xc] ss:$144 sps:$4 sm:$0xff]   ;;  %v8642_v49 = vld [vmem:[%s11402_s1 + $0x210] sm:$0xff]   ;;  %v8648_v55 = vld [vmem:[%s11402_s1 + $0x260] sm:$0xff]  }
  0x1b   :  { %v8631_v24 = vld [vmem:[%s11401_s0 + $0x12c] ss:$144 sps:$4 sm:$0xff]   ;;  %v8643_v50 = vld [vmem:[%s11402_s1 + $0x290] sm:$0xff]  }
  0x1c   :  { %7742 = vmatpush3.bf16.msra.mxu0 %v8582_v26  ;;  %v8625_v25 = vld [vmem:[%s11402_s1 + $0x1b8] sm:$0xff]   ;;  %v212_v26 = vrot.slane %v8626_v20, %v9422_v43  ;;  %v233_v29 = vrot.slane %v8631_v24, %v9422_v43  ;;  %v8638_v45 = vld [vmem:[%s11402_s1 + $0x208] sm:$0xff]  }
  0x1d   :  { %7764 = vmatpush3.bf16.msra.mxu1 %v8583_v27  ;;  %7743 = vmatprep.subr.bf16.mxu0 %v8584_v28  ;;  %v226_v27 = vrot.slane %v8628_v21, %v9422_v43  ;;  %v219_v28 = vrot.slane %v8630_v23, %v9422_v43  ;;  %v8639_v46 = vld [vmem:[%s11402_s1 + $0x288] sm:$0xff]   ;;  %v8644_v51 = vld [vmem:[%s11402_s1 + $0x258] sm:$0xff]  }
  0x1e   :  { %7765 = vmatprep.subr.bf16.mxu1 %v8585_v30  ;;  %v8632_v30 = vld [vmem:[%s11402_s1 + $0x240] sm:$0xff]   ;;  %v8647_v54 = vld [vmem:[%s11402_s1 + $0x298] sm:$0xff]  }
  0x1f   :  { %v237_v34 = vcombine.high %v219_v28, %v233_v29  ;;  %v236_v35 = vcombine.low %v219_v28, %v233_v29  ;;  %v8675_v28 = vld [vmem:[%s11402_s1 + $0x3c8] sm:$0xff]  }
  0x20   :  { %7744 = vmatpush3.bf16.msra.mxu0 %v8586_v31  ;;  %v235_v31 = vcombine.high %v212_v26, %v226_v27  ;;  %v8676_v29 = vld [vmem:[%s11402_s1 + $0x308] sm:$0xff]  }
  0x21   :  { %7766 = vmatpush3.bf16.msra.mxu1 %v8587_v32  ;;  %7773 = vmatprep.subr.bf16.mxu0 %v8594_v41  ;;  %v234_v32 = vcombine.low %v212_v26, %v226_v27  ;;  %v893_v40 = vpack.c.bf16 %v237_v34, %v237_v34  ;;  %v892_v41 = vpack.c.bf16 %v236_v35, %v236_v35  ;;  %v8681_v34 = vld [vmem:[%s11402_s1 + $0x390] sm:$0xff]   ;;  %v8682_v35 = vld [vmem:[%s11402_s1 + $0x358] sm:$0xff]  }
  0x22   :  { %7795 = vmatprep.subr.bf16.mxu1 %v8595_v42  ;;  %v891_v37 = vpack.c.bf16 %v235_v31, %v235_v31  ;;  %v8636_v42 = vld [vmem:[%s11402_s1 + $0x248] sm:$0xff]   ;;  %v8678_v31 = vld [vmem:[%s11402_s1 + $0x350] sm:$0xff]  }
  0x23   :  { %5606 = vmatmul.mubr.bf16.vlgmr.msra.gmra.mrb[0].mxu0 %v886_v56  ;;  %v890_v38 = vpack.c.bf16 %v234_v32, %v234_v32  ;;  %v8649_v56 = vld [vmem:[%s11402_s1 + $0x2e0] sm:$0xff]   ;;  %v8679_v32 = vld [vmem:[%s11402_s1 + $0x3d0] sm:$0xff]  }
  0x24   :  { %5646 = vmatmul.mubr.bf16.vlgmr.msra.gmra.mrb[0].mxu1 %v888_v57  ;;  %7774 = vmatpush3.bf16.msra.mxu0 %v8596_v52  ;;  %v8645_v52 = vld [vmem:[%s11402_s1 + $0x2d8] sm:$0xff]   ;;  %v8650_v57 = vld [vmem:[%s11402_s1 + $0x220] sm:$0xff]  }
  0x25   :  { %7796 = vmatpush3.bf16.msra.mxu1 %v8597_v53  ;;  %7775 = vmatprep.subr.bf16.mxu0 %v8598_v58  ;;  %v8646_v53 = vld [vmem:[%s11402_s1 + $0x218] sm:$0xff]   ;;  %v8651_v58 = vld [vmem:[%s11402_s1 + $0x2a0] sm:$0xff]  }
  0x26   :  { %7797 = vmatprep.subr.bf16.mxu1 %v8599_v59  ;;  %5685 = vmatprep.mubr.bf16.mxu0 %v891_v37  ;;  %v8652_v59 = vld [vmem:[%s11402_s1 + $0x268] sm:$0xff]   ;;  %v8684_v37 = vld [vmem:[%s11402_s1 + $0x318] sm:$0xff]  }
  0x27   :  { %5725 = vmatprep.mubr.bf16.mxu1 %v893_v40  ;;  %v8687_v40 = vld [vmem:[%s11402_s1 + $0x3e0] sm:$0xff]  }
  0x28   :  { %7776 = vmatpush3.bf16.msra.mxu0 %v8600_v60  ;;  %v8653_v60 = vld [vmem:[%s11402_s1 + $0x2e8] sm:$0xff]  }
  0x29   :  { %7798 = vmatpush3.bf16.msra.mxu1 %v8601_v61  ;;  %7777 = vmatprep.subr.bf16.mxu0 %v8602_v62  ;;  %v8654_v61 = vld [vmem:[%s11402_s1 + $0x228] sm:$0xff]  }
  0x2a   :  { %7799 = vmatprep.subr.bf16.mxu1 %v8603_v63  ;;  %v8655_v62 = vld [vmem:[%s11402_s1 + $0x2a8] sm:$0xff]   ;;  %v8656_v63 = vld [vmem:[%s11402_s1 + $0x270] sm:$0xff]  }
  0x2c   :  { %7778 = vmatpush3.bf16.msra.mxu0 %v8604_v0  ;;  %v8657_v0 = vld [vmem:[%s11402_s1 + $0x2f0] sm:$0xff]  }
  0x2d   :  { %7800 = vmatpush3.bf16.msra.mxu1 %v8605_v1  ;;  %7779 = vmatprep.subr.bf16.mxu0 %v8606_v2  ;;  %v8658_v1 = vld [vmem:[%s11402_s1 + $0x230] sm:$0xff]  }
  0x2e   :  { %7801 = vmatprep.subr.bf16.mxu1 %v8607_v3  ;;  %v8659_v2 = vld [vmem:[%s11402_s1 + $0x2b0] sm:$0xff]   ;;  %v8660_v3 = vld [vmem:[%s11402_s1 + $0x278] sm:$0xff]  }
  0x30   :  { %7780 = vmatpush3.bf16.msra.mxu0 %v8608_v4  ;;  %v8661_v4 = vld [vmem:[%s11402_s1 + $0x2f8] sm:$0xff]  }
  0x31   :  { %7802 = vmatpush3.bf16.msra.mxu1 %v8609_v5  ;;  %7781 = vmatprep.subr.bf16.mxu0 %v8610_v6  ;;  %v8662_v5 = vld [vmem:[%s11402_s1 + $0x238] sm:$0xff]  }
  0x32   :  { %7803 = vmatprep.subr.bf16.mxu1 %v8611_v7  ;;  %v8663_v6 = vld [vmem:[%s11402_s1 + $0x2b8] sm:$0xff]   ;;  %v8664_v7 = vld [vmem:[%s11401_s0 + $0x10] ss:$144 sps:$4 sm:$0xff]  }
  0x34   :  { %7782 = vmatpush3.bf16.msra.mxu0 %v8612_v8  ;;  %v8666_v8 = vld [vmem:[%s11401_s0 + $0x130] ss:$144 sps:$4 sm:$0xff]  }
  0x35   :  { %7804 = vmatpush3.bf16.msra.mxu1 %v8613_v9  ;;  %7783 = vmatprep.subr.bf16.mxu0 %v8614_v10  ;;  %v8668_v9 = vld [vmem:[%s11401_s0 + $0x14] ss:$144 sps:$4 sm:$0xff]  }
  0x36   :  { %7805 = vmatprep.subr.bf16.mxu1 %v8615_v11  ;;  %v8669_v10 = vld [vmem:[%s11401_s0 + $0x134] ss:$144 sps:$4 sm:$0xff]   ;;  %v248_v11 = vrot.slane %v8664_v7, %v9422_v43 }
  0x37   :  { %v8711_v7 = vld [vmem:[%s11402_s1 + $0x480] sm:$0xff]  }
  0x38   :  { %7784 = vmatpush3.bf16.msra.mxu0 %v8616_v12  ;;  %v262_v12 = vrot.slane %v8666_v8, %v9422_v43 }
  0x39   :  { %7806 = vmatpush3.bf16.msra.mxu1 %v8617_v13  ;;  %7785 = vmatprep.subr.bf16.mxu0 %v8618_v14  ;;  %v255_v13 = vrot.slane %v8668_v9, %v9422_v43  ;;  %v8670_v14 = vld [vmem:[%s11402_s1 + $0x340] sm:$0xff]  }
  0x3a   :  { %7807 = vmatprep.subr.bf16.mxu1 %v8619_v15  ;;  %v269_v15 = vrot.slane %v8669_v10, %v9422_v43 }
  0x3c   :  { %7786 = vmatpush3.bf16.msra.mxu0 %v8620_v16  ;;  %v8671_v16 = vld [vmem:[%s11402_s1 + $0x3c0] sm:$0xff]   ;;  %v273_v20 = vcombine.high %v255_v13, %v269_v15  ;;  %v272_v21 = vcombine.low %v255_v13, %v269_v15  ;;  %v8713_v13 = vld [vmem:[%s11402_s1 + $0x4c8] sm:$0xff]  }
  0x3d   :  { %7808 = vmatpush3.bf16.msra.mxu1 %v8621_v17  ;;  %7787 = vmatprep.subr.bf16.mxu0 %v8622_v18  ;;  %v271_v17 = vcombine.high %v248_v11, %v262_v12  ;;  %v270_v18 = vcombine.low %v248_v11, %v262_v12  ;;  %v8712_v12 = vld [vmem:[%s11402_s1 + $0x448] sm:$0xff]  }
  0x3e   :  { %7809 = vmatprep.subr.bf16.mxu1 %v8623_v19  ;;  %v8672_v19 = vld [vmem:[%s11402_s1 + $0x300] sm:$0xff]   ;;  %v897_v26 = vpack.c.bf16 %v273_v20, %v273_v20  ;;  %v896_v27 = vpack.c.bf16 %v272_v21, %v272_v21  ;;  %v8715_v15 = vld [vmem:[%s11402_s1 + $0x488] sm:$0xff]   ;;  %v8720_v20 = vld [vmem:[%s11402_s1 + $0x458] sm:$0xff]  }
  0x3f   :  { %v895_v23 = vpack.c.bf16 %v271_v17, %v271_v17  ;;  %v894_v24 = vpack.c.bf16 %v270_v18, %v270_v18  ;;  %v8717_v17 = vld [vmem:[%s11402_s1 + $0x4d0] sm:$0xff]   ;;  %v8721_v21 = vld [vmem:[%s11402_s1 + $0x4d8] sm:$0xff]  }
  0x40   :  { %7788 = vmatpush3.bf16.msra.mxu0 %v8624_v22  ;;  %v8673_v22 = vld [vmem:[%s11402_s1 + $0x380] sm:$0xff]   ;;  %v8718_v18 = vld [vmem:[%s11402_s1 + $0x410] sm:$0xff]  }
  0x41   :  { %7810 = vmatpush3.bf16.msra.mxu1 %v8625_v25  ;;  %7817 = vmatprep.subr.bf16.mxu0 %v8632_v30  ;;  %v8674_v25 = vld [vmem:[%s11402_s1 + $0x348] sm:$0xff]  }
  0x42   :  { %7839 = vmatprep.subr.bf16.mxu1 %v8633_v33  ;;  %v8677_v30 = vld [vmem:[%s11402_s1 + $0x388] sm:$0xff]   ;;  %v8680_v33 = vld [vmem:[%s11402_s1 + $0x310] sm:$0xff]  }
  0x43   :  { %5686 = vmatmul.mubr.bf16.vlgmr.msra.gmra.mrb[4].mxu0 %v890_v38  ;;  %v8685_v38 = vld [vmem:[%s11402_s1 + $0x398] sm:$0xff]  }
  0x44   :  { %5726 = vmatmul.mubr.bf16.vlgmr.msra.gmra.mrb[4].mxu1 %v892_v41  ;;  %7818 = vmatpush3.bf16.msra.mxu0 %v8634_v36  ;;  %v8683_v36 = vld [vmem:[%s11402_s1 + $0x3d8] sm:$0xff]   ;;  %v8688_v41 = vld [vmem:[%s11402_s1 + $0x320] sm:$0xff]  }
  0x45   :  { %7840 = vmatpush3.bf16.msra.mxu1 %v8635_v39  ;;  %7819 = vmatprep.subr.bf16.mxu0 %v8636_v42  ;;  %v8686_v39 = vld [vmem:[%s11402_s1 + $0x360] sm:$0xff]  }
  0x46   :  { %7841 = vmatprep.subr.bf16.mxu1 %v8637_v44  ;;  %5765 = vmatprep.mubr.bf16.mxu0 %v895_v23  ;;  %v8689_v42 = vld [vmem:[%s11402_s1 + $0x3a0] sm:$0xff]   ;;  %v8690_v44 = vld [vmem:[%s11402_s1 + $0x368] sm:$0xff]   ;;  %v8723_v23 = vld [vmem:[%s11402_s1 + $0x498] sm:$0xff]  }
  0x47   :  { %5805 = vmatprep.mubr.bf16.mxu1 %v897_v26  ;;  %v8726_v26 = vld [vmem:[%s11402_s1 + $0x420] sm:$0xff]  }
  0x48   :  { %7820 = vmatpush3.bf16.msra.mxu0 %v8638_v45  ;;  %v8691_v45 = vld [vmem:[%s11402_s1 + $0x3e8] sm:$0xff]  }
  0x49   :  { %7842 = vmatpush3.bf16.msra.mxu1 %v8639_v46  ;;  %7821 = vmatprep.subr.bf16.mxu0 %v8640_v47  ;;  %v8692_v46 = vld [vmem:[%s11402_s1 + $0x328] sm:$0xff]  }
  0x4a   :  { %7843 = vmatprep.subr.bf16.mxu1 %v8641_v48  ;;  %v8693_v47 = vld [vmem:[%s11402_s1 + $0x3a8] sm:$0xff]   ;;  %v8694_v48 = vld [vmem:[%s11402_s1 + $0x370] sm:$0xff]  }
  0x4c   :  { %7822 = vmatpush3.bf16.msra.mxu0 %v8642_v49  ;;  %v8695_v49 = vld [vmem:[%s11402_s1 + $0x3f0] sm:$0xff]  }
  0x4d   :  { %7844 = vmatpush3.bf16.msra.mxu1 %v8643_v50  ;;  %7823 = vmatprep.subr.bf16.mxu0 %v8644_v51  ;;  %v8696_v50 = vld [vmem:[%s11402_s1 + $0x330] sm:$0xff]  }
  0x4e   :  { %7845 = vmatprep.subr.bf16.mxu1 %v8645_v52  ;;  %v8697_v51 = vld [vmem:[%s11402_s1 + $0x3b0] sm:$0xff]   ;;  %v8698_v52 = vld [vmem:[%s11402_s1 + $0x378] sm:$0xff]  }
  0x50   :  { %7824 = vmatpush3.bf16.msra.mxu0 %v8646_v53  ;;  %v8699_v53 = vld [vmem:[%s11402_s1 + $0x3f8] sm:$0xff]  }
  0x51   :  { %7846 = vmatpush3.bf16.msra.mxu1 %v8647_v54  ;;  %7825 = vmatprep.subr.bf16.mxu0 %v8648_v55  ;;  %v8700_v54 = vld [vmem:[%s11402_s1 + $0x338] sm:$0xff]  }
  0x52   :  { %7847 = vmatprep.subr.bf16.mxu1 %v8649_v56  ;;  %v8701_v55 = vld [vmem:[%s11402_s1 + $0x3b8] sm:$0xff]  }
  0x53   :  { %v8702_v56 = vld [vmem:[%s11401_s0 + $0x18] ss:$144 sps:$4 sm:$0xff]  }
  0x54   :  { %7826 = vmatpush3.bf16.msra.mxu0 %v8650_v57  ;;  %v8704_v57 = vld [vmem:[%s11401_s0 + $0x138] ss:$144 sps:$4 sm:$0xff]  }
  0x55   :  { %7848 = vmatpush3.bf16.msra.mxu1 %v8651_v58  ;;  %7827 = vmatprep.subr.bf16.mxu0 %v8652_v59  ;;  %v8706_v58 = vld [vmem:[%s11401_s0 + $0x1c] ss:$144 sps:$4 sm:$0xff]  }
  0x56   :  { %7849 = vmatprep.subr.bf16.mxu1 %v8653_v60  ;;  %v8707_v59 = vld [vmem:[%s11401_s0 + $0x13c] ss:$144 sps:$4 sm:$0xff]   ;;  %v284_v60 = vrot.slane %v8702_v56, %v9422_v43  ;;  %v8749_v56 = vld [vmem:[%s11402_s1 + $0x580] sm:$0xff]  }
  0x58   :  { %7828 = vmatpush3.bf16.msra.mxu0 %v8654_v61  ;;  %v8708_v61 = vld [vmem:[%s11402_s1 + $0x440] sm:$0xff]  }
  0x59   :  { %7850 = vmatpush3.bf16.msra.mxu1 %v8655_v62  ;;  %7829 = vmatprep.subr.bf16.mxu0 %v8656_v63  ;;  %v298_v62 = vrot.slane %v8704_v57, %v9422_v43  ;;  %v291_v63 = vrot.slane %v8706_v58, %v9422_v43 }
  0x5a   :  { %7851 = vmatprep.subr.bf16.mxu1 %v8657_v0  ;;  %v305_v0 = vrot.slane %v8707_v59, %v9422_v43  ;;  %v8750_v59 = vld [vmem:[%s11402_s1 + $0x548] sm:$0xff]  }
  0x5c   :  { %7830 = vmatpush3.bf16.msra.mxu0 %v8658_v1  ;;  %v8709_v1 = vld [vmem:[%s11402_s1 + $0x4c0] sm:$0xff]  }
  0x5d   :  { %7852 = vmatpush3.bf16.msra.mxu1 %v8659_v2  ;;  %7831 = vmatprep.subr.bf16.mxu0 %v8660_v3  ;;  %v307_v2 = vcombine.high %v284_v60, %v298_v62  ;;  %v309_v3 = vcombine.high %v291_v63, %v305_v0 }
  0x5e   :  { %7853 = vmatprep.subr.bf16.mxu1 %v8661_v4  ;;  %v306_v4 = vcombine.low %v284_v60, %v298_v62  ;;  %v8751_v62 = vld [vmem:[%s11402_s1 + $0x5c8] sm:$0xff]  }
  0x5f   :  { %v899_v8 = vpack.c.bf16 %v307_v2, %v307_v2  ;;  %v901_v9 = vpack.c.bf16 %v309_v3, %v309_v3  ;;  %v8755_v2 = vld [vmem:[%s11402_s1 + $0x5d0] sm:$0xff]  }
  0x60   :  { %7832 = vmatpush3.bf16.msra.mxu0 %v8662_v5  ;;  %v308_v5 = vcombine.low %v291_v63, %v305_v0  ;;  %v898_v10 = vpack.c.bf16 %v306_v4, %v306_v4  ;;  %v8752_v63 = vld [vmem:[%s11402_s1 + $0x508] sm:$0xff]   ;;  %v8756_v3 = vld [vmem:[%s11402_s1 + $0x510] sm:$0xff]  }
  0x61   :  { %7854 = vmatpush3.bf16.msra.mxu1 %v8663_v6  ;;  %7861 = vmatprep.subr.bf16.mxu0 %v8670_v14  ;;  %v8710_v6 = vld [vmem:[%s11402_s1 + $0x400] sm:$0xff]   ;;  %v8714_v14 = vld [vmem:[%s11402_s1 + $0x408] sm:$0xff]   ;;  %v8757_v4 = vld [vmem:[%s11402_s1 + $0x590] sm:$0xff]  }
  0x62   :  { %7883 = vmatprep.subr.bf16.mxu1 %v8671_v16  ;;  %v900_v11 = vpack.c.bf16 %v308_v5, %v308_v5  ;;  %v8716_v16 = vld [vmem:[%s11402_s1 + $0x450] sm:$0xff]   ;;  %v8753_v0 = vld [vmem:[%s11402_s1 + $0x588] sm:$0xff]   ;;  %v8758_v5 = vld [vmem:[%s11402_s1 + $0x558] sm:$0xff]  }
  0x63   :  { %5766 = vmatmul.mubr.bf16.vlgmr.msra.gmra.mrb[8].mxu0 %v894_v24  ;;  %v8724_v24 = vld [vmem:[%s11402_s1 + $0x460] sm:$0xff]  }
  0x64   :  { %5806 = vmatmul.mubr.bf16.vlgmr.msra.gmra.mrb[8].mxu1 %v896_v27  ;;  %7862 = vmatpush3.bf16.msra.mxu0 %v8672_v19  ;;  %v8719_v19 = vld [vmem:[%s11402_s1 + $0x490] sm:$0xff]   ;;  %v8727_v27 = vld [vmem:[%s11402_s1 + $0x4a0] sm:$0xff]  }
  0x65   :  { %7884 = vmatpush3.bf16.msra.mxu1 %v8673_v22  ;;  %7863 = vmatprep.subr.bf16.mxu0 %v8674_v25  ;;  %v8722_v22 = vld [vmem:[%s11402_s1 + $0x418] sm:$0xff]   ;;  %v8725_v25 = vld [vmem:[%s11402_s1 + $0x4e0] sm:$0xff]  }
  0x66   :  { %7885 = vmatprep.subr.bf16.mxu1 %v8675_v28  ;;  %5845 = vmatprep.mubr.bf16.mxu0 %v899_v8  ;;  %v8728_v28 = vld [vmem:[%s11402_s1 + $0x468] sm:$0xff]   ;;  %v8761_v8 = vld [vmem:[%s11402_s1 + $0x598] sm:$0xff]  }
  0x67   :  { %5885 = vmatprep.mubr.bf16.mxu1 %v901_v9  ;;  %v8762_v9 = vld [vmem:[%s11402_s1 + $0x560] sm:$0xff]  }
  0x68   :  { %7864 = vmatpush3.bf16.msra.mxu0 %v8676_v29  ;;  %v8729_v29 = vld [vmem:[%s11402_s1 + $0x4e8] sm:$0xff]  }
  0x69   :  { %7886 = vmatpush3.bf16.msra.mxu1 %v8677_v30  ;;  %7865 = vmatprep.subr.bf16.mxu0 %v8678_v31  ;;  %v8730_v30 = vld [vmem:[%s11402_s1 + $0x428] sm:$0xff]  }
  0x6a   :  { %7887 = vmatprep.subr.bf16.mxu1 %v8679_v32  ;;  %v8731_v31 = vld [vmem:[%s11402_s1 + $0x4a8] sm:$0xff]   ;;  %v8732_v32 = vld [vmem:[%s11402_s1 + $0x470] sm:$0xff]  }
  0x6c   :  { %7866 = vmatpush3.bf16.msra.mxu0 %v8680_v33  ;;  %v8733_v33 = vld [vmem:[%s11402_s1 + $0x4f0] sm:$0xff]  }
  0x6d   :  { %7888 = vmatpush3.bf16.msra.mxu1 %v8681_v34  ;;  %7867 = vmatprep.subr.bf16.mxu0 %v8682_v35  ;;  %v8734_v34 = vld [vmem:[%s11402_s1 + $0x430] sm:$0xff]  }
  0x6e   :  { %7889 = vmatprep.subr.bf16.mxu1 %v8683_v36  ;;  %v8735_v35 = vld [vmem:[%s11402_s1 + $0x4b0] sm:$0xff]   ;;  %v8736_v36 = vld [vmem:[%s11402_s1 + $0x478] sm:$0xff]  }
  0x70   :  { %7868 = vmatpush3.bf16.msra.mxu0 %v8684_v37  ;;  %v8737_v37 = vld [vmem:[%s11402_s1 + $0x4f8] sm:$0xff]  }
  0x71   :  { %7890 = vmatpush3.bf16.msra.mxu1 %v8685_v38  ;;  %7869 = vmatprep.subr.bf16.mxu0 %v8686_v39  ;;  %v8738_v38 = vld [vmem:[%s11402_s1 + $0x438] sm:$0xff]  }
  0x72   :  { %7891 = vmatprep.subr.bf16.mxu1 %v8687_v40  ;;  %v8739_v39 = vld [vmem:[%s11402_s1 + $0x4b8] sm:$0xff]   ;;  %v8740_v40 = vld [vmem:[%s11401_s0 + $0x20] ss:$144 sps:$4 sm:$0xff]  }
  0x74   :  { %7870 = vmatpush3.bf16.msra.mxu0 %v8688_v41  ;;  %v8742_v41 = vld [vmem:[%s11401_s0 + $0x140] ss:$144 sps:$4 sm:$0xff]  }
  0x75   :  { %7892 = vmatpush3.bf16.msra.mxu1 %v8689_v42  ;;  %7871 = vmatprep.subr.bf16.mxu0 %v8690_v44  ;;  %v8744_v42 = vld [vmem:[%s11401_s0 + $0x24] ss:$144 sps:$4 sm:$0xff]  }
  0x76   :  { %7893 = vmatprep.subr.bf16.mxu1 %v8691_v45  ;;  %v8745_v44 = vld [vmem:[%s11401_s0 + $0x144] ss:$144 sps:$4 sm:$0xff]   ;;  %v320_v45 = vrot.slane %v8740_v40, %v9422_v43 }
  0x77   :  { %v8787_v40 = vld [vmem:[%s11402_s1 + $0x680] sm:$0xff]  }
  0x78   :  { %7872 = vmatpush3.bf16.msra.mxu0 %v8692_v46  ;;  %v334_v46 = vrot.slane %v8742_v41, %v9422_v43 }
  0x79   :  { %7894 = vmatpush3.bf16.msra.mxu1 %v8693_v47  ;;  %7873 = vmatprep.subr.bf16.mxu0 %v8694_v48  ;;  %v8746_v47 = vld [vmem:[%s11402_s1 + $0x540] sm:$0xff]   ;;  %v327_v48 = vrot.slane %v8744_v42, %v9422_v43 }
  0x7a   :  { %7895 = vmatprep.subr.bf16.mxu1 %v8695_v49  ;;  %v341_v49 = vrot.slane %v8745_v44, %v9422_v43  ;;  %v8788_v44 = vld [vmem:[%s11402_s1 + $0x648] sm:$0xff]  }
  0x7c   :  { %7874 = vmatpush3.bf16.msra.mxu0 %v8696_v50  ;;  %v8747_v50 = vld [vmem:[%s11402_s1 + $0x5c0] sm:$0xff]  }
  0x7d   :  { %7896 = vmatpush3.bf16.msra.mxu1 %v8697_v51  ;;  %7875 = vmatprep.subr.bf16.mxu0 %v8698_v52  ;;  %v343_v51 = vcombine.high %v320_v45, %v334_v46  ;;  %v342_v52 = vcombine.low %v320_v45, %v334_v46 }
  0x7e   :  { %7897 = vmatprep.subr.bf16.mxu1 %v8699_v53  ;;  %v8748_v53 = vld [vmem:[%s11402_s1 + $0x500] sm:$0xff]  }
  0x7f   :  { %v903_v57 = vpack.c.bf16 %v343_v51, %v343_v51  ;;  %v902_v58 = vpack.c.bf16 %v342_v52, %v342_v52  ;;  %v8793_v51 = vld [vmem:[%s11402_s1 + $0x6d0] sm:$0xff]  }
  0x80   :  { %7876 = vmatpush3.bf16.msra.mxu0 %v8700_v54  ;;  %v345_v54 = vcombine.high %v327_v48, %v341_v49  ;;  %v8794_v52 = vld [vmem:[%s11402_s1 + $0x610] sm:$0xff]  }
  0x81   :  { %7898 = vmatpush3.bf16.msra.mxu1 %v8701_v55  ;;  %7905 = vmatprep.subr.bf16.mxu0 %v8708_v61  ;;  %v344_v55 = vcombine.low %v327_v48, %v341_v49  ;;  %v8790_v48 = vld [vmem:[%s11402_s1 + $0x608] sm:$0xff]  }
  0x82   :  { %7927 = vmatprep.subr.bf16.mxu1 %v8709_v1  ;;  %v905_v60 = vpack.c.bf16 %v345_v54, %v345_v54  ;;  %v8754_v1 = vld [vmem:[%s11402_s1 + $0x550] sm:$0xff]   ;;  %v8791_v49 = vld [vmem:[%s11402_s1 + $0x688] sm:$0xff]   ;;  %v8796_v54 = vld [vmem:[%s11402_s1 + $0x658] sm:$0xff]  }
  0x83   :  { %5846 = vmatmul.mubr.bf16.vlgmr.msra.gmra.mrb[12].mxu0 %v898_v10  ;;  %v904_v61 = vpack.c.bf16 %v344_v55, %v344_v55  ;;  %v8763_v10 = vld [vmem:[%s11402_s1 + $0x5e0] sm:$0xff]   ;;  %v8797_v55 = vld [vmem:[%s11402_s1 + $0x6d8] sm:$0xff]  }
  0x84   :  { %5886 = vmatmul.mubr.bf16.vlgmr.msra.gmra.mrb[12].mxu1 %v900_v11  ;;  %7906 = vmatpush3.bf16.msra.mxu0 %v8710_v6  ;;  %v8759_v6 = vld [vmem:[%s11402_s1 + $0x5d8] sm:$0xff]   ;;  %v8764_v11 = vld [vmem:[%s11402_s1 + $0x520] sm:$0xff]  }
  0x85   :  { %7928 = vmatpush3.bf16.msra.mxu1 %v8711_v7  ;;  %7907 = vmatprep.subr.bf16.mxu0 %v8712_v12  ;;  %v8760_v7 = vld [vmem:[%s11402_s1 + $0x518] sm:$0xff]   ;;  %v8765_v12 = vld [vmem:[%s11402_s1 + $0x5a0] sm:$0xff]  }
  0x86   :  { %7929 = vmatprep.subr.bf16.mxu1 %v8713_v13  ;;  %5925 = vmatprep.mubr.bf16.mxu0 %v903_v57  ;;  %v8766_v13 = vld [vmem:[%s11402_s1 + $0x568] sm:$0xff]   ;;  %v8799_v57 = vld [vmem:[%s11402_s1 + $0x698] sm:$0xff]  }
  0x87   :  { %5965 = vmatprep.mubr.bf16.mxu1 %v905_v60  ;;  %v8802_v60 = vld [vmem:[%s11402_s1 + $0x620] sm:$0xff]  }
  0x88   :  { %7908 = vmatpush3.bf16.msra.mxu0 %v8714_v14  ;;  %v8767_v14 = vld [vmem:[%s11402_s1 + $0x5e8] sm:$0xff]  }
  0x89   :  { %7930 = vmatpush3.bf16.msra.mxu1 %v8715_v15  ;;  %7909 = vmatprep.subr.bf16.mxu0 %v8716_v16  ;;  %v8768_v15 = vld [vmem:[%s11402_s1 + $0x528] sm:$0xff]  }
  0x8a   :  { %7931 = vmatprep.subr.bf16.mxu1 %v8717_v17  ;;  %v8769_v16 = vld [vmem:[%s11402_s1 + $0x5a8] sm:$0xff]   ;;  %v8770_v17 = vld [vmem:[%s11402_s1 + $0x570] sm:$0xff]  }
  0x8c   :  { %7910 = vmatpush3.bf16.msra.mxu0 %v8718_v18  ;;  %v8771_v18 = vld [vmem:[%s11402_s1 + $0x5f0] sm:$0xff]  }
  0x8d   :  { %7932 = vmatpush3.bf16.msra.mxu1 %v8719_v19  ;;  %7911 = vmatprep.subr.bf16.mxu0 %v8720_v20  ;;  %v8772_v19 = vld [vmem:[%s11402_s1 + $0x530] sm:$0xff]  }
  0x8e   :  { %7933 = vmatprep.subr.bf16.mxu1 %v8721_v21  ;;  %v8773_v20 = vld [vmem:[%s11402_s1 + $0x5b0] sm:$0xff]   ;;  %v8774_v21 = vld [vmem:[%s11402_s1 + $0x578] sm:$0xff]  }
  0x90   :  { %7912 = vmatpush3.bf16.msra.mxu0 %v8722_v22  ;;  %v8775_v22 = vld [vmem:[%s11402_s1 + $0x5f8] sm:$0xff]  }
  0x91   :  { %7934 = vmatpush3.bf16.msra.mxu1 %v8723_v23  ;;  %7913 = vmatprep.subr.bf16.mxu0 %v8724_v24  ;;  %v8776_v23 = vld [vmem:[%s11402_s1 + $0x538] sm:$0xff]  }
  0x92   :  { %7935 = vmatprep.subr.bf16.mxu1 %v8725_v25  ;;  %v8777_v24 = vld [vmem:[%s11402_s1 + $0x5b8] sm:$0xff]  }
  0x93   :  { %v8778_v25 = vld [vmem:[%s11401_s0 + $0x28] ss:$144 sps:$4 sm:$0xff]  }
  0x94   :  { %7914 = vmatpush3.bf16.msra.mxu0 %v8726_v26  ;;  %v8780_v26 = vld [vmem:[%s11401_s0 + $0x148] ss:$144 sps:$4 sm:$0xff]  }
  0x95   :  { %7936 = vmatpush3.bf16.msra.mxu1 %v8727_v27  ;;  %7915 = vmatprep.subr.bf16.mxu0 %v8728_v28  ;;  %v8782_v27 = vld [vmem:[%s11401_s0 + $0x2c] ss:$144 sps:$4 sm:$0xff]  }
  0x96   :  { %7937 = vmatprep.subr.bf16.mxu1 %v8729_v29  ;;  %v8783_v28 = vld [vmem:[%s11401_s0 + $0x14c] ss:$144 sps:$4 sm:$0xff]   ;;  %v356_v29 = vrot.slane %v8778_v25, %v9422_v43  ;;  %v8825_v25 = vld [vmem:[%s11402_s1 + $0x780] sm:$0xff]  }
  0x98   :  { %7916 = vmatpush3.bf16.msra.mxu0 %v8730_v30  ;;  %v370_v30 = vrot.slane %v8780_v26, %v9422_v43 }
  0x99   :  { %7938 = vmatpush3.bf16.msra.mxu1 %v8731_v31  ;;  %7917 = vmatprep.subr.bf16.mxu0 %v8732_v32  ;;  %v363_v31 = vrot.slane %v8782_v27, %v9422_v43  ;;  %v8784_v32 = vld [vmem:[%s11402_s1 + $0x640] sm:$0xff]  }
  0x9a   :  { %7939 = vmatprep.subr.bf16.mxu1 %v8733_v33  ;;  %v377_v33 = vrot.slane %v8783_v28, %v9422_v43 }
  0x9c   :  { %7918 = vmatpush3.bf16.msra.mxu0 %v8734_v34  ;;  %v8785_v34 = vld [vmem:[%s11402_s1 + $0x6c0] sm:$0xff]  }
  0x9d   :  { %7940 = vmatpush3.bf16.msra.mxu1 %v8735_v35  ;;  %7919 = vmatprep.subr.bf16.mxu0 %v8736_v36  ;;  %v379_v35 = vcombine.high %v356_v29, %v370_v30  ;;  %v378_v36 = vcombine.low %v356_v29, %v370_v30  ;;  %v8826_v30 = vld [vmem:[%s11402_s1 + $0x748] sm:$0xff]  }
  0x9e   :  { %7941 = vmatprep.subr.bf16.mxu1 %v8737_v37  ;;  %v8786_v37 = vld [vmem:[%s11402_s1 + $0x600] sm:$0xff]  }
  0x9f   :  { %v907_v41 = vpack.c.bf16 %v379_v35, %v379_v35  ;;  %v906_v42 = vpack.c.bf16 %v378_v36, %v378_v36  ;;  %v8831_v35 = vld [vmem:[%s11402_s1 + $0x7d0] sm:$0xff]  }
  0xa0   :  { %7920 = vmatpush3.bf16.msra.mxu0 %v8738_v38  ;;  %v381_v38 = vcombine.high %v363_v31, %v377_v33  ;;  %v8832_v36 = vld [vmem:[%s11402_s1 + $0x710] sm:$0xff]  }
  0xa1   :  { %7942 = vmatpush3.bf16.msra.mxu1 %v8739_v39  ;;  %7949 = vmatprep.subr.bf16.mxu0 %v8746_v47  ;;  %v380_v39 = vcombine.low %v363_v31, %v377_v33  ;;  %v8789_v47 = vld [vmem:[%s11402_s1 + $0x6c8] sm:$0xff]  }
  0xa2   :  { %7971 = vmatprep.subr.bf16.mxu1 %v8747_v50  ;;  %v909_v45 = vpack.c.bf16 %v381_v38, %v381_v38  ;;  %v8792_v50 = vld [vmem:[%s11402_s1 + $0x650] sm:$0xff]   ;;  %v8827_v31 = vld [vmem:[%s11402_s1 + $0x7c8] sm:$0xff]   ;;  %v8834_v38 = vld [vmem:[%s11402_s1 + $0x758] sm:$0xff]  }
  0xa3   :  { %5926 = vmatmul.mubr.bf16.vlgmr.msra.gmra.mrb[16].mxu0 %v902_v58  ;;  %v908_v46 = vpack.c.bf16 %v380_v39, %v380_v39  ;;  %v8800_v58 = vld [vmem:[%s11402_s1 + $0x660] sm:$0xff]   ;;  %v8829_v33 = vld [vmem:[%s11402_s1 + $0x788] sm:$0xff]   ;;  %v8835_v39 = vld [vmem:[%s11402_s1 + $0x7d8] sm:$0xff]  }
  0xa4   :  { %5966 = vmatmul.mubr.bf16.vlgmr.msra.gmra.mrb[16].mxu1 %v904_v61  ;;  %7950 = vmatpush3.bf16.msra.mxu0 %v8748_v53  ;;  %v8795_v53 = vld [vmem:[%s11402_s1 + $0x690] sm:$0xff]   ;;  %v8803_v61 = vld [vmem:[%s11402_s1 + $0x6a0] sm:$0xff]  }
  0xa5   :  { %7972 = vmatpush3.bf16.msra.mxu1 %v8749_v56  ;;  %7951 = vmatprep.subr.bf16.mxu0 %v8750_v59  ;;  %v8798_v56 = vld [vmem:[%s11402_s1 + $0x618] sm:$0xff]   ;;  %v8801_v59 = vld [vmem:[%s11402_s1 + $0x6e0] sm:$0xff]  }
  0xa6   :  { %7973 = vmatprep.subr.bf16.mxu1 %v8751_v62  ;;  %6005 = vmatprep.mubr.bf16.mxu0 %v907_v41  ;;  %v8804_v62 = vld [vmem:[%s11402_s1 + $0x668] sm:$0xff]   ;;  %v8836_v41 = vld [vmem:[%s11402_s1 + $0x718] sm:$0xff]  }
  0xa7   :  { %6045 = vmatprep.mubr.bf16.mxu1 %v909_v45 }
  0xa8   :  { %7952 = vmatpush3.bf16.msra.mxu0 %v8752_v63  ;;  %v8805_v63 = vld [vmem:[%s11402_s1 + $0x6e8] sm:$0xff]  }
  0xa9   :  { %7974 = vmatpush3.bf16.msra.mxu1 %v8753_v0  ;;  %7953 = vmatprep.subr.bf16.mxu0 %v8754_v1  ;;  %v8806_v0 = vld [vmem:[%s11402_s1 + $0x628] sm:$0xff]  }
  0xaa   :  { %7975 = vmatprep.subr.bf16.mxu1 %v8755_v2  ;;  %v8807_v1 = vld [vmem:[%s11402_s1 + $0x6a8] sm:$0xff]   ;;  %v8808_v2 = vld [vmem:[%s11402_s1 + $0x670] sm:$0xff]  }
  0xac   :  { %7954 = vmatpush3.bf16.msra.mxu0 %v8756_v3  ;;  %v8809_v3 = vld [vmem:[%s11402_s1 + $0x6f0] sm:$0xff]  }
  0xad   :  { %7976 = vmatpush3.bf16.msra.mxu1 %v8757_v4  ;;  %7955 = vmatprep.subr.bf16.mxu0 %v8758_v5  ;;  %v8810_v4 = vld [vmem:[%s11402_s1 + $0x630] sm:$0xff]  }
  0xae   :  { %7977 = vmatprep.subr.bf16.mxu1 %v8759_v6  ;;  %v8811_v5 = vld [vmem:[%s11402_s1 + $0x6b0] sm:$0xff]   ;;  %v8812_v6 = vld [vmem:[%s11402_s1 + $0x678] sm:$0xff]  }
  0xb0   :  { %7956 = vmatpush3.bf16.msra.mxu0 %v8760_v7  ;;  %v8813_v7 = vld [vmem:[%s11402_s1 + $0x6f8] sm:$0xff]  }
  0xb1   :  { %7978 = vmatpush3.bf16.msra.mxu1 %v8761_v8  ;;  %7957 = vmatprep.subr.bf16.mxu0 %v8762_v9  ;;  %v8814_v8 = vld [vmem:[%s11402_s1 + $0x638] sm:$0xff]  }
  0xb2   :  { %7979 = vmatprep.subr.bf16.mxu1 %v8763_v10  ;;  %v8815_v9 = vld [vmem:[%s11402_s1 + $0x6b8] sm:$0xff]   ;;  %v8816_v10 = vld [vmem:[%s11401_s0 + $0x30] ss:$144 sps:$4 sm:$0xff]  }
  0xb4   :  { %7958 = vmatpush3.bf16.msra.mxu0 %v8764_v11  ;;  %v8818_v11 = vld [vmem:[%s11401_s0 + $0x150] ss:$144 sps:$4 sm:$0xff]  }
  0xb5   :  { %7980 = vmatpush3.bf16.msra.mxu1 %v8765_v12  ;;  %7959 = vmatprep.subr.bf16.mxu0 %v8766_v13  ;;  %v8820_v12 = vld [vmem:[%s11401_s0 + $0x34] ss:$144 sps:$4 sm:$0xff]  }
  0xb6   :  { %7981 = vmatprep.subr.bf16.mxu1 %v8767_v14  ;;  %v8821_v13 = vld [vmem:[%s11401_s0 + $0x154] ss:$144 sps:$4 sm:$0xff]   ;;  %v392_v14 = vrot.slane %v8816_v10, %v9422_v43  ;;  %v8858_v10 = vld [vmem:[%s11401_s0 + $0x3c] ss:$144 sps:$4 sm:$0xff]  }
  0xb8   :  { %7960 = vmatpush3.bf16.msra.mxu0 %v8768_v15  ;;  %v8822_v15 = vld [vmem:[%s11402_s1 + $0x740] sm:$0xff]  }
  0xb9   :  { %7982 = vmatpush3.bf16.msra.mxu1 %v8769_v16  ;;  %7961 = vmatprep.subr.bf16.mxu0 %v8770_v17  ;;  %v406_v16 = vrot.slane %v8818_v11, %v9422_v43  ;;  %v399_v17 = vrot.slane %v8820_v12, %v9422_v43  ;;  %v8859_v11 = vld [vmem:[%s11401_s0 + $0x15c] ss:$144 sps:$4 sm:$0xff]  }
  0xba   :  { %7983 = vmatprep.subr.bf16.mxu1 %v8771_v18  ;;  %v413_v18 = vrot.slane %v8821_v13, %v9422_v43  ;;  %v8860_v13 = vld [vmem:[%s11402_s1 + $0x840] sm:$0xff]  }
  0xbc   :  { %7962 = vmatpush3.bf16.msra.mxu0 %v8772_v19  ;;  %v8823_v19 = vld [vmem:[%s11402_s1 + $0x7c0] sm:$0xff]  }
  0xbd   :  { %7984 = vmatpush3.bf16.msra.mxu1 %v8773_v20  ;;  %7963 = vmatprep.subr.bf16.mxu0 %v8774_v21  ;;  %v415_v20 = vcombine.high %v392_v14, %v406_v16  ;;  %v417_v21 = vcombine.high %v399_v17, %v413_v18 }
  0xbe   :  { %7985 = vmatprep.subr.bf16.mxu1 %v8775_v22  ;;  %v414_v22 = vcombine.low %v392_v14, %v406_v16  ;;  %v449_v16 = vrot.slane %v8859_v11, %v9422_v43  ;;  %v8898_v11 = vld [vmem:[%s11402_s1 + $0x940] sm:$0xff]  }
  0xbf   :  { %v911_v26 = vpack.c.bf16 %v415_v20, %v415_v20  ;;  %v913_v27 = vpack.c.bf16 %v417_v21, %v417_v21 }
  0xc0   :  { %7964 = vmatpush3.bf16.msra.mxu0 %v8776_v23  ;;  %v416_v23 = vcombine.low %v399_v17, %v413_v18  ;;  %v910_v28 = vpack.c.bf16 %v414_v22, %v414_v22  ;;  %v8861_v17 = vld [vmem:[%s11402_s1 + $0x8c0] sm:$0xff]  }
  0xc1   :  { %7986 = vmatpush3.bf16.msra.mxu1 %v8777_v24  ;;  %7993 = vmatprep.subr.bf16.mxu0 %v8784_v32  ;;  %v8824_v24 = vld [vmem:[%s11402_s1 + $0x700] sm:$0xff]   ;;  %v8828_v32 = vld [vmem:[%s11402_s1 + $0x708] sm:$0xff]  }
  0xc2   :  { %8015 = vmatprep.subr.bf16.mxu1 %v8785_v34  ;;  %v912_v29 = vpack.c.bf16 %v416_v23, %v416_v23  ;;  %v8830_v34 = vld [vmem:[%s11402_s1 + $0x750] sm:$0xff]   ;;  %v8862_v22 = vld [vmem:[%s11402_s1 + $0x800] sm:$0xff]  }
  0xc3   :  { %6006 = vmatmul.mubr.bf16.vlgmr.msra.gmra.mrb[20].mxu0 %v906_v42  ;;  %v8863_v23 = vld [vmem:[%s11402_s1 + $0x880] sm:$0xff]  }
  0xc4   :  { %6046 = vmatmul.mubr.bf16.vlgmr.msra.gmra.mrb[20].mxu1 %v908_v46  ;;  %7994 = vmatpush3.bf16.msra.mxu0 %v8786_v37  ;;  %v8833_v37 = vld [vmem:[%s11402_s1 + $0x790] sm:$0xff]   ;;  %v8838_v46 = vld [vmem:[%s11402_s1 + $0x760] sm:$0xff]  }
  0xc5   :  { %8016 = vmatpush3.bf16.msra.mxu1 %v8787_v40  ;;  %7995 = vmatprep.subr.bf16.mxu0 %v8788_v44  ;;  %v8837_v44 = vld [vmem:[%s11402_s1 + $0x798] sm:$0xff]  }
  0xc6   :  { %8017 = vmatprep.subr.bf16.mxu1 %v8789_v47  ;;  %6085 = vmatprep.mubr.bf16.mxu0 %v911_v26 }
  0xc7   :  { %6125 = vmatprep.mubr.bf16.mxu1 %v913_v27 }
  0xc8   :  { %7996 = vmatpush3.bf16.msra.mxu0 %v8790_v48 }
  0xc9   :  { %8018 = vmatpush3.bf16.msra.mxu1 %v8791_v49  ;;  %7997 = vmatprep.subr.bf16.mxu0 %v8792_v50  ;;  %v8839_v49 = vld [vmem:[%s11402_s1 + $0x7e0] sm:$0xff]  }
  0xca   :  { %8019 = vmatprep.subr.bf16.mxu1 %v8793_v51 }
  0xcc   :  { %7998 = vmatpush3.bf16.msra.mxu0 %v8794_v52  ;;  %v8840_v52 = vld [vmem:[%s11402_s1 + $0x720] sm:$0xff]  }
  0xcd   :  { %8020 = vmatpush3.bf16.msra.mxu1 %v8795_v53  ;;  %7999 = vmatprep.subr.bf16.mxu0 %v8796_v54  ;;  %v8841_v53 = vld [vmem:[%s11402_s1 + $0x7a0] sm:$0xff]  }
  0xce   :  { %8021 = vmatprep.subr.bf16.mxu1 %v8797_v55  ;;  %v7143_v55 = vld [vmem:[%s11403_s2] ss:$0 sm:$0xff] }
  0xd0   :  { %8000 = vmatpush3.bf16.msra.mxu0 %v8798_v56 }
  0xd1   :  { %8022 = vmatpush3.bf16.msra.mxu1 %v8799_v57  ;;  %8001 = vmatprep.subr.bf16.mxu0 %v8800_v58  ;;  %v8842_v57 = vld [vmem:[%s11402_s1 + $0x768] sm:$0xff]  }
  0xd2   :  { %8023 = vmatprep.subr.bf16.mxu1 %v8801_v59  ;;  %v8843_v59 = vld [vmem:[%s11402_s1 + $0x7e8] sm:$0xff]  }
  0xd4   :  { %8002 = vmatpush3.bf16.msra.mxu0 %v8802_v60 }
  0xd5   :  { %8024 = vmatpush3.bf16.msra.mxu1 %v8803_v61  ;;  %8003 = vmatprep.subr.bf16.mxu0 %v8804_v62  ;;  %v8844_v62 = vld [vmem:[%s11402_s1 + $0x728] sm:$0xff]  }
  0xd6   :  { %8025 = vmatprep.subr.bf16.mxu1 %v8805_v63  ;;  %v8845_v63 = vld [vmem:[%s11402_s1 + $0x7a8] sm:$0xff]  }
  0xd8   :  { %8004 = vmatpush3.bf16.msra.mxu0 %v8806_v0  ;;  %v8846_v0 = vld [vmem:[%s11402_s1 + $0x770] sm:$0xff]  }
  0xd9   :  { %8026 = vmatpush3.bf16.msra.mxu1 %v8807_v1  ;;  %8005 = vmatprep.subr.bf16.mxu0 %v8808_v2  ;;  %v8847_v1 = vld [vmem:[%s11402_s1 + $0x7f0] sm:$0xff]  }
  0xda   :  { %8027 = vmatprep.subr.bf16.mxu1 %v8809_v3  ;;  %v8848_v2 = vld [vmem:[%s11402_s1 + $0x730] sm:$0xff]  }
  0xdb   :  { %v8849_v3 = vld [vmem:[%s11402_s1 + $0x7b0] sm:$0xff]  }
  0xdc   :  { %8006 = vmatpush3.bf16.msra.mxu0 %v8810_v4  ;;  %v8850_v4 = vld [vmem:[%s11402_s1 + $0x778] sm:$0xff]  }
  0xdd   :  { %8028 = vmatpush3.bf16.msra.mxu1 %v8811_v5  ;;  %8007 = vmatprep.subr.bf16.mxu0 %v8812_v6  ;;  %v8851_v5 = vld [vmem:[%s11402_s1 + $0x7f8] sm:$0xff]  }
  0xde   :  { %8029 = vmatprep.subr.bf16.mxu1 %v8813_v7  ;;  %v8852_v6 = vld [vmem:[%s11402_s1 + $0x738] sm:$0xff]  }
  0xdf   :  { %v8853_v7 = vld [vmem:[%s11402_s1 + $0x7b8] sm:$0xff]  }
  0xe0   :  { %8008 = vmatpush3.bf16.msra.mxu0 %v8814_v8  ;;  %v8854_v8 = vld [vmem:[%s11401_s0 + $0x38] ss:$144 sps:$4 sm:$0xff]  }
  0xe1   :  { %8030 = vmatpush3.bf16.msra.mxu1 %v8815_v9  ;;  %8037 = vmatprep.subr.bf16.mxu0 %v8822_v15  ;;  %v8856_v9 = vld [vmem:[%s11401_s0 + $0x158] ss:$144 sps:$4 sm:$0xff]   ;;  %v428_v12 = vrot.slane %v8854_v8, %v9422_v43  ;;  %v435_v15 = vrot.slane %v8858_v10, %v9422_v43  ;;  %v8897_v8 = vld [vmem:[%s11401_s0 + $0x164] ss:$144 sps:$4 sm:$0xff]  }
  0xe2   :  { %8059 = vmatprep.subr.bf16.mxu1 %v8823_v19  ;;  %v442_v14 = vrot.slane %v8856_v9, %v9422_v43 }
  0xe3   :  { %6086 = vmatmul.mubr.bf16.vlgmr.msra.gmra.mrb[24].mxu0 %v910_v28  ;;  %v453_v19 = vcombine.high %v435_v15, %v449_v16  ;;  %v452_v21 = vcombine.low %v435_v15, %v449_v16  ;;  %v8864_v28 = vld [vmem:[%s11402_s1 + $0x848] sm:$0xff]  }
  0xe4   :  { %6126 = vmatmul.mubr.bf16.vlgmr.msra.gmra.mrb[24].mxu1 %v912_v29  ;;  %8038 = vmatpush3.bf16.msra.mxu0 %v8824_v24  ;;  %v451_v18 = vcombine.high %v428_v12, %v442_v14  ;;  %v450_v20 = vcombine.low %v428_v12, %v442_v14  ;;  %v8865_v29 = vld [vmem:[%s11402_s1 + $0x8c8] sm:$0xff]   ;;  %v8899_v14 = vld [vmem:[%s11402_s1 + $0x9c0] sm:$0xff]  }
  0xe5   :  { %8060 = vmatpush3.bf16.msra.mxu1 %v8825_v25  ;;  %8039 = vmatprep.subr.bf16.mxu0 %v8826_v30  ;;  %v917_v25 = vpack.c.bf16 %v453_v19, %v453_v19  ;;  %v916_v27 = vpack.c.bf16 %v452_v21, %v452_v21  ;;  %v8866_v30 = vld [vmem:[%s11402_s1 + $0x808] sm:$0xff]  }
  0xe6   :  { %8061 = vmatprep.subr.bf16.mxu1 %v8827_v31  ;;  %v915_v24 = vpack.c.bf16 %v451_v18, %v451_v18  ;;  %v914_v26 = vpack.c.bf16 %v450_v20, %v450_v20  ;;  %v8867_v31 = vld [vmem:[%s11402_s1 + $0x888] sm:$0xff]   ;;  %v8901_v20 = vld [vmem:[%s11402_s1 + $0x980] sm:$0xff]  }
  0xe7   :  { %6205 = vmatprep.mubr.bf16.mxu1 %v917_v25 }
  0xe8   :  { %8040 = vmatpush3.bf16.msra.mxu0 %v8828_v32  ;;  %6165 = vmatprep.mubr.bf16.mxu0 %v915_v24  ;;  %v8868_v32 = vld [vmem:[%s11402_s1 + $0x850] sm:$0xff]  }
  0xe9   :  { %8062 = vmatpush3.bf16.msra.mxu1 %v8829_v33  ;;  %8041 = vmatprep.subr.bf16.mxu0 %v8830_v34  ;;  %v8869_v33 = vld [vmem:[%s11402_s1 + $0x8d0] sm:$0xff]  }
  0xea   :  { %8063 = vmatprep.subr.bf16.mxu1 %v8831_v35  ;;  %v8870_v34 = vld [vmem:[%s11402_s1 + $0x810] sm:$0xff]  }
  0xec   :  { %8042 = vmatpush3.bf16.msra.mxu0 %v8832_v36  ;;  %v8871_v36 = vld [vmem:[%s11402_s1 + $0x890] sm:$0xff]  }
  0xed   :  { %8064 = vmatpush3.bf16.msra.mxu1 %v8833_v37  ;;  %8043 = vmatprep.subr.bf16.mxu0 %v8834_v38  ;;  %v8872_v38 = vld [vmem:[%s11402_s1 + $0x858] sm:$0xff]  }
  0xee   :  { %8065 = vmatprep.subr.bf16.mxu1 %v8835_v39 }
  0xf0   :  { %8044 = vmatpush3.bf16.msra.mxu0 %v8836_v41 }
  0xf1   :  { %8066 = vmatpush3.bf16.msra.mxu1 %v8837_v44  ;;  %8045 = vmatprep.subr.bf16.mxu0 %v8838_v46  ;;  %v8874_v44 = vld [vmem:[%s11402_s1 + $0x818] sm:$0xff]  }
  0xf2   :  { %8067 = vmatprep.subr.bf16.mxu1 %v8839_v49 }
  0xf4   :  { %8046 = vmatpush3.bf16.msra.mxu0 %v8840_v52  ;;  %v8877_v52 = vld [vmem:[%s11402_s1 + $0x8e0] sm:$0xff]  }
  0xf5   :  { %8068 = vmatpush3.bf16.msra.mxu1 %v8841_v53  ;;  %8047 = vmatprep.subr.bf16.mxu0 %v8842_v57  ;;  %v8880_v57 = vld [vmem:[%s11402_s1 + $0x868] sm:$0xff]  }
  0xf6   :  { %v7745_v40 = vpop.f32.mrb[0].mxu0  ;;  %8069 = vmatprep.subr.bf16.mxu1 %v8843_v59  ;;  %v8882_v59 = vld [vmem:[%s11402_s1 + $0x828] sm:$0xff]  }
  0xf7   :  { %v7767_v42 = vpop.f32.mrb[0].mxu1  ;;  %v7746_v45 = vpop.f32.mrb[1].mxu0 }
  0xf8   :  { %v7747_v47 = vadd.f32 %v7746_v45, %v7745_v40  ;;  %v7768_v48 = vpop.f32.mrb[1].mxu1  ;;  %v7748_v51 = vpop.f32.mrb[2].mxu0  ;;  %8048 = vmatpush3.bf16.msra.mxu0 %v8844_v62  ;;  %v8873_v40 = vld [vmem:[%s11402_s1 + $0x8d8] sm:$0xff]   ;;  %v8885_v62 = vld [vmem:[%s11402_s1 + $0x8f0] sm:$0xff]  }
  0xf9   :  { %v7769_v50 = vadd.f32 %v7768_v48, %v7767_v42  ;;  %v7770_v54 = vpop.f32.mrb[2].mxu1  ;;  %v7749_v58 = vpop.f32.mrb[3].mxu0  ;;  %8070 = vmatpush3.bf16.msra.mxu1 %v8845_v63  ;;  %8049 = vmatprep.subr.bf16.mxu0 %v8846_v0  ;;  %v8886_v63 = vld [vmem:[%s11402_s1 + $0x830] sm:$0xff]  }
  0xfa   :  { %v5608_v56 = vadd.f32 %v7747_v47, %v7143_v55  ;;  %v7771_v60 = vpop.f32.mrb[3].mxu1  ;;  %8071 = vmatprep.subr.bf16.mxu1 %v8847_v1  ;;  %v8875_v47 = vld [vmem:[%s11402_s1 + $0x898] sm:$0xff]   ;;  %v8878_v55 = vld [vmem:[%s11402_s1 + $0x820] sm:$0xff]   ;;  %v8881_v58 = vld [vmem:[%s11402_s1 + $0x8e8] sm:$0xff]  }
  0xfb   :  { %v8883_v60 = vld [vmem:[%s11402_s1 + $0x8a8] sm:$0xff]   ;;  %v8887_v0 = vld [vmem:[%s11402_s1 + $0x8b0] sm:$0xff]   ;;  %v8888_v1 = vld [vmem:[%s11402_s1 + $0x878] sm:$0xff]  }
  0xfc   :  { %v10163_v61 = vadd.f32 %v7769_v50, %v5608_v56  ;;  %8050 = vmatpush3.bf16.msra.mxu0 %v8848_v2  ;;  %v8876_v50 = vld [vmem:[%s11402_s1 + $0x860] sm:$0xff]   ;;  %v8889_v2 = vld [vmem:[%s11402_s1 + $0x8f8] sm:$0xff]  }
  0xfd   :  { %8072 = vmatpush3.bf16.msra.mxu1 %v8849_v3  ;;  %8051 = vmatprep.subr.bf16.mxu0 %v8850_v4  ;;  %v8879_v56 = vld [vmem:[%s11402_s1 + $0x8a0] sm:$0xff]   ;;  %v8890_v3 = vld [vmem:[%s11402_s1 + $0x838] sm:$0xff]  }
  0xfe   :  { %8073 = vmatprep.subr.bf16.mxu1 %v8851_v5  ;;  %v8891_v4 = vld [vmem:[%s11402_s1 + $0x8b8] sm:$0xff]   ;;  %v8892_v5 = vld [vmem:[%s11401_s0 + $0x40] ss:$144 sps:$4 sm:$0xff]  }
  0xff   :  { %v464_v9 = vrot.slane %v8892_v5, %v9422_v43  ;;  %v8935_v5 = vld [vmem:[%s11401_s0 + $0x16c] ss:$144 sps:$4 sm:$0xff]  }
 0x100   :  { %8052 = vmatpush3.bf16.msra.mxu0 %v8852_v6  ;;  %v8894_v6 = vld [vmem:[%s11401_s0 + $0x160] ss:$144 sps:$4 sm:$0xff]  }
 0x101   :  { %8074 = vmatpush3.bf16.msra.mxu1 %v8853_v7  ;;  %8081 = vmatprep.subr.bf16.mxu0 %v8860_v13  ;;  %v8896_v7 = vld [vmem:[%s11401_s0 + $0x44] ss:$144 sps:$4 sm:$0xff]   ;;  %v478_v10 = vrot.slane %v8894_v6, %v9422_v43  ;;  %v485_v13 = vrot.slane %v8897_v8, %v9422_v43 }
 0x102   :  { %8103 = vmatprep.subr.bf16.mxu1 %v8861_v17  ;;  %v471_v12 = vrot.slane %v8896_v7, %v9422_v43  ;;  %v8900_v17 = vld [vmem:[%s11402_s1 + $0x900] sm:$0xff]  }
 0x103   :  { %6166 = vmatmul.mubr.bf16.vlgmr.msra.gmra.mrb[28].mxu0 %v914_v26  ;;  %v487_v15 = vcombine.high %v464_v9, %v478_v10  ;;  %v486_v16 = vcombine.low %v464_v9, %v478_v10  ;;  %v8903_v26 = vld [vmem:[%s11402_s1 + $0x9c8] sm:$0xff]   ;;  %v8936_v9 = vld [vmem:[%s11402_s1 + $0xa40] sm:$0xff]   ;;  %v521_v10 = vrot.slane %v8935_v5, %v9422_v43 }
 0x104   :  { %6206 = vmatmul.mubr.bf16.vlgmr.msra.gmra.mrb[28].mxu1 %v916_v27  ;;  %8082 = vmatpush3.bf16.msra.mxu0 %v8862_v22  ;;  %v489_v18 = vcombine.high %v471_v12, %v485_v13  ;;  %v488_v19 = vcombine.low %v471_v12, %v485_v13  ;;  %v8904_v27 = vld [vmem:[%s11402_s1 + $0x908] sm:$0xff]  }
 0x105   :  { %8104 = vmatpush3.bf16.msra.mxu1 %v8863_v23  ;;  %8083 = vmatprep.subr.bf16.mxu0 %v8864_v28  ;;  %v919_v21 = vpack.c.bf16 %v487_v15, %v487_v15  ;;  %v918_v22 = vpack.c.bf16 %v486_v16, %v486_v16  ;;  %v8902_v23 = vld [vmem:[%s11402_s1 + $0x948] sm:$0xff]  }
 0x106   :  { %8105 = vmatprep.subr.bf16.mxu1 %v8865_v29  ;;  %v921_v24 = vpack.c.bf16 %v489_v18, %v489_v18  ;;  %v920_v25 = vpack.c.bf16 %v488_v19, %v488_v19  ;;  %v8905_v28 = vld [vmem:[%s11402_s1 + $0x988] sm:$0xff]   ;;  %v8906_v29 = vld [vmem:[%s11402_s1 + $0x950] sm:$0xff]  }
 0x107   :  { %6245 = vmatprep.mubr.bf16.mxu0 %v919_v21 }
 0x108   :  { %8084 = vmatpush3.bf16.msra.mxu0 %v8866_v30  ;;  %6285 = vmatprep.mubr.bf16.mxu1 %v921_v24  ;;  %v8907_v30 = vld [vmem:[%s11402_s1 + $0x9d0] sm:$0xff]   ;;  %v8942_v24 = vld [vmem:[%s11402_s1 + $0xa08] sm:$0xff]  }
 0x109   :  { %8106 = vmatpush3.bf16.msra.mxu1 %v8867_v31  ;;  %8085 = vmatprep.subr.bf16.mxu0 %v8868_v32  ;;  %v8908_v31 = vld [vmem:[%s11402_s1 + $0x910] sm:$0xff]  }
 0x10a   :  { %8107 = vmatprep.subr.bf16.mxu1 %v8869_v33  ;;  %v8909_v33 = vld [vmem:[%s11402_s1 + $0x990] sm:$0xff]  }
 0x10c   :  { %8086 = vmatpush3.bf16.msra.mxu0 %v8870_v34 }
 0x10d   :  { %8108 = vmatpush3.bf16.msra.mxu1 %v8871_v36  ;;  %8087 = vmatprep.subr.bf16.mxu0 %v8872_v38 }
 0x10e   :  { %8109 = vmatprep.subr.bf16.mxu1 %v8873_v40  ;;  %v8912_v40 = vld [vmem:[%s11402_s1 + $0x918] sm:$0xff]  }
 0x110   :  { %8088 = vmatpush3.bf16.msra.mxu0 %v8874_v44  ;;  %v8913_v44 = vld [vmem:[%s11402_s1 + $0x998] sm:$0xff]  }
 0x111   :  { %8110 = vmatpush3.bf16.msra.mxu1 %v8875_v47  ;;  %8089 = vmatprep.subr.bf16.mxu0 %v8876_v50  ;;  %v8914_v47 = vld [vmem:[%s11402_s1 + $0x960] sm:$0xff]  }
 0x112   :  { %8111 = vmatprep.subr.bf16.mxu1 %v8877_v52  ;;  %v8916_v52 = vld [vmem:[%s11402_s1 + $0x920] sm:$0xff]  }
 0x114   :  { %8090 = vmatpush3.bf16.msra.mxu0 %v8878_v55  ;;  %v8919_v55 = vld [vmem:[%s11402_s1 + $0x9e8] sm:$0xff]  }
 0x115   :  { %8112 = vmatpush3.bf16.msra.mxu1 %v8879_v56  ;;  %8091 = vmatprep.subr.bf16.mxu0 %v8880_v57  ;;  %v8920_v56 = vld [vmem:[%s11402_s1 + $0x928] sm:$0xff]  }
 0x116   :  { %v7789_v35 = vpop.f32.mrb[4].mxu0  ;;  %8113 = vmatprep.subr.bf16.mxu1 %v8881_v58  ;;  %v8921_v57 = vld [vmem:[%s11402_s1 + $0x9a8] sm:$0xff]   ;;  %v8922_v58 = vld [vmem:[%s11402_s1 + $0x970] sm:$0xff]  }
 0x117   :  { %v7811_v37 = vpop.f32.mrb[4].mxu1  ;;  %v7790_v39 = vpop.f32.mrb[5].mxu0 }
 0x118   :  { %v7791_v41 = vadd.f32 %v7790_v39, %v7789_v35  ;;  %v7812_v42 = vpop.f32.mrb[5].mxu1  ;;  %v7792_v46 = vpop.f32.mrb[6].mxu0  ;;  %8092 = vmatpush3.bf16.msra.mxu0 %v8882_v59  ;;  %v8910_v35 = vld [vmem:[%s11402_s1 + $0x958] sm:$0xff]   ;;  %v8923_v59 = vld [vmem:[%s11402_s1 + $0x9f0] sm:$0xff]  }
 0x119   :  { %v7813_v45 = vadd.f32 %v7812_v42, %v7811_v37  ;;  %v7814_v49 = vpop.f32.mrb[6].mxu1  ;;  %v7793_v51 = vpop.f32.mrb[7].mxu0  ;;  %8114 = vmatpush3.bf16.msra.mxu1 %v8883_v60  ;;  %v8911_v37 = vld [vmem:[%s11402_s1 + $0x9d8] sm:$0xff]   ;;  %v8924_v60 = vld [vmem:[%s11402_s1 + $0x930] sm:$0xff]  }
 0x11a   :  { %v5688_v48 = vadd.f32 %v7791_v41, %v10163_v61  ;;  %v7815_v54 = vpop.f32.mrb[7].mxu1  ;;  %v8884_v61 = vld [vmem:[%s11402_s1 + $0x870] sm:$0xff]   ;;  %8115 = vmatprep.subr.bf16.mxu1 %v8885_v62  ;;  %v8915_v49 = vld [vmem:[%s11402_s1 + $0x9e0] sm:$0xff]   ;;  %v8926_v62 = vld [vmem:[%s11402_s1 + $0x978] sm:$0xff]  }
 0x11b   :  { %8093 = vmatprep.subr.bf16.mxu0 %v8884_v61  ;;  %v8918_v54 = vld [vmem:[%s11402_s1 + $0x968] sm:$0xff]   ;;  %v8925_v61 = vld [vmem:[%s11402_s1 + $0x9b0] sm:$0xff]  }
 0x11c   :  { %v10266_v53 = vadd.f32 %v7813_v45, %v5688_v48  ;;  %8094 = vmatpush3.bf16.msra.mxu0 %v8886_v63  ;;  %v8927_v63 = vld [vmem:[%s11402_s1 + $0x9f8] sm:$0xff]  }
 0x11d   :  { %8116 = vmatpush3.bf16.msra.mxu1 %v8887_v0  ;;  %8095 = vmatprep.subr.bf16.mxu0 %v8888_v1  ;;  %v8928_v0 = vld [vmem:[%s11402_s1 + $0x938] sm:$0xff]  }
 0x11e   :  { %8117 = vmatprep.subr.bf16.mxu1 %v8889_v2  ;;  %v8929_v1 = vld [vmem:[%s11402_s1 + $0x9b8] sm:$0xff]  }
 0x11f   :  { %v8930_v2 = vld [vmem:[%s11401_s0 + $0x48] ss:$144 sps:$4 sm:$0xff]  }
 0x120   :  { %8096 = vmatpush3.bf16.msra.mxu0 %v8890_v3  ;;  %v8932_v3 = vld [vmem:[%s11401_s0 + $0x168] ss:$144 sps:$4 sm:$0xff]   ;;  %v500_v6 = vrot.slane %v8930_v2, %v9422_v43  ;;  %v8973_v2 = vld [vmem:[%s11401_s0 + $0x174] ss:$144 sps:$4 sm:$0xff]  }
 0x121   :  { %8118 = vmatpush3.bf16.msra.mxu1 %v8891_v4  ;;  %8125 = vmatprep.subr.bf16.mxu0 %v8898_v11  ;;  %v8934_v4 = vld [vmem:[%s11401_s0 + $0x4c] ss:$144 sps:$4 sm:$0xff]   ;;  %v514_v7 = vrot.slane %v8932_v3, %v9422_v43  ;;  %v8937_v11 = vld [vmem:[%s11402_s1 + $0xac0] sm:$0xff]  }
 0x122   :  { %8147 = vmatprep.subr.bf16.mxu1 %v8899_v14  ;;  %v507_v8 = vrot.slane %v8934_v4, %v9422_v43  ;;  %v8938_v14 = vld [vmem:[%s11402_s1 + $0xa00] sm:$0xff]  }
 0x123   :  { %6246 = vmatmul.mubr.bf16.vlgmr.msra.gmra.mrb[32].mxu0 %v918_v22  ;;  %v523_v12 = vcombine.high %v500_v6, %v514_v7  ;;  %v522_v13 = vcombine.low %v500_v6, %v514_v7  ;;  %v8974_v4 = vld [vmem:[%s11402_s1 + $0xb40] sm:$0xff]   ;;  %v557_v7 = vrot.slane %v8973_v2, %v9422_v43 }
 0x124   :  { %6286 = vmatmul.mubr.bf16.vlgmr.msra.gmra.mrb[32].mxu1 %v920_v25  ;;  %8126 = vmatpush3.bf16.msra.mxu0 %v8900_v17  ;;  %v525_v15 = vcombine.high %v507_v8, %v521_v10  ;;  %v524_v16 = vcombine.low %v507_v8, %v521_v10  ;;  %v8939_v17 = vld [vmem:[%s11402_s1 + $0xa80] sm:$0xff]   ;;  %v8943_v25 = vld [vmem:[%s11402_s1 + $0xa88] sm:$0xff]  }
 0x125   :  { %8148 = vmatpush3.bf16.msra.mxu1 %v8901_v20  ;;  %8127 = vmatprep.subr.bf16.mxu0 %v8902_v23  ;;  %v923_v18 = vpack.c.bf16 %v523_v12, %v523_v12  ;;  %v922_v19 = vpack.c.bf16 %v522_v13, %v522_v13  ;;  %v8940_v20 = vld [vmem:[%s11402_s1 + $0xa48] sm:$0xff]   ;;  %v8975_v8 = vld [vmem:[%s11402_s1 + $0xbc0] sm:$0xff]  }
 0x126   :  { %8149 = vmatprep.subr.bf16.mxu1 %v8903_v26  ;;  %v925_v21 = vpack.c.bf16 %v525_v15, %v525_v15  ;;  %v924_v22 = vpack.c.bf16 %v524_v16, %v524_v16  ;;  %v8941_v23 = vld [vmem:[%s11402_s1 + $0xac8] sm:$0xff]   ;;  %v8944_v26 = vld [vmem:[%s11402_s1 + $0xa50] sm:$0xff]   ;;  %v8976_v13 = vld [vmem:[%s11402_s1 + $0xb00] sm:$0xff]  }
 0x127   :  { %6325 = vmatprep.mubr.bf16.mxu0 %v923_v18  ;;  %v9012_v2 = vld [vmem:[%s11402_s1 + $0xc40] sm:$0xff]  }
 0x128   :  { %8128 = vmatpush3.bf16.msra.mxu0 %v8904_v27  ;;  %6365 = vmatprep.mubr.bf16.mxu1 %v925_v21  ;;  %v8945_v27 = vld [vmem:[%s11402_s1 + $0xad0] sm:$0xff]   ;;  %v8980_v21 = vld [vmem:[%s11402_s1 + $0xb08] sm:$0xff]  }
 0x129   :  { %8150 = vmatpush3.bf16.msra.mxu1 %v8905_v28  ;;  %8129 = vmatprep.subr.bf16.mxu0 %v8906_v29  ;;  %v8946_v28 = vld [vmem:[%s11402_s1 + $0xa10] sm:$0xff]  }
 0x12a   :  { %8151 = vmatprep.subr.bf16.mxu1 %v8907_v30  ;;  %v8947_v30 = vld [vmem:[%s11402_s1 + $0xa90] sm:$0xff]  }
 0x12c   :  { %8130 = vmatpush3.bf16.msra.mxu0 %v8908_v31 }
 0x12d   :  { %8152 = vmatpush3.bf16.msra.mxu1 %v8909_v33  ;;  %8131 = vmatprep.subr.bf16.mxu0 %v8910_v35 }
 0x12e   :  { %8153 = vmatprep.subr.bf16.mxu1 %v8911_v37  ;;  %v8950_v37 = vld [vmem:[%s11402_s1 + $0xa18] sm:$0xff]  }
 0x130   :  { %8132 = vmatpush3.bf16.msra.mxu0 %v8912_v40  ;;  %v8951_v40 = vld [vmem:[%s11402_s1 + $0xa98] sm:$0xff]  }
 0x131   :  { %8154 = vmatpush3.bf16.msra.mxu1 %v8913_v44  ;;  %8133 = vmatprep.subr.bf16.mxu0 %v8914_v47  ;;  %v8952_v44 = vld [vmem:[%s11402_s1 + $0xa60] sm:$0xff]  }
 0x132   :  { %8155 = vmatprep.subr.bf16.mxu1 %v8915_v49  ;;  %v8954_v49 = vld [vmem:[%s11402_s1 + $0xa20] sm:$0xff]  }
 0x134   :  { %8134 = vmatpush3.bf16.msra.mxu0 %v8916_v52  ;;  %v8957_v52 = vld [vmem:[%s11402_s1 + $0xae8] sm:$0xff]  }
 0x135   :  { %8135 = vmatprep.subr.bf16.mxu0 %v8918_v54  ;;  %v8959_v54 = vld [vmem:[%s11402_s1 + $0xaa8] sm:$0xff]  }
 0x136   :  { %v7833_v32 = vpop.f32.mrb[8].mxu0 }
 0x137   :  { %v7855_v34 = vpop.f32.mrb[8].mxu1  ;;  %v7834_v36 = vpop.f32.mrb[9].mxu0 }
 0x138   :  { %v7835_v38 = vadd.f32 %v7834_v36, %v7833_v32  ;;  %v7856_v39 = vpop.f32.mrb[9].mxu1  ;;  %v7836_v42 = vpop.f32.mrb[10].mxu0  ;;  %8136 = vmatpush3.bf16.msra.mxu0 %v8920_v56  ;;  %v8948_v32 = vld [vmem:[%s11402_s1 + $0xa58] sm:$0xff]   ;;  %v8961_v56 = vld [vmem:[%s11402_s1 + $0xaf0] sm:$0xff]  }
 0x139   :  { %v7857_v41 = vadd.f32 %v7856_v39, %v7855_v34  ;;  %v7858_v46 = vpop.f32.mrb[10].mxu1  ;;  %v7837_v48 = vpop.f32.mrb[11].mxu0  ;;  %8137 = vmatprep.subr.bf16.mxu0 %v8922_v58  ;;  %v8949_v34 = vld [vmem:[%s11402_s1 + $0xad8] sm:$0xff]   ;;  %v8963_v58 = vld [vmem:[%s11402_s1 + $0xab0] sm:$0xff]  }
 0x13a   :  { %v5768_v45 = vadd.f32 %v7835_v38, %v10266_v53  ;;  %v7859_v51 = vpop.f32.mrb[11].mxu1  ;;  %v8917_v53 = vld [vmem:[%s11402_s1 + $0x9a0] sm:$0xff]  }
 0x13b   :  { %8156 = vmatpush3.bf16.msra.mxu1 %v8917_v53  ;;  %v8953_v46 = vld [vmem:[%s11402_s1 + $0xae0] sm:$0xff]   ;;  %v8956_v51 = vld [vmem:[%s11402_s1 + $0xa68] sm:$0xff]  }
 0x13c   :  { %v10381_v50 = vadd.f32 %v7857_v41, %v5768_v45  ;;  %8157 = vmatprep.subr.bf16.mxu1 %v8919_v55  ;;  %8138 = vmatpush3.bf16.msra.mxu0 %v8924_v60  ;;  %v8958_v53 = vld [vmem:[%s11402_s1 + $0xa28] sm:$0xff]   ;;  %v8960_v55 = vld [vmem:[%s11402_s1 + $0xa70] sm:$0xff]   ;;  %v8965_v60 = vld [vmem:[%s11402_s1 + $0xaf8] sm:$0xff]  }
 0x13d   :  { %8139 = vmatprep.subr.bf16.mxu0 %v8926_v62  ;;  %v8967_v62 = vld [vmem:[%s11402_s1 + $0xab8] sm:$0xff]  }
 0x13f   :  { %8158 = vmatpush3.bf16.msra.mxu1 %v8921_v57  ;;  %v8962_v57 = vld [vmem:[%s11402_s1 + $0xa30] sm:$0xff]  }
 0x140   :  { %8159 = vmatprep.subr.bf16.mxu1 %v8923_v59  ;;  %8140 = vmatpush3.bf16.msra.mxu0 %v8928_v0  ;;  %v8964_v59 = vld [vmem:[%s11402_s1 + $0xa78] sm:$0xff]   ;;  %v8970_v0 = vld [vmem:[%s11401_s0 + $0x170] ss:$144 sps:$4 sm:$0xff]  }
 0x141   :  { %8169 = vmatprep.subr.bf16.mxu0 %v8936_v9  ;;  %v550_v5 = vrot.slane %v8970_v0, %v9422_v43 }
 0x143   :  { %8160 = vmatpush3.bf16.msra.mxu1 %v8925_v61  ;;  %6326 = vmatmul.mubr.bf16.vlgmr.msra.gmra.mrb[36].mxu0 %v922_v19  ;;  %v8966_v61 = vld [vmem:[%s11402_s1 + $0xa38] sm:$0xff]   ;;  %v8978_v19 = vld [vmem:[%s11402_s1 + $0xb48] sm:$0xff]  }
 0x144   :  { %8161 = vmatprep.subr.bf16.mxu1 %v8927_v63  ;;  %8170 = vmatpush3.bf16.msra.mxu0 %v8938_v14  ;;  %v8968_v63 = vld [vmem:[%s11401_s0 + $0x50] ss:$144 sps:$4 sm:$0xff]  }
 0x145   :  { %8171 = vmatprep.subr.bf16.mxu0 %v8940_v20  ;;  %v536_v3 = vrot.slane %v8968_v63, %v9422_v43  ;;  %v8977_v14 = vld [vmem:[%s11402_s1 + $0xb80] sm:$0xff]   ;;  %v8979_v20 = vld [vmem:[%s11402_s1 + $0xbc8] sm:$0xff]  }
 0x146   :  { %v9011_v63 = vld [vmem:[%s11401_s0 + $0x17c] ss:$144 sps:$4 sm:$0xff]  }
 0x147   :  { %8162 = vmatpush3.bf16.msra.mxu1 %v8929_v1  ;;  %v8972_v1 = vld [vmem:[%s11401_s0 + $0x54] ss:$144 sps:$4 sm:$0xff]   ;;  %v559_v9 = vcombine.high %v536_v3, %v550_v5 }
 0x148   :  { %8191 = vmatprep.subr.bf16.mxu1 %v8937_v11  ;;  %8172 = vmatpush3.bf16.msra.mxu0 %v8942_v24  ;;  %v543_v6 = vrot.slane %v8972_v1, %v9422_v43  ;;  %v558_v11 = vcombine.low %v536_v3, %v550_v5  ;;  %v8983_v24 = vld [vmem:[%s11402_s1 + $0xbd0] sm:$0xff]   ;;  %v9013_v5 = vld [vmem:[%s11402_s1 + $0xcc0] sm:$0xff]  }
 0x149   :  { %8173 = vmatprep.subr.bf16.mxu0 %v8944_v26  ;;  %v927_v15 = vpack.c.bf16 %v559_v9, %v559_v9  ;;  %v8984_v26 = vld [vmem:[%s11402_s1 + $0xb10] sm:$0xff]  }
 0x14a   :  { %6366 = vmatmul.mubr.bf16.vlgmr.msra.gmra.mrb[36].mxu1 %v924_v22  ;;  %v561_v10 = vcombine.high %v543_v6, %v557_v7  ;;  %v560_v12 = vcombine.low %v543_v6, %v557_v7  ;;  %v8981_v22 = vld [vmem:[%s11402_s1 + $0xb88] sm:$0xff]  }
 0x14b   :  { %8192 = vmatpush3.bf16.msra.mxu1 %v8939_v17  ;;  %v926_v17 = vpack.c.bf16 %v558_v11, %v558_v11  ;;  %6405 = vmatprep.mubr.bf16.mxu0 %v927_v15  ;;  %v9015_v11 = vld [vmem:[%s11402_s1 + $0xc80] sm:$0xff]  }
 0x14c   :  { %8193 = vmatprep.subr.bf16.mxu1 %v8941_v23  ;;  %8174 = vmatpush3.bf16.msra.mxu0 %v8946_v28  ;;  %v929_v16 = vpack.c.bf16 %v561_v10, %v561_v10  ;;  %v928_v18 = vpack.c.bf16 %v560_v12, %v560_v12  ;;  %v8982_v23 = vld [vmem:[%s11402_s1 + $0xb50] sm:$0xff]  }
 0x14d   :  { %8175 = vmatprep.subr.bf16.mxu0 %v8948_v32  ;;  %v8985_v28 = vld [vmem:[%s11402_s1 + $0xb90] sm:$0xff]  }
 0x14e   :  { %6445 = vmatprep.mubr.bf16.mxu1 %v929_v16 }
 0x14f   :  { %8194 = vmatpush3.bf16.msra.mxu1 %v8943_v25 }
 0x150   :  { %8195 = vmatprep.subr.bf16.mxu1 %v8945_v27  ;;  %8176 = vmatpush3.bf16.msra.mxu0 %v8950_v37 }
 0x151   :  { %8177 = vmatprep.subr.bf16.mxu0 %v8952_v44 }
 0x153   :  { %8196 = vmatpush3.bf16.msra.mxu1 %v8947_v30  ;;  %v8986_v30 = vld [vmem:[%s11402_s1 + $0xb58] sm:$0xff]  }
 0x154   :  { %8197 = vmatprep.subr.bf16.mxu1 %v8949_v34  ;;  %8178 = vmatpush3.bf16.msra.mxu0 %v8954_v49  ;;  %v8995_v49 = vld [vmem:[%s11402_s1 + $0xbe8] sm:$0xff]  }
 0x155   :  { %8179 = vmatprep.subr.bf16.mxu0 %v8956_v51  ;;  %v8997_v51 = vld [vmem:[%s11402_s1 + $0xba8] sm:$0xff]  }
 0x156   :  { %v7877_v29 = vpop.f32.mrb[12].mxu0 }
 0x157   :  { %v7899_v31 = vpop.f32.mrb[12].mxu1  ;;  %v7878_v33 = vpop.f32.mrb[13].mxu0  ;;  %8198 = vmatpush3.bf16.msra.mxu1 %v8951_v40 }
 0x158   :  { %v7879_v35 = vadd.f32 %v7878_v33, %v7877_v29  ;;  %v7900_v36 = vpop.f32.mrb[13].mxu1  ;;  %v7880_v39 = vpop.f32.mrb[14].mxu0  ;;  %8199 = vmatprep.subr.bf16.mxu1 %v8953_v46  ;;  %8180 = vmatpush3.bf16.msra.mxu0 %v8958_v53  ;;  %v8987_v33 = vld [vmem:[%s11402_s1 + $0xbd8] sm:$0xff]   ;;  %v8992_v46 = vld [vmem:[%s11402_s1 + $0xb20] sm:$0xff]   ;;  %v8999_v53 = vld [vmem:[%s11402_s1 + $0xbf0] sm:$0xff]  }
 0x159   :  { %v7901_v38 = vadd.f32 %v7900_v36, %v7899_v31  ;;  %v7902_v42 = vpop.f32.mrb[14].mxu1  ;;  %v7881_v45 = vpop.f32.mrb[15].mxu0  ;;  %8181 = vmatprep.subr.bf16.mxu0 %v8960_v55  ;;  %v8988_v36 = vld [vmem:[%s11402_s1 + $0xb18] sm:$0xff]   ;;  %v9001_v55 = vld [vmem:[%s11402_s1 + $0xbb0] sm:$0xff]  }
 0x15a   :  { %v5848_v41 = vadd.f32 %v7879_v35, %v10381_v50  ;;  %v7903_v48 = vpop.f32.mrb[15].mxu1  ;;  %v8955_v50 = vld [vmem:[%s11402_s1 + $0xaa0] sm:$0xff]   ;;  %v8989_v39 = vld [vmem:[%s11402_s1 + $0xb98] sm:$0xff]  }
 0x15b   :  { %8200 = vmatpush3.bf16.msra.mxu1 %v8955_v50  ;;  %v8991_v45 = vld [vmem:[%s11402_s1 + $0xbe0] sm:$0xff]   ;;  %v8994_v48 = vld [vmem:[%s11402_s1 + $0xb68] sm:$0xff]  }
 0x15c   :  { %v10496_v47 = vadd.f32 %v7901_v38, %v5848_v41  ;;  %8201 = vmatprep.subr.bf16.mxu1 %v8957_v52  ;;  %8182 = vmatpush3.bf16.msra.mxu0 %v8962_v57  ;;  %v8990_v41 = vld [vmem:[%s11402_s1 + $0xb60] sm:$0xff]   ;;  %v8996_v50 = vld [vmem:[%s11402_s1 + $0xb28] sm:$0xff]   ;;  %v8998_v52 = vld [vmem:[%s11402_s1 + $0xb70] sm:$0xff]  }
 0x15d   :  { %8183 = vmatprep.subr.bf16.mxu0 %v8964_v59  ;;  %v9003_v57 = vld [vmem:[%s11402_s1 + $0xbf8] sm:$0xff]  }
 0x15e   :  { %v9005_v59 = vld [vmem:[%s11402_s1 + $0xbb8] sm:$0xff]  }
 0x15f   :  { %8202 = vmatpush3.bf16.msra.mxu1 %v8959_v54  ;;  %v9000_v54 = vld [vmem:[%s11402_s1 + $0xb30] sm:$0xff]  }
 0x160   :  { %8203 = vmatprep.subr.bf16.mxu1 %v8961_v56  ;;  %8184 = vmatpush3.bf16.msra.mxu0 %v8966_v61  ;;  %v9002_v56 = vld [vmem:[%s11402_s1 + $0xb78] sm:$0xff]  }
 0x161   :  { %8213 = vmatprep.subr.bf16.mxu0 %v8974_v4  ;;  %v9008_v61 = vld [vmem:[%s11401_s0 + $0x178] ss:$144 sps:$4 sm:$0xff]   ;;  %v593_v4 = vrot.slane %v9011_v63, %v9422_v43 }
 0x162   :  { %v586_v1 = vrot.slane %v9008_v61, %v9422_v43 }
 0x163   :  { %8204 = vmatpush3.bf16.msra.mxu1 %v8963_v58  ;;  %6406 = vmatmul.mubr.bf16.vlgmr.msra.gmra.mrb[40].mxu0 %v926_v17  ;;  %v9004_v58 = vld [vmem:[%s11402_s1 + $0xb38] sm:$0xff]   ;;  %v9017_v17 = vld [vmem:[%s11402_s1 + $0xcc8] sm:$0xff]  }
 0x164   :  { %8205 = vmatprep.subr.bf16.mxu1 %v8965_v60  ;;  %8214 = vmatpush3.bf16.msra.mxu0 %v8976_v13  ;;  %v9006_v60 = vld [vmem:[%s11401_s0 + $0x58] ss:$144 sps:$4 sm:$0xff]  }
 0x165   :  { %8215 = vmatprep.subr.bf16.mxu0 %v8978_v19  ;;  %v572_v0 = vrot.slane %v9006_v60, %v9422_v43  ;;  %v9019_v19 = vld [vmem:[%s11402_s1 + $0xc88] sm:$0xff]   ;;  %v9049_v60 = vld [vmem:[%s11401_s0 + $0x184] ss:$144 sps:$4 sm:$0xff]  }
 0x167   :  { %8206 = vmatpush3.bf16.msra.mxu1 %v8967_v62  ;;  %v9010_v62 = vld [vmem:[%s11401_s0 + $0x5c] ss:$144 sps:$4 sm:$0xff]   ;;  %v595_v6 = vcombine.high %v572_v0, %v586_v1  ;;  %v594_v7 = vcombine.low %v572_v0, %v586_v1  ;;  %v9050_v0 = vld [vmem:[%s11402_s1 + $0xd40] sm:$0xff]   ;;  %v629_v1 = vrot.slane %v9049_v60, %v9422_v43 }
 0x168   :  { %8235 = vmatprep.subr.bf16.mxu1 %v8975_v8  ;;  %8216 = vmatpush3.bf16.msra.mxu0 %v8980_v21  ;;  %v579_v3 = vrot.slane %v9010_v62, %v9422_v43  ;;  %v9014_v8 = vld [vmem:[%s11402_s1 + $0xc00] sm:$0xff]   ;;  %v9021_v21 = vld [vmem:[%s11402_s1 + $0xcd0] sm:$0xff]  }
 0x169   :  { %8217 = vmatprep.subr.bf16.mxu0 %v8982_v23  ;;  %v931_v12 = vpack.c.bf16 %v595_v6, %v595_v6  ;;  %v930_v13 = vpack.c.bf16 %v594_v7, %v594_v7 }
 0x16a   :  { %6446 = vmatmul.mubr.bf16.vlgmr.msra.gmra.mrb[40].mxu1 %v928_v18  ;;  %v597_v9 = vcombine.high %v579_v3, %v593_v4  ;;  %v596_v10 = vcombine.low %v579_v3, %v593_v4  ;;  %v9018_v18 = vld [vmem:[%s11402_s1 + $0xc08] sm:$0xff]  }
 0x16b   :  { %8236 = vmatpush3.bf16.msra.mxu1 %v8977_v14  ;;  %v9016_v14 = vld [vmem:[%s11402_s1 + $0xc48] sm:$0xff]   ;;  %6485 = vmatprep.mubr.bf16.mxu0 %v931_v12 }
 0x16c   :  { %8237 = vmatprep.subr.bf16.mxu1 %v8979_v20  ;;  %8218 = vmatpush3.bf16.msra.mxu0 %v8984_v26  ;;  %v933_v15 = vpack.c.bf16 %v597_v9, %v597_v9  ;;  %v932_v16 = vpack.c.bf16 %v596_v10, %v596_v10  ;;  %v9020_v20 = vld [vmem:[%s11402_s1 + $0xc50] sm:$0xff]   ;;  %v9024_v26 = vld [vmem:[%s11402_s1 + $0xc58] sm:$0xff]  }
 0x16d   :  { %8219 = vmatprep.subr.bf16.mxu0 %v8986_v30 }
 0x16e   :  { %6525 = vmatprep.mubr.bf16.mxu1 %v933_v15  ;;  %v9056_v15 = vld [vmem:[%s11402_s1 + $0xd08] sm:$0xff]  }
 0x16f   :  { %8238 = vmatpush3.bf16.msra.mxu1 %v8981_v22  ;;  %v9022_v22 = vld [vmem:[%s11402_s1 + $0xc10] sm:$0xff]  }
 0x170   :  { %8239 = vmatprep.subr.bf16.mxu1 %v8983_v24  ;;  %8220 = vmatpush3.bf16.msra.mxu0 %v8988_v36  ;;  %v9023_v24 = vld [vmem:[%s11402_s1 + $0xc90] sm:$0xff]  }
 0x171   :  { %8221 = vmatprep.subr.bf16.mxu0 %v8990_v41 }
 0x173   :  { %8240 = vmatpush3.bf16.msra.mxu1 %v8985_v28  ;;  %v9025_v28 = vld [vmem:[%s11402_s1 + $0xcd8] sm:$0xff]  }
 0x174   :  { %8241 = vmatprep.subr.bf16.mxu1 %v8987_v33  ;;  %8222 = vmatpush3.bf16.msra.mxu0 %v8992_v46  ;;  %v9033_v46 = vld [vmem:[%s11402_s1 + $0xce8] sm:$0xff]  }
 0x175   :  { %8223 = vmatprep.subr.bf16.mxu0 %v8994_v48  ;;  %v9035_v48 = vld [vmem:[%s11402_s1 + $0xca8] sm:$0xff]  }
 0x176   :  { %v7921_v25 = vpop.f32.mrb[16].mxu0 }
 0x177   :  { %v7943_v27 = vpop.f32.mrb[16].mxu1  ;;  %v7922_v29 = vpop.f32.mrb[17].mxu0  ;;  %8242 = vmatpush3.bf16.msra.mxu1 %v8989_v39  ;;  %v9029_v39 = vld [vmem:[%s11402_s1 + $0xce0] sm:$0xff]  }
 0x178   :  { %v7923_v31 = vadd.f32 %v7922_v29, %v7921_v25  ;;  %v7944_v32 = vpop.f32.mrb[17].mxu1  ;;  %v7924_v35 = vpop.f32.mrb[18].mxu0  ;;  %8243 = vmatprep.subr.bf16.mxu1 %v8991_v45  ;;  %8224 = vmatpush3.bf16.msra.mxu0 %v8996_v50  ;;  %v9032_v45 = vld [vmem:[%s11402_s1 + $0xc68] sm:$0xff]   ;;  %v9037_v50 = vld [vmem:[%s11402_s1 + $0xcf0] sm:$0xff]  }
 0x179   :  { %v7945_v34 = vadd.f32 %v7944_v32, %v7943_v27  ;;  %v7946_v38 = vpop.f32.mrb[18].mxu1  ;;  %v7925_v40 = vpop.f32.mrb[19].mxu0  ;;  %8225 = vmatprep.subr.bf16.mxu0 %v8998_v52  ;;  %v9039_v52 = vld [vmem:[%s11402_s1 + $0xcb0] sm:$0xff]  }
 0x17a   :  { %v5928_v37 = vadd.f32 %v7923_v31, %v10496_v47  ;;  %v7947_v44 = vpop.f32.mrb[19].mxu1  ;;  %v8993_v47 = vld [vmem:[%s11402_s1 + $0xba0] sm:$0xff]   ;;  %v9026_v31 = vld [vmem:[%s11402_s1 + $0xc18] sm:$0xff]  }
 0x17b   :  { %8244 = vmatpush3.bf16.msra.mxu1 %v8993_v47  ;;  %v9031_v44 = vld [vmem:[%s11402_s1 + $0xca0] sm:$0xff]   ;;  %v9034_v47 = vld [vmem:[%s11402_s1 + $0xc28] sm:$0xff]  }
 0x17c   :  { %v10608_v42 = vadd.f32 %v7945_v34, %v5928_v37  ;;  %8245 = vmatprep.subr.bf16.mxu1 %v8995_v49  ;;  %8226 = vmatpush3.bf16.msra.mxu0 %v9000_v54  ;;  %v9027_v34 = vld [vmem:[%s11402_s1 + $0xc98] sm:$0xff]   ;;  %v9028_v37 = vld [vmem:[%s11402_s1 + $0xc60] sm:$0xff]   ;;  %v9036_v49 = vld [vmem:[%s11402_s1 + $0xc70] sm:$0xff]  }
 0x17d   :  { %8227 = vmatprep.subr.bf16.mxu0 %v9002_v56  ;;  %v9041_v54 = vld [vmem:[%s11402_s1 + $0xcf8] sm:$0xff]  }
 0x17e   :  { %v9043_v56 = vld [vmem:[%s11402_s1 + $0xcb8] sm:$0xff]  }
 0x17f   :  { %8246 = vmatpush3.bf16.msra.mxu1 %v8997_v51  ;;  %v9038_v51 = vld [vmem:[%s11402_s1 + $0xc30] sm:$0xff]  }
 0x180   :  { %8247 = vmatprep.subr.bf16.mxu1 %v8999_v53  ;;  %8228 = vmatpush3.bf16.msra.mxu0 %v9004_v58  ;;  %v9040_v53 = vld [vmem:[%s11402_s1 + $0xc78] sm:$0xff]   ;;  %v9046_v58 = vld [vmem:[%s11401_s0 + $0x180] ss:$144 sps:$4 sm:$0xff]  }
 0x181   :  { %8257 = vmatprep.subr.bf16.mxu0 %v9012_v2  ;;  %v622_v62 = vrot.slane %v9046_v58, %v9422_v43  ;;  %v9051_v2 = vld [vmem:[%s11402_s1 + $0xdc0] sm:$0xff]  }
 0x183   :  { %8248 = vmatpush3.bf16.msra.mxu1 %v9001_v55  ;;  %6486 = vmatmul.mubr.bf16.vlgmr.msra.gmra.mrb[44].mxu0 %v930_v13  ;;  %v9042_v55 = vld [vmem:[%s11402_s1 + $0xc38] sm:$0xff]  }
 0x184   :  { %8249 = vmatprep.subr.bf16.mxu1 %v9003_v57  ;;  %8258 = vmatpush3.bf16.msra.mxu0 %v9014_v8  ;;  %v9044_v57 = vld [vmem:[%s11401_s0 + $0x60] ss:$144 sps:$4 sm:$0xff]  }
 0x185   :  { %8259 = vmatprep.subr.bf16.mxu0 %v9016_v14  ;;  %v608_v61 = vrot.slane %v9044_v57, %v9422_v43  ;;  %v9053_v8 = vld [vmem:[%s11402_s1 + $0xd80] sm:$0xff]   ;;  %v9055_v14 = vld [vmem:[%s11402_s1 + $0xdc8] sm:$0xff]  }
 0x186   :  { %v9087_v57 = vld [vmem:[%s11401_s0 + $0x18c] ss:$144 sps:$4 sm:$0xff]  }
 0x187   :  { %8250 = vmatpush3.bf16.msra.mxu1 %v9005_v59  ;;  %v9048_v59 = vld [vmem:[%s11401_s0 + $0x64] ss:$144 sps:$4 sm:$0xff]   ;;  %v631_v3 = vcombine.high %v608_v61, %v622_v62  ;;  %v630_v4 = vcombine.low %v608_v61, %v622_v62  ;;  %v665_v62 = vrot.slane %v9087_v57, %v9422_v43 }
 0x188   :  { %8279 = vmatprep.subr.bf16.mxu1 %v9013_v5  ;;  %8260 = vmatpush3.bf16.msra.mxu0 %v9018_v18  ;;  %v615_v63 = vrot.slane %v9048_v59, %v9422_v43  ;;  %v9052_v5 = vld [vmem:[%s11402_s1 + $0xd00] sm:$0xff]   ;;  %v9059_v18 = vld [vmem:[%s11402_s1 + $0xdd0] sm:$0xff]  }
 0x189   :  { %8261 = vmatprep.subr.bf16.mxu0 %v9020_v20  ;;  %v935_v9 = vpack.c.bf16 %v631_v3, %v631_v3  ;;  %v934_v10 = vpack.c.bf16 %v630_v4, %v630_v4  ;;  %v9088_v59 = vld [vmem:[%s11402_s1 + $0xe40] sm:$0xff]  }
 0x18a   :  { %6526 = vmatmul.mubr.bf16.vlgmr.msra.gmra.mrb[44].mxu1 %v932_v16  ;;  %v633_v6 = vcombine.high %v615_v63, %v629_v1  ;;  %v632_v7 = vcombine.low %v615_v63, %v629_v1  ;;  %v9057_v16 = vld [vmem:[%s11402_s1 + $0xd88] sm:$0xff]   ;;  %v9089_v63 = vld [vmem:[%s11402_s1 + $0xec0] sm:$0xff]  }
 0x18b   :  { %8280 = vmatpush3.bf16.msra.mxu1 %v9015_v11  ;;  %v9054_v11 = vld [vmem:[%s11402_s1 + $0xd48] sm:$0xff]   ;;  %6565 = vmatprep.mubr.bf16.mxu0 %v935_v9  ;;  %v9090_v4 = vld [vmem:[%s11402_s1 + $0xe00] sm:$0xff]  }
 0x18c   :  { %8281 = vmatprep.subr.bf16.mxu1 %v9017_v17  ;;  %8262 = vmatpush3.bf16.msra.mxu0 %v9022_v22  ;;  %v937_v12 = vpack.c.bf16 %v633_v6, %v633_v6  ;;  %v936_v13 = vpack.c.bf16 %v632_v7, %v632_v7  ;;  %v9058_v17 = vld [vmem:[%s11402_s1 + $0xd50] sm:$0xff]   ;;  %v9126_v57 = vld [vmem:[%s11402_s1 + $0xf40] sm:$0xff]  }
 0x18d   :  { %8263 = vmatprep.subr.bf16.mxu0 %v9024_v26 }
 0x18e   :  { %6605 = vmatprep.mubr.bf16.mxu1 %v937_v12  ;;  %v9094_v12 = vld [vmem:[%s11402_s1 + $0xe08] sm:$0xff]  }
 0x18f   :  { %8282 = vmatpush3.bf16.msra.mxu1 %v9019_v19  ;;  %v9060_v19 = vld [vmem:[%s11402_s1 + $0xd10] sm:$0xff]  }
 0x190   :  { %8283 = vmatprep.subr.bf16.mxu1 %v9021_v21  ;;  %8264 = vmatpush3.bf16.msra.mxu0 %v9026_v31  ;;  %v9061_v21 = vld [vmem:[%s11402_s1 + $0xd90] sm:$0xff]   ;;  %v9065_v31 = vld [vmem:[%s11402_s1 + $0xd98] sm:$0xff]  }
 0x191   :  { %8265 = vmatprep.subr.bf16.mxu0 %v9028_v37 }
 0x193   :  { %8284 = vmatpush3.bf16.msra.mxu1 %v9023_v24 }
 0x194   :  { %8285 = vmatprep.subr.bf16.mxu1 %v9025_v28  ;;  %v9064_v28 = vld [vmem:[%s11402_s1 + $0xd18] sm:$0xff]  }
 0x196   :  { %v7965_v23 = vpop.f32.mrb[20].mxu0 }
 0x197   :  { %v7987_v25 = vpop.f32.mrb[20].mxu1  ;;  %v7966_v27 = vpop.f32.mrb[21].mxu0  ;;  %8286 = vmatpush3.bf16.msra.mxu1 %v9027_v34  ;;  %v9066_v34 = vld [vmem:[%s11402_s1 + $0xd60] sm:$0xff]  }
 0x198   :  { %v7967_v29 = vadd.f32 %v7966_v27, %v7965_v23  ;;  %v7988_v30 = vpop.f32.mrb[21].mxu1  ;;  %v7968_v33 = vpop.f32.mrb[22].mxu0  ;;  %8287 = vmatprep.subr.bf16.mxu1 %v9029_v39  ;;  %v9062_v23 = vld [vmem:[%s11402_s1 + $0xd58] sm:$0xff]   ;;  %v9068_v39 = vld [vmem:[%s11402_s1 + $0xd20] sm:$0xff]  }
 0x199   :  { %v7989_v32 = vadd.f32 %v7988_v30, %v7987_v25  ;;  %v7990_v36 = vpop.f32.mrb[22].mxu1  ;;  %v7969_v38 = vpop.f32.mrb[23].mxu0  ;;  %v9063_v25 = vld [vmem:[%s11402_s1 + $0xdd8] sm:$0xff]  }
 0x19a   :  { %v6008_v35 = vadd.f32 %v7967_v29, %v10608_v42  ;;  %v7991_v41 = vpop.f32.mrb[23].mxu1  ;;  %v9030_v42 = vld [vmem:[%s11402_s1 + $0xc20] sm:$0xff]  }
 0x19b   :  { %8266 = vmatpush3.bf16.msra.mxu0 %v9030_v42  ;;  %8288 = vmatpush3.bf16.msra.mxu1 %v9031_v44  ;;  %v9067_v36 = vld [vmem:[%s11402_s1 + $0xde0] sm:$0xff]   ;;  %v9070_v41 = vld [vmem:[%s11402_s1 + $0xd68] sm:$0xff]  }
 0x19c   :  { %v10726_v40 = vadd.f32 %v7989_v32, %v6008_v35  ;;  %8267 = vmatprep.subr.bf16.mxu0 %v9032_v45  ;;  %8289 = vmatprep.subr.bf16.mxu1 %v9033_v46  ;;  %v9071_v42 = vld [vmem:[%s11402_s1 + $0xde8] sm:$0xff]   ;;  %v9074_v46 = vld [vmem:[%s11402_s1 + $0xd70] sm:$0xff]  }
 0x19d   :  { %v9072_v44 = vld [vmem:[%s11402_s1 + $0xd28] sm:$0xff]  }
 0x19e   :  { %v9073_v45 = vld [vmem:[%s11402_s1 + $0xda8] sm:$0xff]  }
 0x19f   :  { %8268 = vmatpush3.bf16.msra.mxu0 %v9034_v47  ;;  %8290 = vmatpush3.bf16.msra.mxu1 %v9035_v48  ;;  %v9075_v47 = vld [vmem:[%s11402_s1 + $0xdf0] sm:$0xff]  }
 0x1a0   :  { %8269 = vmatprep.subr.bf16.mxu0 %v9036_v49  ;;  %8291 = vmatprep.subr.bf16.mxu1 %v9037_v50  ;;  %v9076_v48 = vld [vmem:[%s11402_s1 + $0xd30] sm:$0xff]   ;;  %v9078_v50 = vld [vmem:[%s11402_s1 + $0xd78] sm:$0xff]  }
 0x1a1   :  { %v9077_v49 = vld [vmem:[%s11402_s1 + $0xdb0] sm:$0xff]  }
 0x1a3   :  { %8270 = vmatpush3.bf16.msra.mxu0 %v9038_v51  ;;  %8292 = vmatpush3.bf16.msra.mxu1 %v9039_v52  ;;  %v9079_v51 = vld [vmem:[%s11402_s1 + $0xdf8] sm:$0xff]  }
 0x1a4   :  { %8271 = vmatprep.subr.bf16.mxu0 %v9040_v53  ;;  %8293 = vmatprep.subr.bf16.mxu1 %v9041_v54  ;;  %v9080_v52 = vld [vmem:[%s11402_s1 + $0xd38] sm:$0xff]  }
 0x1a5   :  { %v9081_v53 = vld [vmem:[%s11402_s1 + $0xdb8] sm:$0xff]  }
 0x1a6   :  { %v9082_v54 = vld [vmem:[%s11401_s0 + $0x68] ss:$144 sps:$4 sm:$0xff]  }
 0x1a7   :  { %8272 = vmatpush3.bf16.msra.mxu0 %v9042_v55  ;;  %8294 = vmatpush3.bf16.msra.mxu1 %v9043_v56  ;;  %v9084_v55 = vld [vmem:[%s11401_s0 + $0x188] ss:$144 sps:$4 sm:$0xff]   ;;  %v9086_v56 = vld [vmem:[%s11401_s0 + $0x6c] ss:$144 sps:$4 sm:$0xff]   ;;  %v644_v58 = vrot.slane %v9082_v54, %v9422_v43  ;;  %v9125_v54 = vld [vmem:[%s11401_s0 + $0x194] ss:$144 sps:$4 sm:$0xff]  }
 0x1a8   :  { %8301 = vmatprep.subr.bf16.mxu0 %v9050_v0  ;;  %8323 = vmatprep.subr.bf16.mxu1 %v9051_v2  ;;  %v658_v60 = vrot.slane %v9084_v55, %v9422_v43  ;;  %v651_v61 = vrot.slane %v9086_v56, %v9422_v43 }
 0x1aa   :  { %6566 = vmatmul.mubr.bf16.vlgmr.msra.gmra.mrb[48].mxu0 %v934_v10  ;;  %6606 = vmatmul.mubr.bf16.vlgmr.msra.gmra.mrb[48].mxu1 %v936_v13  ;;  %v667_v0 = vcombine.high %v644_v58, %v658_v60  ;;  %v669_v1 = vcombine.high %v651_v61, %v665_v62  ;;  %v666_v2 = vcombine.low %v644_v58, %v658_v60  ;;  %v9092_v10 = vld [vmem:[%s11402_s1 + $0xe48] sm:$0xff]   ;;  %v9127_v60 = vld [vmem:[%s11402_s1 + $0xfc0] sm:$0xff]  }
 0x1ab   :  { %8302 = vmatpush3.bf16.msra.mxu0 %v9052_v5  ;;  %8324 = vmatpush3.bf16.msra.mxu1 %v9053_v8  ;;  %v668_v3 = vcombine.low %v651_v61, %v665_v62  ;;  %v9091_v5 = vld [vmem:[%s11402_s1 + $0xe80] sm:$0xff]   ;;  %v9095_v13 = vld [vmem:[%s11402_s1 + $0xe88] sm:$0xff]  }
 0x1ac   :  { %8303 = vmatprep.subr.bf16.mxu0 %v9054_v11  ;;  %8325 = vmatprep.subr.bf16.mxu1 %v9055_v14  ;;  %v939_v6 = vpack.c.bf16 %v667_v0, %v667_v0  ;;  %v941_v7 = vpack.c.bf16 %v669_v1, %v669_v1  ;;  %v938_v8 = vpack.c.bf16 %v666_v2, %v666_v2  ;;  %v9093_v11 = vld [vmem:[%s11402_s1 + $0xec8] sm:$0xff]   ;;  %v9096_v14 = vld [vmem:[%s11402_s1 + $0xe50] sm:$0xff]   ;;  %v9129_v2 = vld [vmem:[%s11402_s1 + $0xf80] sm:$0xff]  }
 0x1ad   :  { %v940_v9 = vpack.c.bf16 %v668_v3, %v668_v3 }
 0x1ae   :  { %6645 = vmatprep.mubr.bf16.mxu0 %v939_v6  ;;  %6685 = vmatprep.mubr.bf16.mxu1 %v941_v7 }
 0x1af   :  { %8304 = vmatpush3.bf16.msra.mxu0 %v9056_v15  ;;  %8326 = vmatpush3.bf16.msra.mxu1 %v9057_v16  ;;  %v9097_v15 = vld [vmem:[%s11402_s1 + $0xed0] sm:$0xff]  }
 0x1b0   :  { %8305 = vmatprep.subr.bf16.mxu0 %v9058_v17  ;;  %8327 = vmatprep.subr.bf16.mxu1 %v9059_v18  ;;  %v9098_v16 = vld [vmem:[%s11402_s1 + $0xe10] sm:$0xff]  }
 0x1b1   :  { %v9099_v18 = vld [vmem:[%s11402_s1 + $0xe90] sm:$0xff]  }
 0x1b3   :  { %8306 = vmatpush3.bf16.msra.mxu0 %v9060_v19  ;;  %8328 = vmatpush3.bf16.msra.mxu1 %v9061_v21 }
 0x1b4   :  { %8307 = vmatprep.subr.bf16.mxu0 %v9062_v23  ;;  %8329 = vmatprep.subr.bf16.mxu1 %v9063_v25  ;;  %v9102_v25 = vld [vmem:[%s11402_s1 + $0xe18] sm:$0xff]  }
 0x1b6   :  { %v8009_v20 = vpop.f32.mrb[24].mxu0 }
 0x1b7   :  { %v8031_v22 = vpop.f32.mrb[24].mxu1  ;;  %v8010_v24 = vpop.f32.mrb[25].mxu0  ;;  %8308 = vmatpush3.bf16.msra.mxu0 %v9064_v28  ;;  %8330 = vmatpush3.bf16.msra.mxu1 %v9065_v31  ;;  %v9103_v28 = vld [vmem:[%s11402_s1 + $0xe98] sm:$0xff]   ;;  %v9104_v31 = vld [vmem:[%s11402_s1 + $0xe60] sm:$0xff]  }
 0x1b8   :  { %v8011_v26 = vadd.f32 %v8010_v24, %v8009_v20  ;;  %v8032_v27 = vpop.f32.mrb[25].mxu1  ;;  %v8012_v30 = vpop.f32.mrb[26].mxu0  ;;  %8309 = vmatprep.subr.bf16.mxu0 %v9066_v34  ;;  %8331 = vmatprep.subr.bf16.mxu1 %v9067_v36  ;;  %v9100_v20 = vld [vmem:[%s11402_s1 + $0xe58] sm:$0xff]   ;;  %v9106_v36 = vld [vmem:[%s11402_s1 + $0xe20] sm:$0xff]  }
 0x1b9   :  { %v8033_v29 = vadd.f32 %v8032_v27, %v8031_v22  ;;  %v8034_v33 = vpop.f32.mrb[26].mxu1  ;;  %v8013_v35 = vpop.f32.mrb[27].mxu0  ;;  %v9101_v22 = vld [vmem:[%s11402_s1 + $0xed8] sm:$0xff]  }
 0x1ba   :  { %v6088_v32 = vadd.f32 %v8011_v26, %v10726_v40  ;;  %v8035_v38 = vpop.f32.mrb[27].mxu1  ;;  %v9069_v40 = vld [vmem:[%s11402_s1 + $0xda0] sm:$0xff]  }
 0x1bb   :  { %8310 = vmatpush3.bf16.msra.mxu0 %v9068_v39  ;;  %8332 = vmatpush3.bf16.msra.mxu1 %v9069_v40  ;;  %v9105_v33 = vld [vmem:[%s11402_s1 + $0xee0] sm:$0xff]   ;;  %v9108_v38 = vld [vmem:[%s11402_s1 + $0xe68] sm:$0xff]  }
 0x1bc   :  { %v10841_v37 = vadd.f32 %v8033_v29, %v6088_v32  ;;  %8311 = vmatprep.subr.bf16.mxu0 %v9070_v41  ;;  %8333 = vmatprep.subr.bf16.mxu1 %v9071_v42  ;;  %v9109_v39 = vld [vmem:[%s11402_s1 + $0xee8] sm:$0xff]   ;;  %v9112_v42 = vld [vmem:[%s11402_s1 + $0xe70] sm:$0xff]  }
 0x1bd   :  { %v9110_v40 = vld [vmem:[%s11402_s1 + $0xe28] sm:$0xff]  }
 0x1be   :  { %v9111_v41 = vld [vmem:[%s11402_s1 + $0xea8] sm:$0xff]  }
 0x1bf   :  { %8312 = vmatpush3.bf16.msra.mxu0 %v9072_v44  ;;  %8334 = vmatpush3.bf16.msra.mxu1 %v9073_v45  ;;  %v9113_v44 = vld [vmem:[%s11402_s1 + $0xef0] sm:$0xff]  }
 0x1c0   :  { %8313 = vmatprep.subr.bf16.mxu0 %v9074_v46  ;;  %8335 = vmatprep.subr.bf16.mxu1 %v9075_v47  ;;  %v9114_v45 = vld [vmem:[%s11402_s1 + $0xe30] sm:$0xff]   ;;  %v9116_v47 = vld [vmem:[%s11402_s1 + $0xe78] sm:$0xff]  }
 0x1c1   :  { %v9115_v46 = vld [vmem:[%s11402_s1 + $0xeb0] sm:$0xff]  }
 0x1c3   :  { %8314 = vmatpush3.bf16.msra.mxu0 %v9076_v48  ;;  %8336 = vmatpush3.bf16.msra.mxu1 %v9077_v49  ;;  %v9117_v48 = vld [vmem:[%s11402_s1 + $0xef8] sm:$0xff]  }
 0x1c4   :  { %8315 = vmatprep.subr.bf16.mxu0 %v9078_v50  ;;  %8337 = vmatprep.subr.bf16.mxu1 %v9079_v51  ;;  %v9118_v49 = vld [vmem:[%s11402_s1 + $0xe38] sm:$0xff]   ;;  %v9120_v51 = vld [vmem:[%s11401_s0 + $0x70] ss:$144 sps:$4 sm:$0xff]  }
 0x1c5   :  { %v9119_v50 = vld [vmem:[%s11402_s1 + $0xeb8] sm:$0xff]   ;;  %v680_v55 = vrot.slane %v9120_v51, %v9422_v43 }
 0x1c6   :  { %v9163_v51 = vld [vmem:[%s11401_s0 + $0x19c] ss:$144 sps:$4 sm:$0xff]  }
 0x1c7   :  { %8316 = vmatpush3.bf16.msra.mxu0 %v9080_v52  ;;  %8338 = vmatpush3.bf16.msra.mxu1 %v9081_v53  ;;  %v9122_v52 = vld [vmem:[%s11401_s0 + $0x190] ss:$144 sps:$4 sm:$0xff]   ;;  %v9124_v53 = vld [vmem:[%s11401_s0 + $0x74] ss:$144 sps:$4 sm:$0xff]  }
 0x1c8   :  { %8345 = vmatprep.subr.bf16.mxu0 %v9088_v59  ;;  %8367 = vmatprep.subr.bf16.mxu1 %v9089_v63  ;;  %v694_v56 = vrot.slane %v9122_v52, %v9422_v43  ;;  %v687_v58 = vrot.slane %v9124_v53, %v9422_v43  ;;  %v701_v59 = vrot.slane %v9125_v54, %v9422_v43  ;;  %v9128_v63 = vld [vmem:[%s11402_s1 + $0xf00] sm:$0xff]  }
 0x1ca   :  { %6646 = vmatmul.mubr.bf16.vlgmr.msra.gmra.mrb[52].mxu0 %v938_v8  ;;  %6686 = vmatmul.mubr.bf16.vlgmr.msra.gmra.mrb[52].mxu1 %v940_v9  ;;  %v703_v61 = vcombine.high %v680_v55, %v694_v56  ;;  %v702_v62 = vcombine.low %v680_v55, %v694_v56  ;;  %v705_v0 = vcombine.high %v687_v58, %v701_v59  ;;  %v9131_v8 = vld [vmem:[%s11402_s1 + $0xfc8] sm:$0xff]   ;;  %v9164_v55 = vld [vmem:[%s11402_s1 + $0x1040] sm:$0xff]  }
 0x1cb   :  { %8346 = vmatpush3.bf16.msra.mxu0 %v9090_v4  ;;  %8368 = vmatpush3.bf16.msra.mxu1 %v9091_v5  ;;  %v704_v1 = vcombine.low %v687_v58, %v701_v59  ;;  %v9130_v5 = vld [vmem:[%s11402_s1 + $0xf48] sm:$0xff]   ;;  %v737_v56 = vrot.slane %v9163_v51, %v9422_v43 }
 0x1cc   :  { %8347 = vmatprep.subr.bf16.mxu0 %v9092_v10  ;;  %8369 = vmatprep.subr.bf16.mxu1 %v9093_v11  ;;  %v943_v3 = vpack.c.bf16 %v703_v61, %v703_v61  ;;  %v942_v4 = vpack.c.bf16 %v702_v62, %v702_v62  ;;  %v945_v6 = vpack.c.bf16 %v705_v0, %v705_v0  ;;  %v9132_v9 = vld [vmem:[%s11402_s1 + $0xf08] sm:$0xff]   ;;  %v9134_v11 = vld [vmem:[%s11402_s1 + $0xf50] sm:$0xff]  }
 0x1cd   :  { %v944_v7 = vpack.c.bf16 %v704_v1, %v704_v1  ;;  %v9133_v10 = vld [vmem:[%s11402_s1 + $0xf88] sm:$0xff]  }
 0x1ce   :  { %6725 = vmatprep.mubr.bf16.mxu0 %v943_v3  ;;  %6765 = vmatprep.mubr.bf16.mxu1 %v945_v6  ;;  %v9170_v6 = vld [vmem:[%s11402_s1 + $0x1008] sm:$0xff]  }
 0x1cf   :  { %8348 = vmatpush3.bf16.msra.mxu0 %v9094_v12  ;;  %8370 = vmatpush3.bf16.msra.mxu1 %v9095_v13  ;;  %v9135_v12 = vld [vmem:[%s11402_s1 + $0xfd0] sm:$0xff]  }
 0x1d0   :  { %8349 = vmatprep.subr.bf16.mxu0 %v9096_v14  ;;  %8371 = vmatprep.subr.bf16.mxu1 %v9097_v15  ;;  %v9136_v13 = vld [vmem:[%s11402_s1 + $0xf10] sm:$0xff]  }
 0x1d1   :  { %v9137_v15 = vld [vmem:[%s11402_s1 + $0xf90] sm:$0xff]  }
 0x1d3   :  { %8350 = vmatpush3.bf16.msra.mxu0 %v9098_v16  ;;  %8372 = vmatpush3.bf16.msra.mxu1 %v9099_v18 }
 0x1d4   :  { %8351 = vmatprep.subr.bf16.mxu0 %v9100_v20  ;;  %8373 = vmatprep.subr.bf16.mxu1 %v9101_v22  ;;  %v9140_v22 = vld [vmem:[%s11402_s1 + $0xf18] sm:$0xff]  }
 0x1d6   :  { %v8053_v17 = vpop.f32.mrb[28].mxu0 }
 0x1d7   :  { %v8075_v19 = vpop.f32.mrb[28].mxu1  ;;  %v8054_v21 = vpop.f32.mrb[29].mxu0  ;;  %8352 = vmatpush3.bf16.msra.mxu0 %v9102_v25  ;;  %8374 = vmatpush3.bf16.msra.mxu1 %v9103_v28  ;;  %v9141_v25 = vld [vmem:[%s11402_s1 + $0xf98] sm:$0xff]   ;;  %v9142_v28 = vld [vmem:[%s11402_s1 + $0xf60] sm:$0xff]  }
 0x1d8   :  { %v8055_v23 = vadd.f32 %v8054_v21, %v8053_v17  ;;  %v8076_v24 = vpop.f32.mrb[29].mxu1  ;;  %v8056_v27 = vpop.f32.mrb[30].mxu0  ;;  %8353 = vmatprep.subr.bf16.mxu0 %v9104_v31  ;;  %8375 = vmatprep.subr.bf16.mxu1 %v9105_v33  ;;  %v9138_v17 = vld [vmem:[%s11402_s1 + $0xf58] sm:$0xff]   ;;  %v9144_v33 = vld [vmem:[%s11402_s1 + $0xf20] sm:$0xff]  }
 0x1d9   :  { %v8077_v26 = vadd.f32 %v8076_v24, %v8075_v19  ;;  %v8078_v30 = vpop.f32.mrb[30].mxu1  ;;  %v8057_v32 = vpop.f32.mrb[31].mxu0  ;;  %v9139_v19 = vld [vmem:[%s11402_s1 + $0xfd8] sm:$0xff]  }
 0x1da   :  { %v6168_v29 = vadd.f32 %v8055_v23, %v10841_v37  ;;  %v8079_v35 = vpop.f32.mrb[31].mxu1  ;;  %v9107_v37 = vld [vmem:[%s11402_s1 + $0xea0] sm:$0xff]  }
 0x1db   :  { %8354 = vmatpush3.bf16.msra.mxu0 %v9106_v36  ;;  %8376 = vmatpush3.bf16.msra.mxu1 %v9107_v37  ;;  %v9143_v30 = vld [vmem:[%s11402_s1 + $0xfe0] sm:$0xff]   ;;  %v9146_v35 = vld [vmem:[%s11402_s1 + $0xf68] sm:$0xff]  }
 0x1dc   :  { %v10956_v34 = vadd.f32 %v8077_v26, %v6168_v29  ;;  %8355 = vmatprep.subr.bf16.mxu0 %v9108_v38  ;;  %8377 = vmatprep.subr.bf16.mxu1 %v9109_v39  ;;  %v9147_v36 = vld [vmem:[%s11402_s1 + $0xfe8] sm:$0xff]   ;;  %v9150_v39 = vld [vmem:[%s11402_s1 + $0xf70] sm:$0xff]  }
 0x1dd   :  { %v9148_v37 = vld [vmem:[%s11402_s1 + $0xf28] sm:$0xff]  }
 0x1de   :  { %v9149_v38 = vld [vmem:[%s11402_s1 + $0xfa8] sm:$0xff]  }
 0x1df   :  { %8356 = vmatpush3.bf16.msra.mxu0 %v9110_v40  ;;  %8378 = vmatpush3.bf16.msra.mxu1 %v9111_v41  ;;  %v9151_v40 = vld [vmem:[%s11402_s1 + $0xff0] sm:$0xff]  }
 0x1e0   :  { %8357 = vmatprep.subr.bf16.mxu0 %v9112_v42  ;;  %8379 = vmatprep.subr.bf16.mxu1 %v9113_v44  ;;  %v9152_v41 = vld [vmem:[%s11402_s1 + $0xf30] sm:$0xff]   ;;  %v9154_v44 = vld [vmem:[%s11402_s1 + $0xf78] sm:$0xff]  }
 0x1e1   :  { %v9153_v42 = vld [vmem:[%s11402_s1 + $0xfb0] sm:$0xff]  }
 0x1e3   :  { %8358 = vmatpush3.bf16.msra.mxu0 %v9114_v45  ;;  %8380 = vmatpush3.bf16.msra.mxu1 %v9115_v46  ;;  %v9155_v45 = vld [vmem:[%s11402_s1 + $0xff8] sm:$0xff]  }
 0x1e4   :  { %8359 = vmatprep.subr.bf16.mxu0 %v9116_v47  ;;  %8381 = vmatprep.subr.bf16.mxu1 %v9117_v48  ;;  %v9156_v46 = vld [vmem:[%s11402_s1 + $0xf38] sm:$0xff]  }
 0x1e5   :  { %v9157_v47 = vld [vmem:[%s11402_s1 + $0xfb8] sm:$0xff]  }
 0x1e6   :  { %v9158_v48 = vld [vmem:[%s11401_s0 + $0x78] ss:$144 sps:$4 sm:$0xff]  }
 0x1e7   :  { %8360 = vmatpush3.bf16.msra.mxu0 %v9118_v49  ;;  %8382 = vmatpush3.bf16.msra.mxu1 %v9119_v50  ;;  %v9160_v49 = vld [vmem:[%s11401_s0 + $0x198] ss:$144 sps:$4 sm:$0xff]   ;;  %v9162_v50 = vld [vmem:[%s11401_s0 + $0x7c] ss:$144 sps:$4 sm:$0xff]   ;;  %v716_v52 = vrot.slane %v9158_v48, %v9422_v43  ;;  %v9201_v48 = vld [vmem:[%s11401_s0 + $0x1a4] ss:$144 sps:$4 sm:$0xff]  }
 0x1e8   :  { %8389 = vmatprep.subr.bf16.mxu0 %v9126_v57  ;;  %8411 = vmatprep.subr.bf16.mxu1 %v9127_v60  ;;  %v730_v53 = vrot.slane %v9160_v49, %v9422_v43  ;;  %v723_v54 = vrot.slane %v9162_v50, %v9422_v43  ;;  %v9165_v57 = vld [vmem:[%s11402_s1 + $0x10c0] sm:$0xff]  }
 0x1e9   :  { %v9166_v60 = vld [vmem:[%s11402_s1 + $0x1000] sm:$0xff]  }
 0x1ea   :  { %6726 = vmatmul.mubr.bf16.vlgmr.msra.gmra.mrb[56].mxu0 %v942_v4  ;;  %6766 = vmatmul.mubr.bf16.vlgmr.msra.gmra.mrb[56].mxu1 %v944_v7  ;;  %v739_v58 = vcombine.high %v716_v52, %v730_v53  ;;  %v738_v59 = vcombine.low %v716_v52, %v730_v53  ;;  %v741_v61 = vcombine.high %v723_v54, %v737_v56  ;;  %v9171_v7 = vld [vmem:[%s11402_s1 + $0x1088] sm:$0xff]   ;;  %v9202_v50 = vld [vmem:[%s11402_s1 + $0x1140] sm:$0xff]  }
 0x1eb   :  { %8390 = vmatpush3.bf16.msra.mxu0 %v9128_v63  ;;  %8412 = vmatpush3.bf16.msra.mxu1 %v9129_v2  ;;  %v740_v62 = vcombine.low %v723_v54, %v737_v56  ;;  %v9167_v63 = vld [vmem:[%s11402_s1 + $0x1080] sm:$0xff]   ;;  %v9168_v2 = vld [vmem:[%s11402_s1 + $0x1048] sm:$0xff]   ;;  %v773_v53 = vrot.slane %v9201_v48, %v9422_v43 }
 0x1ec   :  { %8391 = vmatprep.subr.bf16.mxu0 %v9130_v5  ;;  %8413 = vmatprep.subr.bf16.mxu1 %v9131_v8  ;;  %v947_v0 = vpack.c.bf16 %v739_v58, %v739_v58  ;;  %v946_v1 = vpack.c.bf16 %v738_v59, %v738_v59  ;;  %v949_v3 = vpack.c.bf16 %v741_v61, %v741_v61  ;;  %v9169_v5 = vld [vmem:[%s11402_s1 + $0x10c8] sm:$0xff]   ;;  %v9172_v8 = vld [vmem:[%s11402_s1 + $0x1050] sm:$0xff]   ;;  %v9203_v54 = vld [vmem:[%s11402_s1 + $0x11c0] sm:$0xff]  }
 0x1ed   :  { %v948_v4 = vpack.c.bf16 %v740_v62, %v740_v62  ;;  %v9204_v59 = vld [vmem:[%s11402_s1 + $0x1100] sm:$0xff]  }
 0x1ee   :  { %6805 = vmatprep.mubr.bf16.mxu0 %v947_v0  ;;  %6845 = vmatprep.mubr.bf16.mxu1 %v949_v3  ;;  %v9208_v3 = vld [vmem:[%s11402_s1 + $0x1108] sm:$0xff]  }
 0x1ef   :  { %8392 = vmatpush3.bf16.msra.mxu0 %v9132_v9  ;;  %8414 = vmatpush3.bf16.msra.mxu1 %v9133_v10  ;;  %v9173_v9 = vld [vmem:[%s11402_s1 + $0x10d0] sm:$0xff]  }
 0x1f0   :  { %8393 = vmatprep.subr.bf16.mxu0 %v9134_v11  ;;  %8415 = vmatprep.subr.bf16.mxu1 %v9135_v12  ;;  %v9174_v10 = vld [vmem:[%s11402_s1 + $0x1010] sm:$0xff]  }
 0x1f1   :  { %v9175_v12 = vld [vmem:[%s11402_s1 + $0x1090] sm:$0xff]  }
 0x1f3   :  { %8394 = vmatpush3.bf16.msra.mxu0 %v9136_v13  ;;  %8416 = vmatpush3.bf16.msra.mxu1 %v9137_v15 }
 0x1f4   :  { %8395 = vmatprep.subr.bf16.mxu0 %v9138_v17  ;;  %8417 = vmatprep.subr.bf16.mxu1 %v9139_v19  ;;  %v9178_v19 = vld [vmem:[%s11402_s1 + $0x1018] sm:$0xff]  }
 0x1f6   :  { %v8097_v14 = vpop.f32.mrb[32].mxu0 }
 0x1f7   :  { %v8119_v16 = vpop.f32.mrb[32].mxu1  ;;  %v8098_v18 = vpop.f32.mrb[33].mxu0  ;;  %8396 = vmatpush3.bf16.msra.mxu0 %v9140_v22  ;;  %8418 = vmatpush3.bf16.msra.mxu1 %v9141_v25  ;;  %v9179_v22 = vld [vmem:[%s11402_s1 + $0x1098] sm:$0xff]   ;;  %v9180_v25 = vld [vmem:[%s11402_s1 + $0x1060] sm:$0xff]  }
 0x1f8   :  { %v8099_v20 = vadd.f32 %v8098_v18, %v8097_v14  ;;  %v8120_v21 = vpop.f32.mrb[33].mxu1  ;;  %v8100_v24 = vpop.f32.mrb[34].mxu0  ;;  %8397 = vmatprep.subr.bf16.mxu0 %v9142_v28  ;;  %8419 = vmatprep.subr.bf16.mxu1 %v9143_v30  ;;  %v9176_v14 = vld [vmem:[%s11402_s1 + $0x1058] sm:$0xff]   ;;  %v9182_v30 = vld [vmem:[%s11402_s1 + $0x1020] sm:$0xff]  }
 0x1f9   :  { %v8121_v23 = vadd.f32 %v8120_v21, %v8119_v16  ;;  %v8122_v27 = vpop.f32.mrb[34].mxu1  ;;  %v8101_v29 = vpop.f32.mrb[35].mxu0  ;;  %v9177_v16 = vld [vmem:[%s11402_s1 + $0x10d8] sm:$0xff]  }
 0x1fa   :  { %v6248_v26 = vadd.f32 %v8099_v20, %v10956_v34  ;;  %v8123_v32 = vpop.f32.mrb[35].mxu1  ;;  %v9145_v34 = vld [vmem:[%s11402_s1 + $0xfa0] sm:$0xff]  }
 0x1fb   :  { %8398 = vmatpush3.bf16.msra.mxu0 %v9144_v33  ;;  %8420 = vmatpush3.bf16.msra.mxu1 %v9145_v34  ;;  %v9181_v27 = vld [vmem:[%s11402_s1 + $0x10e0] sm:$0xff]   ;;  %v9184_v32 = vld [vmem:[%s11402_s1 + $0x1068] sm:$0xff]  }
 0x1fc   :  { %v11071_v31 = vadd.f32 %v8121_v23, %v6248_v26  ;;  %8399 = vmatprep.subr.bf16.mxu0 %v9146_v35  ;;  %8421 = vmatprep.subr.bf16.mxu1 %v9147_v36  ;;  %v9185_v33 = vld [vmem:[%s11402_s1 + $0x10e8] sm:$0xff]   ;;  %v9188_v36 = vld [vmem:[%s11402_s1 + $0x1070] sm:$0xff]  }
 0x1fd   :  { %v9186_v34 = vld [vmem:[%s11402_s1 + $0x1028] sm:$0xff]  }
 0x1fe   :  { %v9187_v35 = vld [vmem:[%s11402_s1 + $0x10a8] sm:$0xff]  }
 0x1ff   :  { %8400 = vmatpush3.bf16.msra.mxu0 %v9148_v37  ;;  %8422 = vmatpush3.bf16.msra.mxu1 %v9149_v38  ;;  %v9189_v37 = vld [vmem:[%s11402_s1 + $0x10f0] sm:$0xff]  }
 0x200   :  { %8401 = vmatprep.subr.bf16.mxu0 %v9150_v39  ;;  %8423 = vmatprep.subr.bf16.mxu1 %v9151_v40  ;;  %v9190_v38 = vld [vmem:[%s11402_s1 + $0x1030] sm:$0xff]   ;;  %v9192_v40 = vld [vmem:[%s11402_s1 + $0x1078] sm:$0xff]  }
 0x201   :  { %v9191_v39 = vld [vmem:[%s11402_s1 + $0x10b0] sm:$0xff]  }
 0x203   :  { %8402 = vmatpush3.bf16.msra.mxu0 %v9152_v41  ;;  %8424 = vmatpush3.bf16.msra.mxu1 %v9153_v42  ;;  %v9193_v41 = vld [vmem:[%s11402_s1 + $0x10f8] sm:$0xff]  }
 0x204   :  { %8403 = vmatprep.subr.bf16.mxu0 %v9154_v44  ;;  %8425 = vmatprep.subr.bf16.mxu1 %v9155_v45  ;;  %v9194_v42 = vld [vmem:[%s11402_s1 + $0x1038] sm:$0xff]   ;;  %v9196_v45 = vld [vmem:[%s11401_s0 + $0x80] ss:$144 sps:$4 sm:$0xff]  }
 0x205   :  { %v9195_v44 = vld [vmem:[%s11402_s1 + $0x10b8] sm:$0xff]   ;;  %v752_v49 = vrot.slane %v9196_v45, %v9422_v43 }
 0x206   :  { %v9239_v45 = vld [vmem:[%s11401_s0 + $0x1ac] ss:$144 sps:$4 sm:$0xff]  }
 0x207   :  { %8404 = vmatpush3.bf16.msra.mxu0 %v9156_v46  ;;  %8426 = vmatpush3.bf16.msra.mxu1 %v9157_v47  ;;  %v9198_v46 = vld [vmem:[%s11401_s0 + $0x1a0] ss:$144 sps:$4 sm:$0xff]   ;;  %v9200_v47 = vld [vmem:[%s11401_s0 + $0x84] ss:$144 sps:$4 sm:$0xff]  }
 0x208   :  { %8433 = vmatprep.subr.bf16.mxu0 %v9164_v55  ;;  %8455 = vmatprep.subr.bf16.mxu1 %v9165_v57  ;;  %v766_v51 = vrot.slane %v9198_v46, %v9422_v43  ;;  %v759_v52 = vrot.slane %v9200_v47, %v9422_v43 }
 0x20a   :  { %6806 = vmatmul.mubr.bf16.vlgmr.msra.gmra.mrb[60].mxu0 %v946_v1  ;;  %6846 = vmatmul.mubr.bf16.vlgmr.msra.gmra.mrb[60].mxu1 %v948_v4  ;;  %v775_v55 = vcombine.high %v752_v49, %v766_v51  ;;  %v777_v56 = vcombine.high %v759_v52, %v773_v53  ;;  %v774_v57 = vcombine.low %v752_v49, %v766_v51  ;;  %v9206_v1 = vld [vmem:[%s11402_s1 + $0x1148] sm:$0xff]  }
 0x20b   :  { %8434 = vmatpush3.bf16.msra.mxu0 %v9166_v60  ;;  %8456 = vmatpush3.bf16.msra.mxu1 %v9167_v63  ;;  %v776_v58 = vcombine.low %v759_v52, %v773_v53  ;;  %v9205_v60 = vld [vmem:[%s11402_s1 + $0x1180] sm:$0xff]   ;;  %v9209_v4 = vld [vmem:[%s11402_s1 + $0x1188] sm:$0xff]   ;;  %v809_v49 = vrot.slane %v9239_v45, %v9422_v43 }
 0x20c   :  { %8435 = vmatprep.subr.bf16.mxu0 %v9168_v2  ;;  %8457 = vmatprep.subr.bf16.mxu1 %v9169_v5  ;;  %v951_v61 = vpack.c.bf16 %v775_v55, %v775_v55  ;;  %v953_v62 = vpack.c.bf16 %v777_v56, %v777_v56  ;;  %v950_v63 = vpack.c.bf16 %v774_v57, %v774_v57  ;;  %v9207_v2 = vld [vmem:[%s11402_s1 + $0x11c8] sm:$0xff]   ;;  %v9210_v5 = vld [vmem:[%s11402_s1 + $0x1150] sm:$0xff]  }
 0x20d   :  { %v952_v0 = vpack.c.bf16 %v776_v58, %v776_v58 }
 0x20e   :  { %6885 = vmatprep.mubr.bf16.mxu0 %v951_v61  ;;  %6925 = vmatprep.mubr.bf16.mxu1 %v953_v62 }
 0x20f   :  { %8436 = vmatpush3.bf16.msra.mxu0 %v9170_v6  ;;  %8458 = vmatpush3.bf16.msra.mxu1 %v9171_v7  ;;  %v9211_v6 = vld [vmem:[%s11402_s1 + $0x11d0] sm:$0xff]  }
 0x210   :  { %8437 = vmatprep.subr.bf16.mxu0 %v9172_v8  ;;  %8459 = vmatprep.subr.bf16.mxu1 %v9173_v9  ;;  %v9212_v7 = vld [vmem:[%s11402_s1 + $0x1110] sm:$0xff]  }
 0x211   :  { %v9213_v9 = vld [vmem:[%s11402_s1 + $0x1190] sm:$0xff]  }
 0x213   :  { %8438 = vmatpush3.bf16.msra.mxu0 %v9174_v10  ;;  %8460 = vmatpush3.bf16.msra.mxu1 %v9175_v12 }
 0x214   :  { %8439 = vmatprep.subr.bf16.mxu0 %v9176_v14  ;;  %8461 = vmatprep.subr.bf16.mxu1 %v9177_v16  ;;  %v9216_v16 = vld [vmem:[%s11402_s1 + $0x1118] sm:$0xff]  }
 0x216   :  { %v8141_v11 = vpop.f32.mrb[36].mxu0 }
 0x217   :  { %v8142_v15 = vpop.f32.mrb[37].mxu0  ;;  %8440 = vmatpush3.bf16.msra.mxu0 %v9178_v19  ;;  %8462 = vmatpush3.bf16.msra.mxu1 %v9179_v22  ;;  %v9217_v19 = vld [vmem:[%s11402_s1 + $0x1198] sm:$0xff]   ;;  %v9218_v22 = vld [vmem:[%s11402_s1 + $0x1160] sm:$0xff]  }
 0x218   :  { %v8143_v17 = vadd.f32 %v8142_v15, %v8141_v11  ;;  %v8144_v21 = vpop.f32.mrb[38].mxu0  ;;  %8441 = vmatprep.subr.bf16.mxu0 %v9180_v25  ;;  %8463 = vmatprep.subr.bf16.mxu1 %v9181_v27  ;;  %v9214_v11 = vld [vmem:[%s11402_s1 + $0x1158] sm:$0xff]   ;;  %v9220_v27 = vld [vmem:[%s11402_s1 + $0x1120] sm:$0xff]  }
 0x219   :  { %v8145_v26 = vpop.f32.mrb[39].mxu0 }
 0x21a   :  { %v6328_v23 = vadd.f32 %v8143_v17, %v11071_v31  ;;  %v9183_v31 = vld [vmem:[%s11402_s1 + $0x10a0] sm:$0xff]  }
 0x21b   :  { %8442 = vmatpush3.bf16.msra.mxu0 %v9182_v30  ;;  %8464 = vmatpush3.bf16.msra.mxu1 %v9183_v31  ;;  %v9223_v30 = vld [vmem:[%s11402_s1 + $0x11e8] sm:$0xff]  }
 0x21c   :  { %8443 = vmatprep.subr.bf16.mxu0 %v9184_v32  ;;  %8465 = vmatprep.subr.bf16.mxu1 %v9185_v33  ;;  %v9224_v31 = vld [vmem:[%s11402_s1 + $0x1128] sm:$0xff]   ;;  %v9226_v33 = vld [vmem:[%s11402_s1 + $0x1170] sm:$0xff]  }
 0x21d   :  { %v8163_v13 = vpop.f32.mrb[36].mxu1  ;;  %v9225_v32 = vld [vmem:[%s11402_s1 + $0x11a8] sm:$0xff]  }
 0x21e   :  { %v8164_v18 = vpop.f32.mrb[37].mxu1 }
 0x21f   :  { %v8165_v20 = vadd.f32 %v8164_v18, %v8163_v13  ;;  %v8166_v24 = vpop.f32.mrb[38].mxu1  ;;  %8444 = vmatpush3.bf16.msra.mxu0 %v9186_v34  ;;  %8466 = vmatpush3.bf16.msra.mxu1 %v9187_v35  ;;  %v9215_v13 = vld [vmem:[%s11402_s1 + $0x11d8] sm:$0xff]   ;;  %v9227_v34 = vld [vmem:[%s11402_s1 + $0x11f0] sm:$0xff]  }
 0x220   :  { %v8167_v29 = vpop.f32.mrb[39].mxu1  ;;  %8445 = vmatprep.subr.bf16.mxu0 %v9188_v36  ;;  %8467 = vmatprep.subr.bf16.mxu1 %v9189_v37  ;;  %v9219_v24 = vld [vmem:[%s11402_s1 + $0x11e0] sm:$0xff]   ;;  %v9228_v35 = vld [vmem:[%s11402_s1 + $0x1130] sm:$0xff]   ;;  %v9230_v37 = vld [vmem:[%s11402_s1 + $0x1178] sm:$0xff]  }
 0x221   :  { %v11186_v28 = vadd.f32 %v8165_v20, %v6328_v23  ;;  %v9222_v29 = vld [vmem:[%s11402_s1 + $0x1168] sm:$0xff]   ;;  %v9229_v36 = vld [vmem:[%s11402_s1 + $0x11b0] sm:$0xff]  }
 0x223   :  { %8446 = vmatpush3.bf16.msra.mxu0 %v9190_v38  ;;  %8468 = vmatpush3.bf16.msra.mxu1 %v9191_v39  ;;  %v9231_v38 = vld [vmem:[%s11402_s1 + $0x11f8] sm:$0xff]  }
 0x224   :  { %8447 = vmatprep.subr.bf16.mxu0 %v9192_v40  ;;  %8469 = vmatprep.subr.bf16.mxu1 %v9193_v41  ;;  %v9232_v39 = vld [vmem:[%s11402_s1 + $0x1138] sm:$0xff]  }
 0x225   :  { %v9233_v40 = vld [vmem:[%s11402_s1 + $0x11b8] sm:$0xff]  }
 0x226   :  { %v9234_v41 = vld [vmem:[%s11401_s0 + $0x88] ss:$144 sps:$4 sm:$0xff]  }
 0x227   :  { %8448 = vmatpush3.bf16.msra.mxu0 %v9194_v42  ;;  %8470 = vmatpush3.bf16.msra.mxu1 %v9195_v44  ;;  %v9236_v42 = vld [vmem:[%s11401_s0 + $0x1a8] ss:$144 sps:$4 sm:$0xff]   ;;  %v9238_v44 = vld [vmem:[%s11401_s0 + $0x8c] ss:$144 sps:$4 sm:$0xff]   ;;  %v788_v46 = vrot.slane %v9234_v41, %v9422_v43 }
 0x228   :  { %8477 = vmatprep.subr.bf16.mxu0 %v9202_v50  ;;  %8499 = vmatprep.subr.bf16.mxu1 %v9203_v54  ;;  %v802_v47 = vrot.slane %v9236_v42, %v9422_v43  ;;  %v795_v48 = vrot.slane %v9238_v44, %v9422_v43 }
 0x22a   :  { %6886 = vmatmul.mubr.bf16.vlgmr.msra.gmra.mrb[64].mxu0 %v950_v63  ;;  %6926 = vmatmul.mubr.bf16.vlgmr.msra.gmra.mrb[64].mxu1 %v952_v0  ;;  %v811_v50 = vcombine.high %v788_v46, %v802_v47  ;;  %v810_v51 = vcombine.low %v788_v46, %v802_v47  ;;  %v813_v52 = vcombine.high %v795_v48, %v809_v49 }
 0x22b   :  { %8478 = vmatpush3.bf16.msra.mxu0 %v9204_v59  ;;  %8500 = vmatpush3.bf16.msra.mxu1 %v9205_v60  ;;  %v812_v53 = vcombine.low %v795_v48, %v809_v49 }
 0x22c   :  { %8479 = vmatprep.subr.bf16.mxu0 %v9206_v1  ;;  %8501 = vmatprep.subr.bf16.mxu1 %v9207_v2  ;;  %v955_v54 = vpack.c.bf16 %v811_v50, %v811_v50  ;;  %v954_v55 = vpack.c.bf16 %v810_v51, %v810_v51  ;;  %v957_v56 = vpack.c.bf16 %v813_v52, %v813_v52 }
 0x22d   :  { %v956_v57 = vpack.c.bf16 %v812_v53, %v812_v53 }
 0x22e   :  { %6965 = vmatprep.mubr.bf16.mxu0 %v955_v54  ;;  %7005 = vmatprep.mubr.bf16.mxu1 %v957_v56 }
 0x22f   :  { %8480 = vmatpush3.bf16.msra.mxu0 %v9208_v3  ;;  %8502 = vmatpush3.bf16.msra.mxu1 %v9209_v4 }
 0x230   :  { %8481 = vmatprep.subr.bf16.mxu0 %v9210_v5  ;;  %8503 = vmatprep.subr.bf16.mxu1 %v9211_v6 }
 0x233   :  { %8482 = vmatpush3.bf16.msra.mxu0 %v9212_v7  ;;  %8504 = vmatpush3.bf16.msra.mxu1 %v9213_v9 }
 0x234   :  { %8483 = vmatprep.subr.bf16.mxu0 %v9214_v11  ;;  %8505 = vmatprep.subr.bf16.mxu1 %v9215_v13 }
 0x236   :  { %v8185_v8 = vpop.f32.mrb[40].mxu0 }
 0x237   :  { %v8186_v12 = vpop.f32.mrb[41].mxu0  ;;  %8484 = vmatpush3.bf16.msra.mxu0 %v9216_v16  ;;  %8506 = vmatpush3.bf16.msra.mxu1 %v9217_v19  ;;  %v9241_v19 = vld [vmem:[%s11404_s3 + $0x8] sm:$0xff]  }
 0x238   :  { %v8187_v14 = vadd.f32 %v8186_v12, %v8185_v8  ;;  %v8188_v18 = vpop.f32.mrb[42].mxu0  ;;  %8485 = vmatprep.subr.bf16.mxu0 %v9218_v22  ;;  %8507 = vmatprep.subr.bf16.mxu1 %v9219_v24  ;;  %v9244_v22 = vld [vmem:[%s11404_s3 + $0x20] sm:$0xff]  }
 0x239   :  { %v8189_v23 = vpop.f32.mrb[43].mxu0  ;;  %v9273_v18 = vmov 0.0  }
 0x23a   :  { %v6408_v20 = vadd.f32 %v8187_v14, %v11186_v28  ;;  %v9221_v28 = vld [vmem:[%s11402_s1 + $0x11a0] sm:$0xff]  }
 0x23b   :  { %8486 = vmatpush3.bf16.msra.mxu0 %v9220_v27  ;;  %8508 = vmatpush3.bf16.msra.mxu1 %v9221_v28 }
 0x23c   :  { %8487 = vmatprep.subr.bf16.mxu0 %v9222_v29  ;;  %8509 = vmatprep.subr.bf16.mxu1 %v9223_v30 }
 0x23d   :  { %v8207_v10 = vpop.f32.mrb[40].mxu1 }
 0x23e   :  { %v8208_v15 = vpop.f32.mrb[41].mxu1 }
 0x23f   :  { %v8209_v17 = vadd.f32 %v8208_v15, %v8207_v10  ;;  %v8210_v21 = vpop.f32.mrb[42].mxu1  ;;  %8488 = vmatpush3.bf16.msra.mxu0 %v9224_v31  ;;  %8510 = vmatpush3.bf16.msra.mxu1 %v9225_v32 }
 0x240   :  { %v8211_v26 = vpop.f32.mrb[43].mxu1  ;;  %8489 = vmatprep.subr.bf16.mxu0 %v9226_v33  ;;  %8511 = vmatprep.subr.bf16.mxu1 %v9227_v34  ;;  %v9243_v21 = vld [vmem:[%s11404_s3 + $0x18] sm:$0xff]  }
 0x241   :  { %v11301_v25 = vadd.f32 %v8209_v17, %v6408_v20  ;;  %v9240_v17 = vld [vmem:[%s11404_s3] sm:$0xff]   ;;  %v9242_v20 = vld [vmem:[%s11404_s3 + $0x10] sm:$0xff]  }
 0x243   :  { %8490 = vmatpush3.bf16.msra.mxu0 %v9228_v35  ;;  %8512 = vmatpush3.bf16.msra.mxu1 %v9229_v36  ;;  %v9245_v35 = vld [vmem:[%s11404_s3 + $0x28] sm:$0xff]   ;;  %v9246_v36 = vld [vmem:[%s11404_s3 + $0x30] sm:$0xff]  }
 0x244   :  { %8491 = vmatprep.subr.bf16.mxu0 %v9230_v37  ;;  %8513 = vmatprep.subr.bf16.mxu1 %v9231_v38  ;;  %v9247_v37 = vld [vmem:[%s11404_s3 + $0x38] sm:$0xff]  }
 0x247   :  { %8492 = vmatpush3.bf16.msra.mxu0 %v9232_v39  ;;  %8514 = vmatpush3.bf16.msra.mxu1 %v9233_v40 }
 0x248   :  { %8530 = vmatprep.subr.bf16.mxu0 %v9273_v18 }
 0x24a   :  { %6966 = vmatmul.mubr.bf16.vlgmr.msra.gmra.mrb[68].mxu0 %v954_v55  ;;  %7006 = vmatmul.mubr.bf16.vlgmr.msra.gmra.mrb[68].mxu1 %v956_v57 }
 0x24b   :  { %8531 = vmatpush3.bf16.msra.mxu0 %v9240_v17  ;;  %8546 = vmatprep.mubr.msk.bf16.mxu0 %vm9274_vm0, %v9273_v18 }
 0x24c   :  { %8532 = vmatprep.subr.bf16.mxu0 %v9273_v18 }
 0x24f   :  { %8533 = vmatpush3.bf16.msra.mxu0 %v9241_v19 }
 0x250   :  { %8534 = vmatprep.subr.bf16.mxu0 %v9273_v18 }
 0x253   :  { %8535 = vmatpush3.bf16.msra.mxu0 %v9242_v20 }
 0x254   :  { %8536 = vmatprep.subr.bf16.mxu0 %v9273_v18 }
 0x256   :  { %v8229_v58 = vpop.f32.mrb[44].mxu0 }
 0x257   :  { %v8230_v60 = vpop.f32.mrb[45].mxu0  ;;  %8537 = vmatpush3.bf16.msra.mxu0 %v9243_v21 }
 0x258   :  { %v8231_v61 = vadd.f32 %v8230_v60, %v8229_v58  ;;  %v8232_v43 = vpop.f32.mrb[46].mxu0  ;;  %8538 = vmatprep.subr.bf16.mxu0 %v9273_v18 }
 0x259   :  { %v8233_v1 = vpop.f32.mrb[47].mxu0 }
 0x25a   :  { %v6488_v2 = vadd.f32 %v8231_v61, %v11301_v25 }
 0x25b   :  { %8539 = vmatpush3.bf16.msra.mxu0 %v9244_v22 }
 0x25c   :  { %8540 = vmatprep.subr.bf16.mxu0 %v9273_v18 }
 0x25d   :  { %v8251_v59 = vpop.f32.mrb[44].mxu1 }
 0x25e   :  { %v8252_v62 = vpop.f32.mrb[45].mxu1 }
 0x25f   :  { %v8253_v63 = vadd.f32 %v8252_v62, %v8251_v59  ;;  %v8254_v0 = vpop.f32.mrb[46].mxu1  ;;  %8541 = vmatpush3.bf16.msra.mxu0 %v9245_v35 }
 0x260   :  { %v8255_v3 = vpop.f32.mrb[47].mxu1  ;;  %8542 = vmatprep.subr.bf16.mxu0 %v9273_v18 }
 0x261   :  { %v6528_v4 = vadd.f32 %v8253_v63, %v6488_v2 }
 0x263   :  { %8543 = vmatpush3.bf16.msra.mxu0 %v9246_v36 }
 0x264   :  { %8544 = vmatprep.subr.bf16.mxu0 %v9273_v18 }
 0x267   :  { %8545 = vmatpush3.bf16.msra.mxu0 %v9247_v37 }
 0x27d   :  { %v8273_v5 = vpop.f32.mrb[48].mxu0  ;;  %v8295_v6 = vpop.f32.mrb[48].mxu1 }
 0x27e   :  { %v8274_v7 = vpop.f32.mrb[49].mxu0  ;;  %v8296_v9 = vpop.f32.mrb[49].mxu1 }
 0x27f   :  { %v8275_v8 = vadd.f32 %v8274_v7, %v8273_v5  ;;  %v8276_v10 = vpop.f32.mrb[50].mxu0  ;;  %v8297_v11 = vadd.f32 %v8296_v9, %v8295_v6  ;;  %v8298_v12 = vpop.f32.mrb[50].mxu1 }
 0x280   :  { %v8277_v13 = vpop.f32.mrb[51].mxu0  ;;  %v8299_v15 = vpop.f32.mrb[51].mxu1 }
 0x281   :  { %v6568_v14 = vadd.f32 %v8275_v8, %v6528_v4 }
 0x283   :  { %v6608_v16 = vadd.f32 %v8297_v11, %v6568_v14 }
 0x29d   :  { %v8317_v23 = vpop.f32.mrb[52].mxu0  ;;  %v8339_v24 = vpop.f32.mrb[52].mxu1 }
 0x29e   :  { %v8318_v25 = vpop.f32.mrb[53].mxu0  ;;  %v8340_v26 = vpop.f32.mrb[53].mxu1 }
 0x29f   :  { %v8319_v27 = vadd.f32 %v8318_v25, %v8317_v23  ;;  %v8341_v28 = vadd.f32 %v8340_v26, %v8339_v24  ;;  %v8320_v29 = vpop.f32.mrb[54].mxu0  ;;  %v8342_v30 = vpop.f32.mrb[54].mxu1  ;;  %v7720_v24 = vld [vmem:[%s11405_s4] ss:$0 sm:$0xff] }
 0x2a0   :  { %v8321_v31 = vpop.f32.mrb[55].mxu0  ;;  %v8343_v32 = vpop.f32.mrb[55].mxu1 }
 0x2a1   :  { %v6648_v33 = vadd.f32 %v8319_v27, %v6608_v16 }
 0x2a3   :  { %v6688_v34 = vadd.f32 %v8341_v28, %v6648_v33 }
 0x2bd   :  { %v8361_v38 = vpop.f32.mrb[56].mxu0  ;;  %v8383_v39 = vpop.f32.mrb[56].mxu1 }
 0x2be   :  { %v8362_v40 = vpop.f32.mrb[57].mxu0  ;;  %v8384_v42 = vpop.f32.mrb[57].mxu1 }
 0x2bf   :  { %v8363_v41 = vadd.f32 %v8362_v40, %v8361_v38  ;;  %v8364_v44 = vpop.f32.mrb[58].mxu0  ;;  %v8385_v45 = vadd.f32 %v8384_v42, %v8383_v39  ;;  %v8386_v46 = vpop.f32.mrb[58].mxu1 }
 0x2c0   :  { %v8365_v47 = vpop.f32.mrb[59].mxu0  ;;  %v8387_v49 = vpop.f32.mrb[59].mxu1 }
 0x2c1   :  { %v6728_v48 = vadd.f32 %v8363_v41, %v6688_v34 }
 0x2c3   :  { %v6768_v50 = vadd.f32 %v8385_v45, %v6728_v48 }
 0x2dd   :  { %v8405_v51 = vpop.f32.mrb[60].mxu0  ;;  %v8427_v52 = vpop.f32.mrb[60].mxu1 }
 0x2de   :  { %v8406_v53 = vpop.f32.mrb[61].mxu0  ;;  %v8428_v55 = vpop.f32.mrb[61].mxu1 }
 0x2df   :  { %v8407_v54 = vadd.f32 %v8406_v53, %v8405_v51  ;;  %v8408_v56 = vpop.f32.mrb[62].mxu0  ;;  %v8429_v57 = vadd.f32 %v8428_v55, %v8427_v52  ;;  %v8430_v58 = vpop.f32.mrb[62].mxu1 }
 0x2e0   :  { %v8409_v59 = vpop.f32.mrb[63].mxu0  ;;  %v8431_v61 = vpop.f32.mrb[63].mxu1 }
 0x2e1   :  { %v6808_v60 = vadd.f32 %v8407_v54, %v6768_v50 }
 0x2e3   :  { %v6848_v62 = vadd.f32 %v8429_v57, %v6808_v60 }
 0x2fd   :  { %v8449_v43 = vpop.f32.mrb[64].mxu0  ;;  %v8471_v63 = vpop.f32.mrb[64].mxu1 }
 0x2fe   :  { %v8450_v0 = vpop.f32.mrb[65].mxu0  ;;  %v8472_v1 = vpop.f32.mrb[65].mxu1 }
 0x2ff   :  { %v8451_v2 = vadd.f32 %v8450_v0, %v8449_v43  ;;  %v8473_v3 = vadd.f32 %v8472_v1, %v8471_v63  ;;  %v8452_v4 = vpop.f32.mrb[66].mxu0  ;;  %v8474_v5 = vpop.f32.mrb[66].mxu1 }
 0x300   :  { %v8453_v6 = vpop.f32.mrb[67].mxu0  ;;  %v8475_v7 = vpop.f32.mrb[67].mxu1 }
 0x301   :  { %v6888_v8 = vadd.f32 %v8451_v2, %v6848_v62 }
 0x303   :  { %v6928_v9 = vadd.f32 %v8473_v3, %v6888_v8 }
 0x31d   :  { %v8493_v10 = vpop.f32.mrb[68].mxu0  ;;  %v8515_v11 = vpop.f32.mrb[68].mxu1 }
 0x31e   :  { %v8494_v12 = vpop.f32.mrb[69].mxu0  ;;  %v8516_v14 = vpop.f32.mrb[69].mxu1 }
 0x31f   :  { %v8495_v13 = vadd.f32 %v8494_v12, %v8493_v10  ;;  %v8496_v15 = vpop.f32.mrb[70].mxu0  ;;  %v8517_v16 = vadd.f32 %v8516_v14, %v8515_v11  ;;  %v8518_v17 = vpop.f32.mrb[70].mxu1 }
 0x320   :  { %v8497_v18 = vpop.f32.mrb[71].mxu0  ;;  %v8519_v20 = vpop.f32.mrb[71].mxu1 }
 0x321   :  { %v6968_v19 = vadd.f32 %v8495_v13, %v6928_v9 }
 0x323   :  { %v7008_v21 = vadd.f32 %v8517_v16, %v6968_v19 }
 0x325   :  { %v7013_v22 = vmax.f32 %v7008_v21, 0.0 }
 0x327   :  { %v7014_v23 = vpack.c.bf16 %v7013_v22, %v7013_v22 }
 0x329   :  { %8547 = vmatmul.mubr.bf16.vlgmr.msra.gmra.mrb[72].mxu0 %v7014_v23 }
 0x3fc   :  { %v7120_v25 = vpop.f32.mrb[72].mxu0 }
 0x3fd   :  { %v7121_v26 = vadd.f32 %v7720_v24, %v7120_v25  ;;  %v8548_v27 = vpop.f32.mrb[73].mxu0 }
 0x3fe   :  { %v7123_v28 = vpop.f32.mrb[74].mxu0 }
 0x3ff   :  { %7126 = vst [vmem:[#allocation2] sm:$0xff] %v7121_v26  ;;  %v8549_v29 = vpop.f32.mrb[75].mxu0 }
 0x400   :  { %7131 = vsyncadd [#allocation3], 96  ;;  %s9275_s26 = smov [#allocation2]  }
 0x401   :  { %s7132_s27 = sshll.u32 %s9275_s26, 4  ;;  %s7133_s27 = int_to_ptr.vmem [resolvable:$true] %s7132_s27 }
 0x402   :  { %s9248_s28 = scalar_lea.vmem %s7133_s27, 32  ;;  %s9252_s29 = scalar_lea.vmem %s7133_s27, 128 }
 0x403   :  { %p9249_p0 = scmp.ne.s32.totalorder %s7133_s27, %s9248_s28  ;;  %p9253_p1 = scmp.lt.s32.totalorder %s7133_s27, %s7133_s27 }
 0x404   :  { %p9254_p2 = scmp.lt.s32.totalorder %s9252_s29, %s9248_s28 }
 0x406   :  { %p9255_p3 = por %p9254_p2, %p9253_p1 }
 0x408   :  { %p9256_p4 = pnand %p9255_p3, %p9249_p0 }
 0x40a   :  { %9259 = shalt.err (!%p9256_p4)
}
 0x40b   :  { %s9260_s6 = scalar_lea.hbm %s11406_s5, 32 }
 0x40c   :  { %p9261_p5 = scmp.ne.s32.totalorder %s11406_s5, %s9260_s6  ;;  %p9264_p6 = scmp.lt.u32.totalorder %s9260_s6, %s11406_s5 }
 0x40e   :  { %p9266_p7 = pnand %p9264_p6, %p9261_p5 }
 0x410   :  { %9269 = shalt.err (!%p9266_p7)
}
 0x411   :  { %s9276_s11 = smov 32   ;;  %s9277_s0 = smov 2  }
 0x412   :  { %7138 = dma.vmem_to_hbm [thread:$0]  %s7133_s27, 32, %s11406_s5, [#allocation3], %s9276_s11, %s9276_s11, %s9277_s0  }
 0x413   :  { %9270 = dma.done.wait [#allocation3], 128  }
 0x414   :  { %9271 = vsyncadd [#allocation3], 4294967168 }
 0x415   :  { %7142 = vsyncpa [#allocation3], 1 }

</bundles_post_ra>
